<compile_context>
chip_gen: v5e
topology: v5e:2x2
jax: 0.10.0
libtpu: 0.0.40
codegen_flags: <defaults>
</compile_context>

<pallas_src>
import functools

import jax
import jax.numpy as jnp
from jax.experimental import pallas as pl
from jax.experimental.pallas import tpu as pltpu


MXU_DTYPE = jnp.bfloat16   # MXU inputs; accumulation is f32 (preferred_element_type)
NEG_SLOPE = 0.01           # torch nn.LeakyReLU() default


# ----------------------------------------------------------------------------
# Pallas kernel: tiled matmul + bias + optional LeakyReLU (fused epilogue)
# ----------------------------------------------------------------------------
def _matmul_bias_act_kernel(x_ref, w_ref, b_ref, o_ref, acc_ref, *, leaky, neg_slope):
    k = pl.program_id(1)

    @pl.when(k == 0)
    def _init():
        acc_ref[...] = jnp.zeros_like(acc_ref)

    acc_ref[...] += jnp.dot(x_ref[...], w_ref[...], preferred_element_type=jnp.float32)

    @pl.when(k == pl.num_programs(1) - 1)
    def _finalize():
        acc = acc_ref[...] + b_ref[...].astype(jnp.float32)
        if leaky:
            acc = jnp.where(acc > 0, acc, neg_slope * acc)
        o_ref[...] = acc.astype(o_ref.dtype)


def _pick_tm(m):
    for t in (512, 256, 128, 64, 32, 16, 8):
        if m % t == 0:
            return t
    return m


def _pick_tk(k):
    for t in (640, 512, 384, 256, 128):
        if k % t == 0:
            return t
    return k


def matmul_bias_act(x, w, b, *, leaky, neg_slope=NEG_SLOPE, out_dtype=MXU_DTYPE):
    """y = act(x @ w + b).  x:(M,K), w:(K,N), b:(N,). K and N multiples of 128."""
    m, k = x.shape
    k2, n = w.shape
    assert k == k2 and k % 128 == 0 and n % 128 == 0, (x.shape, w.shape)
    tm, tk = _pick_tm(m), _pick_tk(k)
    grid = (m // tm, k // tk)

    kernel = functools.partial(_matmul_bias_act_kernel, leaky=leaky, neg_slope=neg_slope)
    out_bytes = m * n * jnp.dtype(out_dtype).itemsize
    cost = pl.CostEstimate(
        flops=2 * m * n * k,
        transcendentals=0,
        bytes_accessed=(m * k * x.dtype.itemsize
                        + k * n * w.dtype.itemsize
                        + n * 4
                        + out_bytes),
    )
    return pl.pallas_call(
        kernel,
        out_shape=jax.ShapeDtypeStruct((m, n), out_dtype),
        grid_spec=pltpu.PrefetchScalarGridSpec(
            num_scalar_prefetch=0,
            grid=grid,
            in_specs=[
                pl.BlockSpec((tm, tk), lambda i, j: (i, j)),
                pl.BlockSpec((tk, n), lambda i, j: (j, 0)),
                pl.BlockSpec((1, n), lambda i, j: (0, 0)),
            ],
            out_specs=pl.BlockSpec((tm, n), lambda i, j: (i, 0)),
            scratch_shapes=[pltpu.VMEM((tm, n), jnp.float32)],
        ),
        compiler_params=pltpu.CompilerParams(
            dimension_semantics=("parallel", "arbitrary"),
            vmem_limit_bytes=32 * 1024 * 1024,
        ),
        cost_estimate=cost,
    )(x, w, b.reshape(1, n).astype(jnp.float32))


# ----------------------------------------------------------------------------
# Pallas kernel: FC row-dot (VPU multiply + lane reduction; no 1-column MXU pass)
# ----------------------------------------------------------------------------
def _fc_kernel(x_ref, w_ref, b_ref, o_ref):
    x = x_ref[...].astype(jnp.float32)
    w = w_ref[...].astype(jnp.float32)          # (1, K) broadcasts over rows
    o_ref[...] = jnp.sum(x * w, axis=-1, keepdims=True) + b_ref[...]


def fc_dot(x, w_row, b):
    """x:(N,K) bf16/f32, w_row:(1,K), b:(1,)  ->  (N,1) f32."""
    n_rows, _ = x.shape
    return pl.pallas_call(
        _fc_kernel,
        out_shape=jax.ShapeDtypeStruct((n_rows, 1), jnp.float32),
        in_specs=[pl.BlockSpec(memory_space=pltpu.MemorySpace.VMEM)] * 3,
        out_specs=pl.BlockSpec(memory_space=pltpu.MemorySpace.VMEM),
    )(x, w_row.astype(jnp.float32), b.reshape(1, 1).astype(jnp.float32))


# ----------------------------------------------------------------------------
# Plain-JAX glue: NHWC im2col (strided slices only, no big-tensor transposes)
# ----------------------------------------------------------------------------
def im2col_nhwc(x_nhwc, k=5, stride=2, pad=2):
    n, h, w, c = x_nhwc.shape
    ho = (h + 2 * pad - k) // stride + 1
    wo = (w + 2 * pad - k) // stride + 1
    xp = jnp.pad(x_nhwc, ((0, 0), (pad, pad), (pad, pad), (0, 0)))
    taps = []
    for kh in range(k):
        for kw in range(k):
            taps.append(xp[:, kh:kh + stride * ho:stride, kw:kw + stride * wo:stride, :])
    p = jnp.stack(taps, axis=3)                           # (N, Ho, Wo, k*k, C)
    p = p.reshape(n * ho * wo, k * k * c).astype(MXU_DTYPE)  # K order: (kh, kw, c)
    return p, ho, wo


def _prep_conv_weight(weight, bias, cin_act, cout_pad):
    """torch (Cout,Cin,kH,kW) -> (K_pad, cout_pad) in (kh,kw,cin) order, zero-padded."""
    cout, cin, kh, kw = weight.shape
    wk = jnp.transpose(weight, (2, 3, 1, 0))              # (kh, kw, cin, cout)
    if cin_act > cin:                                     # padded input channels -> 0 weight
        wk = jnp.pad(wk, ((0, 0), (0, 0), (0, cin_act - cin), (0, 0)))
    if cout_pad > cout:                                   # padded output channels -> 0 weight/bias
        wk = jnp.pad(wk, ((0, 0), (0, 0), (0, 0), (0, cout_pad - cout)))
        bias = jnp.pad(bias, (0, cout_pad - cout))
    w2d = wk.reshape(kh * kw * cin_act, cout_pad)
    k_dim = w2d.shape[0]
    k_pad = ((k_dim + 127) // 128) * 128                  # align reduction dim to 128
    if k_pad > k_dim:
        w2d = jnp.pad(w2d, ((0, k_pad - k_dim), (0, 0)))
    return w2d.astype(MXU_DTYPE), bias.astype(jnp.float32), k_pad


def conv2d_leaky(x_nhwc, weight, bias, *, cout_pad):
    """Conv2d(k=5,s=2,p=2) + LeakyReLU on NHWC input; output channels padded to cout_pad."""
    n = x_nhwc.shape[0]
    cin_act = x_nhwc.shape[-1]
    kh = weight.shape[2]
    w2d, b_pad, k_pad = _prep_conv_weight(weight, bias, cin_act, cout_pad)
    patches, ho, wo = im2col_nhwc(x_nhwc, k=kh, stride=2, pad=2)
    if patches.shape[1] < k_pad:
        patches = jnp.pad(patches, ((0, 0), (0, k_pad - patches.shape[1])))
    y = matmul_bias_act(patches, w2d, b_pad, leaky=True)  # (N*Ho*Wo, cout_pad), bf16
    return y.reshape(n, ho, wo, cout_pad)


# ----------------------------------------------------------------------------
# Model
# ----------------------------------------------------------------------------
def init_params(key, n_channel):
    ks = jax.random.split(key, 8)

    def conv_init(kw, kb, cout, cin, k):
        fan_in = cin * k * k
        bound = 1.0 / jnp.sqrt(fan_in)
        w = jax.random.uniform(kw, (cout, cin, k, k), jnp.float32, -bound, bound)
        b = jax.random.uniform(kb, (cout,), jnp.float32, -bound, bound)
        return w, b

    p = {}
    p["conv1_w"], p["conv1_b"] = conv_init(ks[0], ks[1], 64, n_channel, 5)
    p["conv2_w"], p["conv2_b"] = conv_init(ks[2], ks[3], 128, 64, 5)
    p["conv3_w"], p["conv3_b"] = conv_init(ks[4], ks[5], 256, 128, 5)
    bound = 1.0 / jnp.sqrt(4096.0)
    p["fc_w"] = jax.random.uniform(ks[6], (1, 4096), jnp.float32, -bound, bound)
    p["fc_b"] = jax.random.uniform(ks[7], (1,), jnp.float32, -bound, bound)
    return p


def discriminator_mnist_forward(params, x_nchw):
    # x: (N, n_channel, 32, 32) -> (N, 1).  Internally NHWC.
    x = jnp.transpose(x_nchw, (0, 2, 3, 1))                                    # (N,32,32,C)
    h = conv2d_leaky(x, params["conv1_w"], params["conv1_b"], cout_pad=128)    # (N,16,16,128); ch 64..127 == 0
    h = conv2d_leaky(h, params["conv2_w"], params["conv2_b"], cout_pad=128)    # (N, 8, 8,128)
    h = conv2d_leaky(h, params["conv3_w"], params["conv3_b"], cout_pad=256)    # (N, 4, 4,256)
    n = h.shape[0]
    feat = h.reshape(n, 4 * 4 * 256)                                           # NHWC (h,w,c) flatten
    # Permute the tiny FC weight from torch's (c,h,w) flatten order to (h,w,c)
    # so the big activation never needs a transpose before x.view(-1, 4096).
    w_fc = (params["fc_w"].reshape(256, 4, 4).transpose(1, 2, 0)
            .reshape(1, 4096).astype(jnp.float32))
    return fc_dot(feat, w_fc, params["fc_b"])                                  # (N,1) f32


if __name__ == "__main__":
    key = jax.random.PRNGKey(0)
    k_param, k_x = jax.random.split(key)

    n_channel = 1   # MNIST
    batch = 2
    # The fc layer's 4096 = 256 * 4 * 4 implies a 32x32 spatial input.
    x = jax.random.normal(k_x, (batch, n_channel, 32, 32), dtype=jnp.float32)

    params = init_params(k_param, n_channel)

    fwd = jax.jit(discriminator_mnist_forward)
    y = jax.block_until_ready(fwd(params, x))
    assert y.shape == (batch, 1)
    assert y.dtype == jnp.float32
    print("KERNEL_OK")
</pallas_src>

<mosaic_0001>
module attributes {stable_mosaic.version = 11 : i64} {
  func.func @_matmul_bias_act_kernel(%arg0: i32, %arg1: i32, %arg2: memref<512x128xbf16, #tpu.memory_space<vmem>>, %arg3: memref<128x128xbf16, #tpu.memory_space<vmem>>, %arg4: memref<1x128xf32, #tpu.memory_space<vmem>>, %arg5: memref<512x128xbf16, #tpu.memory_space<vmem>>, %arg6: memref<512x128xf32, #tpu.memory_space<vmem>>) attributes {dimension_semantics = [#tpu.dimension_semantics<parallel>, #tpu.dimension_semantics<arbitrary>], iteration_bounds = array<i64: 1, 1>, scalar_prefetch = 0 : i64, scratch_operands = 1 : i64, tpu.core_type = #tpu.core_type<tc>, window_params = [{transform_indices = @transform_0, window_bounds = array<i64: 512, 128>}, {transform_indices = @transform_1, window_bounds = array<i64: 128, 128>}, {pipeline_mode = #tpu.pipeline_mode<synchronous>, transform_indices = @transform_2, window_bounds = array<i64: 1, 128>}, {transform_indices = @transform_3, window_bounds = array<i64: 512, 128>}]} {
    %c0_i32 = arith.constant 0 : i32
    %0 = arith.cmpi eq, %arg1, %c0_i32 : i32
    %1 = arith.extui %0 : i1 to i32
    %c0_i32_0 = arith.constant 0 : i32
    %2 = arith.cmpi ne, %1, %c0_i32_0 : i32
    scf.if %2 {
      %cst_10 = arith.constant 0.000000e+00 : f32
      %12 = vector.broadcast %cst_10 : f32 to vector<512x128xf32>
      %c0_11 = arith.constant 0 : index
      %c0_12 = arith.constant 0 : index
      %13 = vector.load %arg6[%c0_11, %c0_12] : memref<512x128xf32, #tpu.memory_space<vmem>>, vector<512x128xf32>
      tpu.vector_store %arg6[%c0_11, %c0_12], %12 {strides = array<i32>} : memref<512x128xf32, #tpu.memory_space<vmem>>, vector<512x128xf32>,
    } else {
    }
    %c0 = arith.constant 0 : index
    %c0_1 = arith.constant 0 : index
    %3 = vector.load %arg6[%c0, %c0_1] : memref<512x128xf32, #tpu.memory_space<vmem>>, vector<512x128xf32>
    %c0_2 = arith.constant 0 : index
    %c0_3 = arith.constant 0 : index
    %4 = vector.load %arg2[%c0_2, %c0_3] : memref<512x128xbf16, #tpu.memory_space<vmem>>, vector<512x128xbf16>
    %c0_4 = arith.constant 0 : index
    %c0_5 = arith.constant 0 : index
    %5 = vector.load %arg3[%c0_4, %c0_5] : memref<128x128xbf16, #tpu.memory_space<vmem>>, vector<128x128xbf16>
    %cst = arith.constant dense<0.000000e+00> : vector<512x128xf32>
    %6 = tpu.matmul %4, %5, %cst {dimension_numbers = #tpu.dot_dimension_numbers<[1], [0], [0], [1], [0, 0, 1, 1], [], []>} : vector<512x128xbf16>, vector<128x128xbf16>, vector<512x128xf32> -> vector<512x128xf32>
    %7 = arith.addf %3, %6 : vector<512x128xf32>
    %c0_6 = arith.constant 0 : index
    %c0_7 = arith.constant 0 : index
    %8 = vector.load %arg6[%c0_6, %c0_7] : memref<512x128xf32, #tpu.memory_space<vmem>>, vector<512x128xf32>
    tpu.vector_store %arg6[%c0_6, %c0_7], %7 {strides = array<i32>} : memref<512x128xf32, #tpu.memory_space<vmem>>, vector<512x128xf32>,
    %c0_i32_8 = arith.constant 0 : i32
    %9 = arith.cmpi eq, %arg1, %c0_i32_8 : i32
    %10 = arith.extui %9 : i1 to i32
    %c0_i32_9 = arith.constant 0 : i32
    %11 = arith.cmpi ne, %10, %c0_i32_9 : i32
    scf.if %11 {
      %c0_10 = arith.constant 0 : index
      %c0_11 = arith.constant 0 : index
      %12 = vector.load %arg6[%c0_10, %c0_11] : memref<512x128xf32, #tpu.memory_space<vmem>>, vector<512x128xf32>
      %c0_12 = arith.constant 0 : index
      %c0_13 = arith.constant 0 : index
      %13 = vector.load %arg4[%c0_12, %c0_13] : memref<1x128xf32, #tpu.memory_space<vmem>>, vector<1x128xf32>
      %14 = vector.broadcast %13 : vector<1x128xf32> to vector<512x128xf32>
      %15 = arith.addf %12, %14 : vector<512x128xf32>
      %cst_14 = arith.constant 0.000000e+00 : f32
      %16 = vector.broadcast %cst_14 : f32 to vector<512x128xf32>
      %17 = arith.cmpf ogt, %15, %16 : vector<512x128xf32>
      %cst_15 = arith.constant 0.00999999977 : f32
      %18 = vector.broadcast %cst_15 : f32 to vector<512x128xf32>
      %19 = arith.mulf %18, %15 : vector<512x128xf32>
      %20 = arith.select %17, %15, %19 : vector<512x128xi1>, vector<512x128xf32>
      %21 = arith.truncf %20 : vector<512x128xf32> to vector<512x128xbf16>
      %c0_16 = arith.constant 0 : index
      %c0_17 = arith.constant 0 : index
      %22 = vector.load %arg5[%c0_16, %c0_17] : memref<512x128xbf16, #tpu.memory_space<vmem>>, vector<512x128xbf16>
      tpu.vector_store %arg5[%c0_16, %c0_17], %21 {strides = array<i32>} : memref<512x128xbf16, #tpu.memory_space<vmem>>, vector<512x128xbf16>,
    } else {
    }
    return
  }
  func.func @transform_0(%arg0: i32, %arg1: i32) -> (i32, i32) {
    %c0_i32 = arith.constant 0 : i32
    return %arg0, %arg1 : i32, i32
  }
  func.func @transform_1(%arg0: i32, %arg1: i32) -> (i32, i32) {
    %c0_i32 = arith.constant 0 : i32
    %c0_i32_0 = arith.constant 0 : i32
    return %arg1, %c0_i32 : i32, i32
  }
  func.func @transform_2(%arg0: i32, %arg1: i32) -> (i32, i32) {
    %c0_i32 = arith.constant 0 : i32
    %c0_i32_0 = arith.constant 0 : i32
    %c0_i32_1 = arith.constant 0 : i32
    return %c0_i32, %c0_i32_0 : i32, i32
  }
  func.func @transform_3(%arg0: i32, %arg1: i32) -> (i32, i32) {
    %c0_i32 = arith.constant 0 : i32
    %c0_i32_0 = arith.constant 0 : i32
    return %arg0, %c0_i32 : i32, i32
  }
}

module attributes {stable_mosaic.version = 11 : i64} {
  func.func @_matmul_bias_act_kernel(%arg0: i32, %arg1: i32, %arg2: memref<128x640xbf16, #tpu.memory_space<vmem>>, %arg3: memref<640x128xbf16, #tpu.memory_space<vmem>>, %arg4: memref<1x128xf32, #tpu.memory_space<vmem>>, %arg5: memref<128x128xbf16, #tpu.memory_space<vmem>>, %arg6: memref<128x128xf32, #tpu.memory_space<vmem>>) attributes {dimension_semantics = [#tpu.dimension_semantics<parallel>, #tpu.dimension_semantics<arbitrary>], iteration_bounds = array<i64: 1, 5>, scalar_prefetch = 0 : i64, scratch_operands = 1 : i64, tpu.core_type = #tpu.core_type<tc>, window_params = [{transform_indices = @transform_0, window_bounds = array<i64: 128, 640>}, {transform_indices = @transform_1, window_bounds = array<i64: 640, 128>}, {pipeline_mode = #tpu.pipeline_mode<synchronous>, transform_indices = @transform_2, window_bounds = array<i64: 1, 128>}, {transform_indices = @transform_3, window_bounds = array<i64: 128, 128>}]} {
    %c0_i32 = arith.constant 0 : i32
    %0 = arith.cmpi eq, %arg1, %c0_i32 : i32
    %1 = arith.extui %0 : i1 to i32
    %c0_i32_0 = arith.constant 0 : i32
    %2 = arith.cmpi ne, %1, %c0_i32_0 : i32
    scf.if %2 {
      %cst_9 = arith.constant 0.000000e+00 : f32
      %12 = vector.broadcast %cst_9 : f32 to vector<128x128xf32>
      %c0_10 = arith.constant 0 : index
      %c0_11 = arith.constant 0 : index
      %13 = vector.load %arg6[%c0_10, %c0_11] : memref<128x128xf32, #tpu.memory_space<vmem>>, vector<128x128xf32>
      tpu.vector_store %arg6[%c0_10, %c0_11], %12 {strides = array<i32>} : memref<128x128xf32, #tpu.memory_space<vmem>>, vector<128x128xf32>,
    } else {
    }
    %c0 = arith.constant 0 : index
    %c0_1 = arith.constant 0 : index
    %3 = vector.load %arg6[%c0, %c0_1] : memref<128x128xf32, #tpu.memory_space<vmem>>, vector<128x128xf32>
    %c0_2 = arith.constant 0 : index
    %c0_3 = arith.constant 0 : index
    %4 = vector.load %arg2[%c0_2, %c0_3] : memref<128x640xbf16, #tpu.memory_space<vmem>>, vector<128x640xbf16>
    %c0_4 = arith.constant 0 : index
    %c0_5 = arith.constant 0 : index
    %5 = vector.load %arg3[%c0_4, %c0_5] : memref<640x128xbf16, #tpu.memory_space<vmem>>, vector<640x128xbf16>
    %cst = arith.constant dense<0.000000e+00> : vector<128x128xf32>
    %6 = tpu.matmul %4, %5, %cst {dimension_numbers = #tpu.dot_dimension_numbers<[1], [0], [0], [1], [0, 0, 1, 1], [], []>} : vector<128x640xbf16>, vector<640x128xbf16>, vector<128x128xf32> -> vector<128x128xf32>
    %7 = arith.addf %3, %6 : vector<128x128xf32>
    %c0_6 = arith.constant 0 : index
    %c0_7 = arith.constant 0 : index
    %8 = vector.load %arg6[%c0_6, %c0_7] : memref<128x128xf32, #tpu.memory_space<vmem>>, vector<128x128xf32>
    tpu.vector_store %arg6[%c0_6, %c0_7], %7 {strides = array<i32>} : memref<128x128xf32, #tpu.memory_space<vmem>>, vector<128x128xf32>,
    %c4_i32 = arith.constant 4 : i32
    %9 = arith.cmpi eq, %arg1, %c4_i32 : i32
    %10 = arith.extui %9 : i1 to i32
    %c0_i32_8 = arith.constant 0 : i32
    %11 = arith.cmpi ne, %10, %c0_i32_8 : i32
    scf.if %11 {
      %c0_9 = arith.constant 0 : index
      %c0_10 = arith.constant 0 : index
      %12 = vector.load %arg6[%c0_9, %c0_10] : memref<128x128xf32, #tpu.memory_space<vmem>>, vector<128x128xf32>
      %c0_11 = arith.constant 0 : index
      %c0_12 = arith.constant 0 : index
      %13 = vector.load %arg4[%c0_11, %c0_12] : memref<1x128xf32, #tpu.memory_space<vmem>>, vector<1x128xf32>
      %14 = vector.broadcast %13 : vector<1x128xf32> to vector<128x128xf32>
      %15 = arith.addf %12, %14 : vector<128x128xf32>
      %cst_13 = arith.constant 0.000000e+00 : f32
      %16 = vector.broadcast %cst_13 : f32 to vector<128x128xf32>
      %17 = arith.cmpf ogt, %15, %16 : vector<128x128xf32>
      %cst_14 = arith.constant 0.00999999977 : f32
      %18 = vector.broadcast %cst_14 : f32 to vector<128x128xf32>
      %19 = arith.mulf %18, %15 : vector<128x128xf32>
      %20 = arith.select %17, %15, %19 : vector<128x128xi1>, vector<128x128xf32>
      %21 = arith.truncf %20 : vector<128x128xf32> to vector<128x128xbf16>
      %c0_15 = arith.constant 0 : index
      %c0_16 = arith.constant 0 : index
      %22 = vector.load %arg5[%c0_15, %c0_16] : memref<128x128xbf16, #tpu.memory_space<vmem>>, vector<128x128xbf16>
      tpu.vector_store %arg5[%c0_15, %c0_16], %21 {strides = array<i32>} : memref<128x128xbf16, #tpu.memory_space<vmem>>, vector<128x128xbf16>,
    } else {
    }
    return
  }
  func.func @transform_0(%arg0: i32, %arg1: i32) -> (i32, i32) {
    %c0_i32 = arith.constant 0 : i32
    return %arg0, %arg1 : i32, i32
  }
  func.func @transform_1(%arg0: i32, %arg1: i32) -> (i32, i32) {
    %c0_i32 = arith.constant 0 : i32
    %c0_i32_0 = arith.constant 0 : i32
    return %arg1, %c0_i32 : i32, i32
  }
  func.func @transform_2(%arg0: i32, %arg1: i32) -> (i32, i32) {
    %c0_i32 = arith.constant 0 : i32
    %c0_i32_0 = arith.constant 0 : i32
    %c0_i32_1 = arith.constant 0 : i32
    return %c0_i32, %c0_i32_0 : i32, i32
  }
  func.func @transform_3(%arg0: i32, %arg1: i32) -> (i32, i32) {
    %c0_i32 = arith.constant 0 : i32
    %c0_i32_0 = arith.constant 0 : i32
    return %arg0, %c0_i32 : i32, i32
  }
}

module attributes {stable_mosaic.version = 11 : i64} {
  func.func @_matmul_bias_act_kernel(%arg0: i32, %arg1: i32, %arg2: memref<32x640xbf16, #tpu.memory_space<vmem>>, %arg3: memref<640x256xbf16, #tpu.memory_space<vmem>>, %arg4: memref<1x256xf32, #tpu.memory_space<vmem>>, %arg5: memref<32x256xbf16, #tpu.memory_space<vmem>>, %arg6: memref<32x256xf32, #tpu.memory_space<vmem>>) attributes {dimension_semantics = [#tpu.dimension_semantics<parallel>, #tpu.dimension_semantics<arbitrary>], iteration_bounds = array<i64: 1, 5>, scalar_prefetch = 0 : i64, scratch_operands = 1 : i64, tpu.core_type = #tpu.core_type<tc>, window_params = [{transform_indices = @transform_0, window_bounds = array<i64: 32, 640>}, {transform_indices = @transform_1, window_bounds = array<i64: 640, 256>}, {pipeline_mode = #tpu.pipeline_mode<synchronous>, transform_indices = @transform_2, window_bounds = array<i64: 1, 256>}, {transform_indices = @transform_3, window_bounds = array<i64: 32, 256>}]} {
    %c0_i32 = arith.constant 0 : i32
    %0 = arith.cmpi eq, %arg1, %c0_i32 : i32
    %1 = arith.extui %0 : i1 to i32
    %c0_i32_0 = arith.constant 0 : i32
    %2 = arith.cmpi ne, %1, %c0_i32_0 : i32
    scf.if %2 {
      %cst_9 = arith.constant 0.000000e+00 : f32
      %12 = vector.broadcast %cst_9 : f32 to vector<32x256xf32>
      %c0_10 = arith.constant 0 : index
      %c0_11 = arith.constant 0 : index
      %13 = vector.load %arg6[%c0_10, %c0_11] : memref<32x256xf32, #tpu.memory_space<vmem>>, vector<32x256xf32>
      tpu.vector_store %arg6[%c0_10, %c0_11], %12 {strides = array<i32>} : memref<32x256xf32, #tpu.memory_space<vmem>>, vector<32x256xf32>,
    } else {
    }
    %c0 = arith.constant 0 : index
    %c0_1 = arith.constant 0 : index
    %3 = vector.load %arg6[%c0, %c0_1] : memref<32x256xf32, #tpu.memory_space<vmem>>, vector<32x256xf32>
    %c0_2 = arith.constant 0 : index
    %c0_3 = arith.constant 0 : index
    %4 = vector.load %arg2[%c0_2, %c0_3] : memref<32x640xbf16, #tpu.memory_space<vmem>>, vector<32x640xbf16>
    %c0_4 = arith.constant 0 : index
    %c0_5 = arith.constant 0 : index
    %5 = vector.load %arg3[%c0_4, %c0_5] : memref<640x256xbf16, #tpu.memory_space<vmem>>, vector<640x256xbf16>
    %cst = arith.constant dense<0.000000e+00> : vector<32x256xf32>
    %6 = tpu.matmul %4, %5, %cst {dimension_numbers = #tpu.dot_dimension_numbers<[1], [0], [0], [1], [0, 0, 1, 1], [], []>} : vector<32x640xbf16>, vector<640x256xbf16>, vector<32x256xf32> -> vector<32x256xf32>
    %7 = arith.addf %3, %6 : vector<32x256xf32>
    %c0_6 = arith.constant 0 : index
    %c0_7 = arith.constant 0 : index
    %8 = vector.load %arg6[%c0_6, %c0_7] : memref<32x256xf32, #tpu.memory_space<vmem>>, vector<32x256xf32>
    tpu.vector_store %arg6[%c0_6, %c0_7], %7 {strides = array<i32>} : memref<32x256xf32, #tpu.memory_space<vmem>>, vector<32x256xf32>,
    %c4_i32 = arith.constant 4 : i32
    %9 = arith.cmpi eq, %arg1, %c4_i32 : i32
    %10 = arith.extui %9 : i1 to i32
    %c0_i32_8 = arith.constant 0 : i32
    %11 = arith.cmpi ne, %10, %c0_i32_8 : i32
    scf.if %11 {
      %c0_9 = arith.constant 0 : index
      %c0_10 = arith.constant 0 : index
      %12 = vector.load %arg6[%c0_9, %c0_10] : memref<32x256xf32, #tpu.memory_space<vmem>>, vector<32x256xf32>
      %c0_11 = arith.constant 0 : index
      %c0_12 = arith.constant 0 : index
      %13 = vector.load %arg4[%c0_11, %c0_12] : memref<1x256xf32, #tpu.memory_space<vmem>>, vector<1x256xf32>
      %14 = vector.broadcast %13 : vector<1x256xf32> to vector<32x256xf32>
      %15 = arith.addf %12, %14 : vector<32x256xf32>
      %cst_13 = arith.constant 0.000000e+00 : f32
      %16 = vector.broadcast %cst_13 : f32 to vector<32x256xf32>
      %17 = arith.cmpf ogt, %15, %16 : vector<32x256xf32>
      %cst_14 = arith.constant 0.00999999977 : f32
      %18 = vector.broadcast %cst_14 : f32 to vector<32x256xf32>
      %19 = arith.mulf %18, %15 : vector<32x256xf32>
      %20 = arith.select %17, %15, %19 : vector<32x256xi1>, vector<32x256xf32>
      %21 = arith.truncf %20 : vector<32x256xf32> to vector<32x256xbf16>
      %c0_15 = arith.constant 0 : index
      %c0_16 = arith.constant 0 : index
      %22 = vector.load %arg5[%c0_15, %c0_16] : memref<32x256xbf16, #tpu.memory_space<vmem>>, vector<32x256xbf16>
      tpu.vector_store %arg5[%c0_15, %c0_16], %21 {strides = array<i32>} : memref<32x256xbf16, #tpu.memory_space<vmem>>, vector<32x256xbf16>,
    } else {
    }
    return
  }
  func.func @transform_0(%arg0: i32, %arg1: i32) -> (i32, i32) {
    %c0_i32 = arith.constant 0 : i32
    return %arg0, %arg1 : i32, i32
  }
  func.func @transform_1(%arg0: i32, %arg1: i32) -> (i32, i32) {
    %c0_i32 = arith.constant 0 : i32
    %c0_i32_0 = arith.constant 0 : i32
    return %arg1, %c0_i32 : i32, i32
  }
  func.func @transform_2(%arg0: i32, %arg1: i32) -> (i32, i32) {
    %c0_i32 = arith.constant 0 : i32
    %c0_i32_0 = arith.constant 0 : i32
    %c0_i32_1 = arith.constant 0 : i32
    return %c0_i32, %c0_i32_0 : i32, i32
  }
  func.func @transform_3(%arg0: i32, %arg1: i32) -> (i32, i32) {
    %c0_i32 = arith.constant 0 : i32
    %c0_i32_0 = arith.constant 0 : i32
    return %arg0, %c0_i32 : i32, i32
  }
}

module attributes {stable_mosaic.version = 11 : i64} {
  func.func @_fc_kernel(%arg0: memref<2x4096xbf16, #tpu.memory_space<vmem>>, %arg1: memref<1x4096xf32, #tpu.memory_space<vmem>>, %arg2: memref<1x1xf32, #tpu.memory_space<vmem>>, %arg3: memref<2x1xf32, #tpu.memory_space<vmem>>) attributes {dimension_semantics = [], scalar_prefetch = 0 : i64, scratch_operands = 0 : i64, tpu.core_type = #tpu.core_type<tc>} {
    %c0 = arith.constant 0 : index
    %c0_0 = arith.constant 0 : index
    %0 = vector.load %arg0[%c0, %c0_0] : memref<2x4096xbf16, #tpu.memory_space<vmem>>, vector<2x4096xbf16>
    %1 = arith.extf %0 : vector<2x4096xbf16> to vector<2x4096xf32>
    %c0_1 = arith.constant 0 : index
    %c0_2 = arith.constant 0 : index
    %2 = vector.load %arg1[%c0_1, %c0_2] : memref<1x4096xf32, #tpu.memory_space<vmem>>, vector<1x4096xf32>
    %3 = vector.broadcast %2 : vector<1x4096xf32> to vector<2x4096xf32>
    %4 = arith.mulf %1, %3 : vector<2x4096xf32>
    %cst = arith.constant dense<0.000000e+00> : vector<2xf32>
    %5 = vector.multi_reduction <add>, %4, %cst [1] : vector<2x4096xf32> to vector<2xf32>
    %6 = vector.shape_cast %5 : vector<2xf32> to vector<2x1xf32>
    %c0_3 = arith.constant 0 : index
    %c0_4 = arith.constant 0 : index
    %7 = vector.load %arg2[%c0_3, %c0_4] : memref<1x1xf32, #tpu.memory_space<vmem>>, vector<1x1xf32>
    %8 = vector.broadcast %7 : vector<1x1xf32> to vector<2x1xf32>
    %9 = arith.addf %6, %8 : vector<2x1xf32>
    %c0_5 = arith.constant 0 : index
    %c0_6 = arith.constant 0 : index
    %10 = vector.load %arg3[%c0_5, %c0_6] : memref<2x1xf32, #tpu.memory_space<vmem>>, vector<2x1xf32>
    tpu.vector_store %arg3[%c0_5, %c0_6], %9 {strides = array<i32>} : memref<2x1xf32, #tpu.memory_space<vmem>>, vector<2x1xf32>,
    return
  }
}

</mosaic_0001>

<bundles_post_ra>
// kernel: discriminator_mnist_forward.4
= control target key start
LH: loop header
LB: loop body
LE: loop exit
PB: predicated region body
PF: predicated region fallthrough
CT: control target
= control target key end

     0   :  { %s1943_s1 = inlined_call_operand.vmem [shape: bf16[128,128], index: 1, kind: input, shape index: {}]   ;;  %s1944_s2 = inlined_call_operand.vmem [shape: f32[1,128], index: 2, kind: input, shape index: {}]   ;;  %s1945_s0 = inlined_call_operand.vmem [shape: bf16[512,128], index: 0, kind: input, shape index: {}]   ;;  %s1946_s3 = inlined_call_operand.vmem [shape: bf16[512,128], index: 3, kind: output, shape index: {}]  }
   0x1   :  { %v1421_v0 = vld [vmem:[%s1943_s1 + $0x38] sm:$0xff]  ;;  %v1420_v1 = vld [vmem:[%s1943_s1 + $0x30] sm:$0xff]  ;;  %v1419_v2 = vld [vmem:[%s1943_s1 + $0x28] sm:$0xff] }
   0x2   :  { %466 = vmatpush.bf16.msra.mxu0 %v1421_v0  ;;  %1613 = vmatpush.bf16.msra.mxu1 %v1421_v0  ;;  %v1418_v3 = vld [vmem:[%s1943_s1 + $0x20] sm:$0xff]  ;;  %v1417_v4 = vld [vmem:[%s1943_s1 + $0x18] sm:$0xff]  ;;  %v1416_v5 = vld [vmem:[%s1943_s1 + $0x10] sm:$0xff] }
   0x3   :  { %1614 = vmatpush.bf16.msra.mxu2 %v1421_v0  ;;  %1615 = vmatpush.bf16.msra.mxu3 %v1421_v0  ;;  %v1415_v6 = vld [vmem:[%s1943_s1 + $0x8] sm:$0xff]  ;;  %v1414_v7 = vld [vmem:[%s1943_s1] sm:$0xff]  ;;  %v1384_v16 = vld [vmem:[%s1945_s0 + $0x10] sm:$0xff] }
   0x4   :  { %v1382_v8 = vld [vmem:[%s1945_s0] sm:$0xff]  ;;  %v1383_v12 = vld [vmem:[%s1945_s0 + $0x8] sm:$0xff]  ;;  %v1392_v17 = vld [vmem:[%s1945_s0 + $0x50] sm:$0xff] }
   0x5   :  { %v1390_v9 = vld [vmem:[%s1945_s0 + $0x40] sm:$0xff]  ;;  %v1391_v13 = vld [vmem:[%s1945_s0 + $0x48] sm:$0xff]  ;;  %v1400_v18 = vld [vmem:[%s1945_s0 + $0x90] sm:$0xff] }
   0x6   :  { %467 = vmatpush.bf16.msra.mxu0 %v1420_v1  ;;  %1616 = vmatpush.bf16.msra.mxu1 %v1420_v1  ;;  %v1398_v10 = vld [vmem:[%s1945_s0 + $0x80] sm:$0xff]  ;;  %v1399_v14 = vld [vmem:[%s1945_s0 + $0x88] sm:$0xff]  ;;  %v1408_v19 = vld [vmem:[%s1945_s0 + $0xd0] sm:$0xff] }
   0x7   :  { %1617 = vmatpush.bf16.msra.mxu2 %v1420_v1  ;;  %1618 = vmatpush.bf16.msra.mxu3 %v1420_v1  ;;  %v1406_v11 = vld [vmem:[%s1945_s0 + $0xc0] sm:$0xff]  ;;  %v1407_v15 = vld [vmem:[%s1945_s0 + $0xc8] sm:$0xff]  ;;  %v1385_v20 = vld [vmem:[%s1945_s0 + $0x18] sm:$0xff] }
   0x8   :  { %v1393_v21 = vld [vmem:[%s1945_s0 + $0x58] sm:$0xff]  ;;  %v1386_v24 = vld [vmem:[%s1945_s0 + $0x20] sm:$0xff]  ;;  %v1387_v28 = vld [vmem:[%s1945_s0 + $0x28] sm:$0xff] }
   0x9   :  { %v1401_v22 = vld [vmem:[%s1945_s0 + $0x98] sm:$0xff]  ;;  %v1394_v25 = vld [vmem:[%s1945_s0 + $0x60] sm:$0xff]  ;;  %v1395_v29 = vld [vmem:[%s1945_s0 + $0x68] sm:$0xff] }
   0xa   :  { %468 = vmatpush.bf16.msra.mxu0 %v1419_v2  ;;  %1619 = vmatpush.bf16.msra.mxu1 %v1419_v2  ;;  %v1409_v23 = vld [vmem:[%s1945_s0 + $0xd8] sm:$0xff]  ;;  %v1402_v26 = vld [vmem:[%s1945_s0 + $0xa0] sm:$0xff]  ;;  %v1403_v30 = vld [vmem:[%s1945_s0 + $0xa8] sm:$0xff] }
   0xb   :  { %1620 = vmatpush.bf16.msra.mxu2 %v1419_v2  ;;  %1621 = vmatpush.bf16.msra.mxu3 %v1419_v2  ;;  %v1410_v27 = vld [vmem:[%s1945_s0 + $0xe0] sm:$0xff]  ;;  %v1411_v31 = vld [vmem:[%s1945_s0 + $0xe8] sm:$0xff]  ;;  %v1388_v32 = vld [vmem:[%s1945_s0 + $0x30] sm:$0xff] }
   0xc   :  { %v1396_v33 = vld [vmem:[%s1945_s0 + $0x70] sm:$0xff]  ;;  %v1389_v36 = vld [vmem:[%s1945_s0 + $0x38] sm:$0xff]  ;;  %v1781_v42 = vld [vmem:[%s1944_s2] ss:$0 sm:$0xff] }
   0xd   :  { %v1404_v34 = vld [vmem:[%s1945_s0 + $0xb0] sm:$0xff]  ;;  %v1397_v37 = vld [vmem:[%s1945_s0 + $0x78] sm:$0xff] }
   0xe   :  { %469 = vmatpush.bf16.msra.mxu0 %v1418_v3  ;;  %1622 = vmatpush.bf16.msra.mxu1 %v1418_v3  ;;  %v1412_v35 = vld [vmem:[%s1945_s0 + $0xf0] sm:$0xff]  ;;  %v1405_v38 = vld [vmem:[%s1945_s0 + $0xb8] sm:$0xff] }
   0xf   :  { %1623 = vmatpush.bf16.msra.mxu2 %v1418_v3  ;;  %1624 = vmatpush.bf16.msra.mxu3 %v1418_v3  ;;  %v1413_v39 = vld [vmem:[%s1945_s0 + $0xf8] sm:$0xff] }
  0x12   :  { %470 = vmatpush.bf16.msra.mxu0 %v1417_v4  ;;  %1625 = vmatpush.bf16.msra.mxu1 %v1417_v4 }
  0x13   :  { %1626 = vmatpush.bf16.msra.mxu2 %v1417_v4  ;;  %1627 = vmatpush.bf16.msra.mxu3 %v1417_v4 }
  0x16   :  { %471 = vmatpush.bf16.msra.mxu0 %v1416_v5  ;;  %1628 = vmatpush.bf16.msra.mxu1 %v1416_v5 }
  0x17   :  { %1629 = vmatpush.bf16.msra.mxu2 %v1416_v5  ;;  %1630 = vmatpush.bf16.msra.mxu3 %v1416_v5 }
  0x1a   :  { %472 = vmatpush.bf16.msra.mxu0 %v1415_v6  ;;  %1631 = vmatpush.bf16.msra.mxu1 %v1415_v6 }
  0x1b   :  { %1632 = vmatpush.bf16.msra.mxu2 %v1415_v6  ;;  %1633 = vmatpush.bf16.msra.mxu3 %v1415_v6 }
  0x1e   :  { %473 = vmatpush.bf16.msra.mxu0 %v1414_v7  ;;  %1634 = vmatpush.bf16.msra.mxu1 %v1414_v7 }
  0x1f   :  { %1635 = vmatpush.bf16.msra.mxu2 %v1414_v7  ;;  %1636 = vmatpush.bf16.msra.mxu3 %v1414_v7 }
  0x21   :  { %474 = vmatmul.bf16.vlgmr.msra.gmra.mxu0 %v1382_v8  ;;  %514 = vmatmul.bf16.vlgmr.msra.gmra.mxu1 %v1390_v9 }
  0x22   :  { %554 = vmatmul.bf16.vlgmr.msra.gmra.mxu2 %v1398_v10  ;;  %594 = vmatmul.bf16.vlgmr.msra.gmra.mxu3 %v1406_v11 }
  0x31   :  { %479 = vmatmul.bf16.gmra.mxu0 %v1383_v12  ;;  %519 = vmatmul.bf16.gmra.mxu1 %v1391_v13 }
  0x32   :  { %559 = vmatmul.bf16.gmra.mxu2 %v1399_v14  ;;  %599 = vmatmul.bf16.gmra.mxu3 %v1407_v15 }
  0x41   :  { %484 = vmatmul.bf16.gmra.mxu0 %v1384_v16  ;;  %524 = vmatmul.bf16.gmra.mxu1 %v1392_v17 }
  0x42   :  { %564 = vmatmul.bf16.gmra.mxu2 %v1400_v18  ;;  %604 = vmatmul.bf16.gmra.mxu3 %v1408_v19 }
  0x51   :  { %489 = vmatmul.bf16.gmra.mxu0 %v1385_v20  ;;  %529 = vmatmul.bf16.gmra.mxu1 %v1393_v21 }
  0x52   :  { %569 = vmatmul.bf16.gmra.mxu2 %v1401_v22  ;;  %609 = vmatmul.bf16.gmra.mxu3 %v1409_v23 }
  0x61   :  { %494 = vmatmul.bf16.gmra.mxu0 %v1386_v24  ;;  %534 = vmatmul.bf16.gmra.mxu1 %v1394_v25 }
  0x62   :  { %574 = vmatmul.bf16.gmra.mxu2 %v1402_v26  ;;  %614 = vmatmul.bf16.gmra.mxu3 %v1410_v27 }
  0x71   :  { %499 = vmatmul.bf16.gmra.mxu0 %v1387_v28  ;;  %539 = vmatmul.bf16.gmra.mxu1 %v1395_v29 }
  0x72   :  { %579 = vmatmul.bf16.gmra.mxu2 %v1403_v30  ;;  %619 = vmatmul.bf16.gmra.mxu3 %v1411_v31 }
  0x81   :  { %504 = vmatmul.bf16.gmra.mxu0 %v1388_v32  ;;  %544 = vmatmul.bf16.gmra.mxu1 %v1396_v33 }
  0x82   :  { %584 = vmatmul.bf16.gmra.mxu2 %v1404_v34  ;;  %624 = vmatmul.bf16.gmra.mxu3 %v1412_v35 }
  0x91   :  { %509 = vmatmul.bf16.gmra.mxu0 %v1389_v36  ;;  %549 = vmatmul.bf16.gmra.mxu1 %v1397_v37 }
  0x92   :  { %589 = vmatmul.bf16.gmra.mxu2 %v1405_v38  ;;  %629 = vmatmul.bf16.gmra.mxu3 %v1413_v39 }
  0x9e   :  { %v475_v40 = vpop.f32.mrf.mxu0  ;;  %v515_v41 = vpop.f32.mrf.mxu1 }
  0x9f   :  { %v834_v43 = vadd.f32 %v1781_v42, %v475_v40  ;;  %v850_v44 = vadd.f32 %v1781_v42, %v515_v41 }
  0xa1   :  { %v962_v49 = vmul.f32 0.01, %v834_v43  ;;  %v978_v50 = vmul.f32 0.01, %v850_v44  ;;  %vm898_vm0 = vcmp.gt.f32.partialorder %v834_v43, 0.0  ;;  %vm914_vm1 = vcmp.gt.f32.partialorder %v850_v44, 0.0 }
  0xa3   :  { %v1026_v57 = vsel %vm898_vm0, %v834_v43, %v962_v49  ;;  %v1042_v58 = vsel %vm914_vm1, %v850_v44, %v978_v50 }
  0xa5   :  { %v555_v45 = vpop.f32.mrf.mxu2  ;;  %v595_v46 = vpop.f32.mrf.mxu3 }
  0xa6   :  { %v477_v47 = vpop.f32.mrf.mxu0  ;;  %v517_v48 = vpop.f32.mrf.mxu1  ;;  %v866_v55 = vadd.f32 %v1781_v42, %v555_v45  ;;  %v882_v56 = vadd.f32 %v1781_v42, %v595_v46 }
  0xa7   :  { %v835_v51 = vadd.f32 %v1781_v42, %v477_v47  ;;  %v851_v52 = vadd.f32 %v1781_v42, %v517_v48 }
  0xa8   :  { %v994_v1 = vmul.f32 0.01, %v866_v55  ;;  %v1010_v2 = vmul.f32 0.01, %v882_v56  ;;  %vm930_vm4 = vcmp.gt.f32.partialorder %v866_v55, 0.0  ;;  %vm946_vm5 = vcmp.gt.f32.partialorder %v882_v56, 0.0 }
  0xa9   :  { %vm899_vm2 = vcmp.gt.f32.partialorder %v835_v51, 0.0  ;;  %v963_v53 = vmul.f32 0.01, %v835_v51  ;;  %vm915_vm3 = vcmp.gt.f32.partialorder %v851_v52, 0.0  ;;  %v979_v54 = vmul.f32 0.01, %v851_v52 }
  0xaa   :  { %v1058_v9 = vsel %vm930_vm4, %v866_v55, %v994_v1  ;;  %v1074_v10 = vsel %vm946_vm5, %v882_v56, %v1010_v2 }
  0xab   :  { %v1027_v59 = vsel %vm899_vm2, %v835_v51, %v963_v53  ;;  %v1043_v60 = vsel %vm915_vm3, %v851_v52, %v979_v54 }
  0xac   :  { %v1425_v61 = vpack.c.bf16 %v1027_v59, %v1026_v57  ;;  %v1465_v62 = vpack.c.bf16 %v1043_v60, %v1042_v58 }
  0xad   :  { %v557_v63 = vpop.f32.mrf.mxu2  ;;  %v597_v0 = vpop.f32.mrf.mxu3 }
  0xae   :  { %1426 = vst [vmem:[%s1946_s3] sm:$0xff] %v1425_v61   ;;  %v867_v3 = vadd.f32 %v1781_v42, %v557_v63  ;;  %v883_v4 = vadd.f32 %v1781_v42, %v597_v0  ;;  %v480_v5 = vpop.f32.mrf.mxu0  ;;  %v520_v6 = vpop.f32.mrf.mxu1 }
  0xaf   :  { %1589 = vst [vmem:[%s1946_s3 + $0x40] sm:$0xff] %v1465_v62   ;;  %v836_v15 = vadd.f32 %v1781_v42, %v480_v5  ;;  %v852_v16 = vadd.f32 %v1781_v42, %v520_v6 }
  0xb0   :  { %vm931_vm6 = vcmp.gt.f32.partialorder %v867_v3, 0.0  ;;  %v995_v7 = vmul.f32 0.01, %v867_v3  ;;  %vm947_vm7 = vcmp.gt.f32.partialorder %v883_v4, 0.0  ;;  %v1011_v8 = vmul.f32 0.01, %v883_v4 }
  0xb1   :  { %v964_v21 = vmul.f32 0.01, %v836_v15  ;;  %v980_v22 = vmul.f32 0.01, %v852_v16  ;;  %vm900_vm8 = vcmp.gt.f32.partialorder %v836_v15, 0.0  ;;  %vm916_vm9 = vcmp.gt.f32.partialorder %v852_v16, 0.0 }
  0xb2   :  { %v1059_v11 = vsel %vm931_vm6, %v867_v3, %v995_v7  ;;  %v1075_v12 = vsel %vm947_vm7, %v883_v4, %v1011_v8 }
  0xb3   :  { %v1505_v13 = vpack.c.bf16 %v1059_v11, %v1058_v9  ;;  %v1545_v14 = vpack.c.bf16 %v1075_v12, %v1074_v10  ;;  %v1028_v29 = vsel %vm900_vm8, %v836_v15, %v964_v21  ;;  %v1044_v30 = vsel %vm916_vm9, %v852_v16, %v980_v22 }
  0xb5   :  { %1597 = vst [vmem:[%s1946_s3 + $0x80] sm:$0xff] %v1505_v13   ;;  %v560_v17 = vpop.f32.mrf.mxu2  ;;  %v600_v18 = vpop.f32.mrf.mxu3 }
  0xb6   :  { %1605 = vst [vmem:[%s1946_s3 + $0xc0] sm:$0xff] %v1545_v14   ;;  %v482_v19 = vpop.f32.mrf.mxu0  ;;  %v522_v20 = vpop.f32.mrf.mxu1  ;;  %v868_v27 = vadd.f32 %v1781_v42, %v560_v17  ;;  %v884_v28 = vadd.f32 %v1781_v42, %v600_v18 }
  0xb7   :  { %v837_v23 = vadd.f32 %v1781_v42, %v482_v19  ;;  %v853_v24 = vadd.f32 %v1781_v42, %v522_v20 }
  0xb8   :  { %v996_v37 = vmul.f32 0.01, %v868_v27  ;;  %v1012_v38 = vmul.f32 0.01, %v884_v28  ;;  %vm932_vm12 = vcmp.gt.f32.partialorder %v868_v27, 0.0  ;;  %vm948_vm13 = vcmp.gt.f32.partialorder %v884_v28, 0.0 }
  0xb9   :  { %vm901_vm10 = vcmp.gt.f32.partialorder %v837_v23, 0.0  ;;  %v965_v25 = vmul.f32 0.01, %v837_v23  ;;  %vm917_vm11 = vcmp.gt.f32.partialorder %v853_v24, 0.0  ;;  %v981_v26 = vmul.f32 0.01, %v853_v24 }
  0xba   :  { %v1060_v46 = vsel %vm932_vm12, %v868_v27, %v996_v37  ;;  %v1076_v47 = vsel %vm948_vm13, %v884_v28, %v1012_v38 }
  0xbb   :  { %v1029_v31 = vsel %vm901_vm10, %v837_v23, %v965_v25  ;;  %v1045_v32 = vsel %vm917_vm11, %v853_v24, %v981_v26 }
  0xbc   :  { %v1430_v33 = vpack.c.bf16 %v1029_v31, %v1028_v29  ;;  %v1470_v34 = vpack.c.bf16 %v1045_v32, %v1044_v30 }
  0xbd   :  { %v562_v35 = vpop.f32.mrf.mxu2  ;;  %v602_v36 = vpop.f32.mrf.mxu3 }
  0xbe   :  { %1582 = vst [vmem:[%s1946_s3 + $0x8] sm:$0xff] %v1430_v33   ;;  %v869_v39 = vadd.f32 %v1781_v42, %v562_v35  ;;  %v885_v40 = vadd.f32 %v1781_v42, %v602_v36  ;;  %v485_v41 = vpop.f32.mrf.mxu0  ;;  %v525_v43 = vpop.f32.mrf.mxu1 }
  0xbf   :  { %1590 = vst [vmem:[%s1946_s3 + $0x48] sm:$0xff] %v1470_v34   ;;  %v838_v52 = vadd.f32 %v1781_v42, %v485_v41  ;;  %v854_v53 = vadd.f32 %v1781_v42, %v525_v43 }
  0xc0   :  { %vm933_vm14 = vcmp.gt.f32.partialorder %v869_v39, 0.0  ;;  %v997_v44 = vmul.f32 0.01, %v869_v39  ;;  %vm949_vm15 = vcmp.gt.f32.partialorder %v885_v40, 0.0  ;;  %v1013_v45 = vmul.f32 0.01, %v885_v40 }
  0xc1   :  { %v966_v58 = vmul.f32 0.01, %v838_v52  ;;  %v982_v59 = vmul.f32 0.01, %v854_v53  ;;  %vm902_vm0 = vcmp.gt.f32.partialorder %v838_v52, 0.0  ;;  %vm918_vm1 = vcmp.gt.f32.partialorder %v854_v53, 0.0 }
  0xc2   :  { %v1061_v48 = vsel %vm933_vm14, %v869_v39, %v997_v44  ;;  %v1077_v49 = vsel %vm949_vm15, %v885_v40, %v1013_v45 }
  0xc3   :  { %v1510_v50 = vpack.c.bf16 %v1061_v48, %v1060_v46  ;;  %v1550_v51 = vpack.c.bf16 %v1077_v49, %v1076_v47  ;;  %v1030_v2 = vsel %vm902_vm0, %v838_v52, %v966_v58  ;;  %v1046_v3 = vsel %vm918_vm1, %v854_v53, %v982_v59 }
  0xc5   :  { %1598 = vst [vmem:[%s1946_s3 + $0x88] sm:$0xff] %v1510_v50   ;;  %v565_v54 = vpop.f32.mrf.mxu2  ;;  %v605_v55 = vpop.f32.mrf.mxu3 }
  0xc6   :  { %1606 = vst [vmem:[%s1946_s3 + $0xc8] sm:$0xff] %v1550_v51   ;;  %v487_v56 = vpop.f32.mrf.mxu0  ;;  %v527_v57 = vpop.f32.mrf.mxu1  ;;  %v870_v0 = vadd.f32 %v1781_v42, %v565_v54  ;;  %v886_v1 = vadd.f32 %v1781_v42, %v605_v55 }
  0xc7   :  { %v839_v60 = vadd.f32 %v1781_v42, %v487_v56  ;;  %v855_v61 = vadd.f32 %v1781_v42, %v527_v57 }
  0xc8   :  { %v998_v10 = vmul.f32 0.01, %v870_v0  ;;  %v1014_v11 = vmul.f32 0.01, %v886_v1  ;;  %vm934_vm4 = vcmp.gt.f32.partialorder %v870_v0, 0.0  ;;  %vm950_vm5 = vcmp.gt.f32.partialorder %v886_v1, 0.0 }
  0xc9   :  { %vm903_vm2 = vcmp.gt.f32.partialorder %v839_v60, 0.0  ;;  %v967_v62 = vmul.f32 0.01, %v839_v60  ;;  %vm919_vm3 = vcmp.gt.f32.partialorder %v855_v61, 0.0  ;;  %v983_v63 = vmul.f32 0.01, %v855_v61 }
  0xca   :  { %v1062_v18 = vsel %vm934_vm4, %v870_v0, %v998_v10  ;;  %v1078_v19 = vsel %vm950_vm5, %v886_v1, %v1014_v11 }
  0xcb   :  { %v1031_v4 = vsel %vm903_vm2, %v839_v60, %v967_v62  ;;  %v1047_v5 = vsel %vm919_vm3, %v855_v61, %v983_v63 }
  0xcc   :  { %v1435_v6 = vpack.c.bf16 %v1031_v4, %v1030_v2  ;;  %v1475_v7 = vpack.c.bf16 %v1047_v5, %v1046_v3 }
  0xcd   :  { %v567_v8 = vpop.f32.mrf.mxu2  ;;  %v607_v9 = vpop.f32.mrf.mxu3 }
  0xce   :  { %1583 = vst [vmem:[%s1946_s3 + $0x10] sm:$0xff] %v1435_v6   ;;  %v871_v12 = vadd.f32 %v1781_v42, %v567_v8  ;;  %v887_v13 = vadd.f32 %v1781_v42, %v607_v9  ;;  %v490_v14 = vpop.f32.mrf.mxu0  ;;  %v530_v15 = vpop.f32.mrf.mxu1 }
  0xcf   :  { %1591 = vst [vmem:[%s1946_s3 + $0x50] sm:$0xff] %v1475_v7   ;;  %v840_v24 = vadd.f32 %v1781_v42, %v490_v14  ;;  %v856_v25 = vadd.f32 %v1781_v42, %v530_v15 }
  0xd0   :  { %vm935_vm6 = vcmp.gt.f32.partialorder %v871_v12, 0.0  ;;  %v999_v16 = vmul.f32 0.01, %v871_v12  ;;  %vm951_vm7 = vcmp.gt.f32.partialorder %v887_v13, 0.0  ;;  %v1015_v17 = vmul.f32 0.01, %v887_v13 }
  0xd1   :  { %v968_v30 = vmul.f32 0.01, %v840_v24  ;;  %v984_v31 = vmul.f32 0.01, %v856_v25  ;;  %vm904_vm8 = vcmp.gt.f32.partialorder %v840_v24, 0.0  ;;  %vm920_vm9 = vcmp.gt.f32.partialorder %v856_v25, 0.0 }
  0xd2   :  { %v1063_v20 = vsel %vm935_vm6, %v871_v12, %v999_v16  ;;  %v1079_v21 = vsel %vm951_vm7, %v887_v13, %v1015_v17 }
  0xd3   :  { %v1515_v22 = vpack.c.bf16 %v1063_v20, %v1062_v18  ;;  %v1555_v23 = vpack.c.bf16 %v1079_v21, %v1078_v19  ;;  %v1032_v38 = vsel %vm904_vm8, %v840_v24, %v968_v30  ;;  %v1048_v39 = vsel %vm920_vm9, %v856_v25, %v984_v31 }
  0xd5   :  { %1599 = vst [vmem:[%s1946_s3 + $0x90] sm:$0xff] %v1515_v22   ;;  %v570_v26 = vpop.f32.mrf.mxu2  ;;  %v610_v27 = vpop.f32.mrf.mxu3 }
  0xd6   :  { %1607 = vst [vmem:[%s1946_s3 + $0xd0] sm:$0xff] %v1555_v23   ;;  %v492_v28 = vpop.f32.mrf.mxu0  ;;  %v532_v29 = vpop.f32.mrf.mxu1  ;;  %v872_v36 = vadd.f32 %v1781_v42, %v570_v26  ;;  %v888_v37 = vadd.f32 %v1781_v42, %v610_v27 }
  0xd7   :  { %v841_v32 = vadd.f32 %v1781_v42, %v492_v28  ;;  %v857_v33 = vadd.f32 %v1781_v42, %v532_v29 }
  0xd8   :  { %v1000_v47 = vmul.f32 0.01, %v872_v36  ;;  %v1016_v48 = vmul.f32 0.01, %v888_v37  ;;  %vm936_vm12 = vcmp.gt.f32.partialorder %v872_v36, 0.0  ;;  %vm952_vm13 = vcmp.gt.f32.partialorder %v888_v37, 0.0 }
  0xd9   :  { %vm905_vm10 = vcmp.gt.f32.partialorder %v841_v32, 0.0  ;;  %v969_v34 = vmul.f32 0.01, %v841_v32  ;;  %vm921_vm11 = vcmp.gt.f32.partialorder %v857_v33, 0.0  ;;  %v985_v35 = vmul.f32 0.01, %v857_v33 }
  0xda   :  { %v1064_v55 = vsel %vm936_vm12, %v872_v36, %v1000_v47  ;;  %v1080_v56 = vsel %vm952_vm13, %v888_v37, %v1016_v48 }
  0xdb   :  { %v1033_v40 = vsel %vm905_vm10, %v841_v32, %v969_v34  ;;  %v1049_v41 = vsel %vm921_vm11, %v857_v33, %v985_v35 }
  0xdc   :  { %v1440_v43 = vpack.c.bf16 %v1033_v40, %v1032_v38  ;;  %v1480_v44 = vpack.c.bf16 %v1049_v41, %v1048_v39 }
  0xdd   :  { %v572_v45 = vpop.f32.mrf.mxu2  ;;  %v612_v46 = vpop.f32.mrf.mxu3 }
  0xde   :  { %1584 = vst [vmem:[%s1946_s3 + $0x18] sm:$0xff] %v1440_v43   ;;  %v873_v49 = vadd.f32 %v1781_v42, %v572_v45  ;;  %v889_v50 = vadd.f32 %v1781_v42, %v612_v46  ;;  %v495_v51 = vpop.f32.mrf.mxu0  ;;  %v535_v52 = vpop.f32.mrf.mxu1 }
  0xdf   :  { %1592 = vst [vmem:[%s1946_s3 + $0x58] sm:$0xff] %v1480_v44   ;;  %v842_v61 = vadd.f32 %v1781_v42, %v495_v51  ;;  %v858_v62 = vadd.f32 %v1781_v42, %v535_v52 }
  0xe0   :  { %vm937_vm14 = vcmp.gt.f32.partialorder %v873_v49, 0.0  ;;  %v1001_v53 = vmul.f32 0.01, %v873_v49  ;;  %vm953_vm15 = vcmp.gt.f32.partialorder %v889_v50, 0.0  ;;  %v1017_v54 = vmul.f32 0.01, %v889_v50 }
  0xe1   :  { %v970_v3 = vmul.f32 0.01, %v842_v61  ;;  %v986_v4 = vmul.f32 0.01, %v858_v62  ;;  %vm906_vm0 = vcmp.gt.f32.partialorder %v842_v61, 0.0  ;;  %vm922_vm1 = vcmp.gt.f32.partialorder %v858_v62, 0.0 }
  0xe2   :  { %v1065_v57 = vsel %vm937_vm14, %v873_v49, %v1001_v53  ;;  %v1081_v58 = vsel %vm953_vm15, %v889_v50, %v1017_v54 }
  0xe3   :  { %v1520_v59 = vpack.c.bf16 %v1065_v57, %v1064_v55  ;;  %v1560_v60 = vpack.c.bf16 %v1081_v58, %v1080_v56  ;;  %v1034_v11 = vsel %vm906_vm0, %v842_v61, %v970_v3  ;;  %v1050_v12 = vsel %vm922_vm1, %v858_v62, %v986_v4 }
  0xe5   :  { %1600 = vst [vmem:[%s1946_s3 + $0x98] sm:$0xff] %v1520_v59   ;;  %v575_v63 = vpop.f32.mrf.mxu2  ;;  %v615_v0 = vpop.f32.mrf.mxu3 }
  0xe6   :  { %1608 = vst [vmem:[%s1946_s3 + $0xd8] sm:$0xff] %v1560_v60   ;;  %v497_v1 = vpop.f32.mrf.mxu0  ;;  %v537_v2 = vpop.f32.mrf.mxu1  ;;  %v874_v9 = vadd.f32 %v1781_v42, %v575_v63  ;;  %v890_v10 = vadd.f32 %v1781_v42, %v615_v0 }
  0xe7   :  { %v843_v5 = vadd.f32 %v1781_v42, %v497_v1  ;;  %v859_v6 = vadd.f32 %v1781_v42, %v537_v2 }
  0xe8   :  { %v1002_v19 = vmul.f32 0.01, %v874_v9  ;;  %v1018_v20 = vmul.f32 0.01, %v890_v10  ;;  %vm938_vm4 = vcmp.gt.f32.partialorder %v874_v9, 0.0  ;;  %vm954_vm5 = vcmp.gt.f32.partialorder %v890_v10, 0.0 }
  0xe9   :  { %vm907_vm2 = vcmp.gt.f32.partialorder %v843_v5, 0.0  ;;  %v971_v7 = vmul.f32 0.01, %v843_v5  ;;  %vm923_vm3 = vcmp.gt.f32.partialorder %v859_v6, 0.0  ;;  %v987_v8 = vmul.f32 0.01, %v859_v6 }
  0xea   :  { %v1066_v27 = vsel %vm938_vm4, %v874_v9, %v1002_v19  ;;  %v1082_v28 = vsel %vm954_vm5, %v890_v10, %v1018_v20 }
  0xeb   :  { %v1035_v13 = vsel %vm907_vm2, %v843_v5, %v971_v7  ;;  %v1051_v14 = vsel %vm923_vm3, %v859_v6, %v987_v8 }
  0xec   :  { %v1445_v15 = vpack.c.bf16 %v1035_v13, %v1034_v11  ;;  %v1485_v16 = vpack.c.bf16 %v1051_v14, %v1050_v12 }
  0xed   :  { %v577_v17 = vpop.f32.mrf.mxu2  ;;  %v617_v18 = vpop.f32.mrf.mxu3 }
  0xee   :  { %1585 = vst [vmem:[%s1946_s3 + $0x20] sm:$0xff] %v1445_v15   ;;  %v875_v21 = vadd.f32 %v1781_v42, %v577_v17  ;;  %v891_v22 = vadd.f32 %v1781_v42, %v617_v18  ;;  %v500_v23 = vpop.f32.mrf.mxu0  ;;  %v540_v24 = vpop.f32.mrf.mxu1 }
  0xef   :  { %1593 = vst [vmem:[%s1946_s3 + $0x60] sm:$0xff] %v1485_v16   ;;  %v844_v33 = vadd.f32 %v1781_v42, %v500_v23  ;;  %v860_v34 = vadd.f32 %v1781_v42, %v540_v24 }
  0xf0   :  { %vm939_vm6 = vcmp.gt.f32.partialorder %v875_v21, 0.0  ;;  %v1003_v25 = vmul.f32 0.01, %v875_v21  ;;  %vm955_vm7 = vcmp.gt.f32.partialorder %v891_v22, 0.0  ;;  %v1019_v26 = vmul.f32 0.01, %v891_v22 }
  0xf1   :  { %v972_v39 = vmul.f32 0.01, %v844_v33  ;;  %v988_v40 = vmul.f32 0.01, %v860_v34  ;;  %vm908_vm8 = vcmp.gt.f32.partialorder %v844_v33, 0.0  ;;  %vm924_vm9 = vcmp.gt.f32.partialorder %v860_v34, 0.0 }
  0xf2   :  { %v1067_v29 = vsel %vm939_vm6, %v875_v21, %v1003_v25  ;;  %v1083_v30 = vsel %vm955_vm7, %v891_v22, %v1019_v26 }
  0xf3   :  { %v1525_v31 = vpack.c.bf16 %v1067_v29, %v1066_v27  ;;  %v1565_v32 = vpack.c.bf16 %v1083_v30, %v1082_v28  ;;  %v1036_v48 = vsel %vm908_vm8, %v844_v33, %v972_v39  ;;  %v1052_v49 = vsel %vm924_vm9, %v860_v34, %v988_v40 }
  0xf5   :  { %1601 = vst [vmem:[%s1946_s3 + $0xa0] sm:$0xff] %v1525_v31   ;;  %v580_v35 = vpop.f32.mrf.mxu2  ;;  %v620_v36 = vpop.f32.mrf.mxu3 }
  0xf6   :  { %1609 = vst [vmem:[%s1946_s3 + $0xe0] sm:$0xff] %v1565_v32   ;;  %v502_v37 = vpop.f32.mrf.mxu0  ;;  %v542_v38 = vpop.f32.mrf.mxu1  ;;  %v876_v46 = vadd.f32 %v1781_v42, %v580_v35  ;;  %v892_v47 = vadd.f32 %v1781_v42, %v620_v36 }
  0xf7   :  { %v845_v41 = vadd.f32 %v1781_v42, %v502_v37  ;;  %v861_v43 = vadd.f32 %v1781_v42, %v542_v38 }
  0xf8   :  { %v1004_v56 = vmul.f32 0.01, %v876_v46  ;;  %v1020_v57 = vmul.f32 0.01, %v892_v47  ;;  %vm940_vm12 = vcmp.gt.f32.partialorder %v876_v46, 0.0  ;;  %vm956_vm13 = vcmp.gt.f32.partialorder %v892_v47, 0.0 }
  0xf9   :  { %vm909_vm10 = vcmp.gt.f32.partialorder %v845_v41, 0.0  ;;  %v973_v44 = vmul.f32 0.01, %v845_v41  ;;  %vm925_vm11 = vcmp.gt.f32.partialorder %v861_v43, 0.0  ;;  %v989_v45 = vmul.f32 0.01, %v861_v43 }
  0xfa   :  { %v1068_v0 = vsel %vm940_vm12, %v876_v46, %v1004_v56  ;;  %v1084_v1 = vsel %vm956_vm13, %v892_v47, %v1020_v57 }
  0xfb   :  { %v1037_v50 = vsel %vm909_vm10, %v845_v41, %v973_v44  ;;  %v1053_v51 = vsel %vm925_vm11, %v861_v43, %v989_v45 }
  0xfc   :  { %v1450_v52 = vpack.c.bf16 %v1037_v50, %v1036_v48  ;;  %v1490_v53 = vpack.c.bf16 %v1053_v51, %v1052_v49 }
  0xfd   :  { %v582_v54 = vpop.f32.mrf.mxu2  ;;  %v622_v55 = vpop.f32.mrf.mxu3 }
  0xfe   :  { %1586 = vst [vmem:[%s1946_s3 + $0x28] sm:$0xff] %v1450_v52   ;;  %v877_v58 = vadd.f32 %v1781_v42, %v582_v54  ;;  %v893_v59 = vadd.f32 %v1781_v42, %v622_v55  ;;  %v505_v60 = vpop.f32.mrf.mxu0  ;;  %v545_v61 = vpop.f32.mrf.mxu1 }
  0xff   :  { %1594 = vst [vmem:[%s1946_s3 + $0x68] sm:$0xff] %v1490_v53   ;;  %v846_v6 = vadd.f32 %v1781_v42, %v505_v60  ;;  %v862_v7 = vadd.f32 %v1781_v42, %v545_v61 }
 0x100   :  { %vm941_vm14 = vcmp.gt.f32.partialorder %v877_v58, 0.0  ;;  %v1005_v62 = vmul.f32 0.01, %v877_v58  ;;  %vm957_vm15 = vcmp.gt.f32.partialorder %v893_v59, 0.0  ;;  %v1021_v63 = vmul.f32 0.01, %v893_v59 }
 0x101   :  { %v974_v12 = vmul.f32 0.01, %v846_v6  ;;  %v990_v13 = vmul.f32 0.01, %v862_v7  ;;  %vm910_vm0 = vcmp.gt.f32.partialorder %v846_v6, 0.0  ;;  %vm926_vm1 = vcmp.gt.f32.partialorder %v862_v7, 0.0 }
 0x102   :  { %v1069_v2 = vsel %vm941_vm14, %v877_v58, %v1005_v62  ;;  %v1085_v3 = vsel %vm957_vm15, %v893_v59, %v1021_v63 }
 0x103   :  { %v1530_v4 = vpack.c.bf16 %v1069_v2, %v1068_v0  ;;  %v1570_v5 = vpack.c.bf16 %v1085_v3, %v1084_v1  ;;  %v1038_v20 = vsel %vm910_vm0, %v846_v6, %v974_v12  ;;  %v1054_v21 = vsel %vm926_vm1, %v862_v7, %v990_v13 }
 0x105   :  { %1602 = vst [vmem:[%s1946_s3 + $0xa8] sm:$0xff] %v1530_v4   ;;  %v585_v8 = vpop.f32.mrf.mxu2  ;;  %v625_v9 = vpop.f32.mrf.mxu3 }
 0x106   :  { %1610 = vst [vmem:[%s1946_s3 + $0xe8] sm:$0xff] %v1570_v5   ;;  %v507_v10 = vpop.f32.mrf.mxu0  ;;  %v547_v11 = vpop.f32.mrf.mxu1  ;;  %v878_v18 = vadd.f32 %v1781_v42, %v585_v8  ;;  %v894_v19 = vadd.f32 %v1781_v42, %v625_v9 }
 0x107   :  { %v847_v14 = vadd.f32 %v1781_v42, %v507_v10  ;;  %v863_v15 = vadd.f32 %v1781_v42, %v547_v11 }
 0x108   :  { %v1006_v28 = vmul.f32 0.01, %v878_v18  ;;  %v1022_v29 = vmul.f32 0.01, %v894_v19  ;;  %vm942_vm4 = vcmp.gt.f32.partialorder %v878_v18, 0.0  ;;  %vm958_vm5 = vcmp.gt.f32.partialorder %v894_v19, 0.0 }
 0x109   :  { %vm911_vm2 = vcmp.gt.f32.partialorder %v847_v14, 0.0  ;;  %v975_v16 = vmul.f32 0.01, %v847_v14  ;;  %vm927_vm3 = vcmp.gt.f32.partialorder %v863_v15, 0.0  ;;  %v991_v17 = vmul.f32 0.01, %v863_v15 }
 0x10a   :  { %v1070_v36 = vsel %vm942_vm4, %v878_v18, %v1006_v28  ;;  %v1086_v37 = vsel %vm958_vm5, %v894_v19, %v1022_v29 }
 0x10b   :  { %v1039_v22 = vsel %vm911_vm2, %v847_v14, %v975_v16  ;;  %v1055_v23 = vsel %vm927_vm3, %v863_v15, %v991_v17 }
 0x10c   :  { %v1455_v24 = vpack.c.bf16 %v1039_v22, %v1038_v20  ;;  %v1495_v25 = vpack.c.bf16 %v1055_v23, %v1054_v21 }
 0x10d   :  { %v587_v26 = vpop.f32.mrf.mxu2  ;;  %v627_v27 = vpop.f32.mrf.mxu3 }
 0x10e   :  { %1587 = vst [vmem:[%s1946_s3 + $0x30] sm:$0xff] %v1455_v24   ;;  %v879_v30 = vadd.f32 %v1781_v42, %v587_v26  ;;  %v895_v31 = vadd.f32 %v1781_v42, %v627_v27  ;;  %v510_v32 = vpop.f32.mrf.mxu0  ;;  %v550_v33 = vpop.f32.mrf.mxu1 }
 0x10f   :  { %1595 = vst [vmem:[%s1946_s3 + $0x70] sm:$0xff] %v1495_v25   ;;  %v848_v43 = vadd.f32 %v1781_v42, %v510_v32  ;;  %v864_v44 = vadd.f32 %v1781_v42, %v550_v33 }
 0x110   :  { %vm943_vm6 = vcmp.gt.f32.partialorder %v879_v30, 0.0  ;;  %v1007_v34 = vmul.f32 0.01, %v879_v30  ;;  %vm959_vm7 = vcmp.gt.f32.partialorder %v895_v31, 0.0  ;;  %v1023_v35 = vmul.f32 0.01, %v895_v31 }
 0x111   :  { %v976_v49 = vmul.f32 0.01, %v848_v43  ;;  %v992_v50 = vmul.f32 0.01, %v864_v44  ;;  %vm912_vm8 = vcmp.gt.f32.partialorder %v848_v43, 0.0  ;;  %vm928_vm9 = vcmp.gt.f32.partialorder %v864_v44, 0.0 }
 0x112   :  { %v1071_v38 = vsel %vm943_vm6, %v879_v30, %v1007_v34  ;;  %v1087_v39 = vsel %vm959_vm7, %v895_v31, %v1023_v35 }
 0x113   :  { %v1535_v40 = vpack.c.bf16 %v1071_v38, %v1070_v36  ;;  %v1575_v41 = vpack.c.bf16 %v1087_v39, %v1086_v37  ;;  %v1040_v57 = vsel %vm912_vm8, %v848_v43, %v976_v49  ;;  %v1056_v58 = vsel %vm928_vm9, %v864_v44, %v992_v50 }
 0x115   :  { %1603 = vst [vmem:[%s1946_s3 + $0xb0] sm:$0xff] %v1535_v40   ;;  %v590_v45 = vpop.f32.mrf.mxu2  ;;  %v630_v46 = vpop.f32.mrf.mxu3 }
 0x116   :  { %1611 = vst [vmem:[%s1946_s3 + $0xf0] sm:$0xff] %v1575_v41   ;;  %v512_v47 = vpop.f32.mrf.mxu0  ;;  %v552_v48 = vpop.f32.mrf.mxu1  ;;  %v880_v55 = vadd.f32 %v1781_v42, %v590_v45  ;;  %v896_v56 = vadd.f32 %v1781_v42, %v630_v46 }
 0x117   :  { %v849_v51 = vadd.f32 %v1781_v42, %v512_v47  ;;  %v865_v52 = vadd.f32 %v1781_v42, %v552_v48 }
 0x118   :  { %v1008_v1 = vmul.f32 0.01, %v880_v55  ;;  %v1024_v2 = vmul.f32 0.01, %v896_v56  ;;  %vm944_vm12 = vcmp.gt.f32.partialorder %v880_v55, 0.0  ;;  %vm960_vm13 = vcmp.gt.f32.partialorder %v896_v56, 0.0 }
 0x119   :  { %vm913_vm10 = vcmp.gt.f32.partialorder %v849_v51, 0.0  ;;  %v977_v53 = vmul.f32 0.01, %v849_v51  ;;  %vm929_vm11 = vcmp.gt.f32.partialorder %v865_v52, 0.0  ;;  %v993_v54 = vmul.f32 0.01, %v865_v52 }
 0x11a   :  { %v1072_v7 = vsel %vm944_vm12, %v880_v55, %v1008_v1  ;;  %v1088_v8 = vsel %vm960_vm13, %v896_v56, %v1024_v2 }
 0x11b   :  { %v1041_v59 = vsel %vm913_vm10, %v849_v51, %v977_v53  ;;  %v1057_v60 = vsel %vm929_vm11, %v865_v52, %v993_v54 }
 0x11c   :  { %v1460_v61 = vpack.c.bf16 %v1041_v59, %v1040_v57  ;;  %v1500_v62 = vpack.c.bf16 %v1057_v60, %v1056_v58 }
 0x11d   :  { %v592_v63 = vpop.f32.mrf.mxu2  ;;  %v632_v0 = vpop.f32.mrf.mxu3 }
 0x11e   :  { %1588 = vst [vmem:[%s1946_s3 + $0x38] sm:$0xff] %v1460_v61   ;;  %v881_v3 = vadd.f32 %v1781_v42, %v592_v63  ;;  %v897_v4 = vadd.f32 %v1781_v42, %v632_v0 }
 0x11f   :  { %1596 = vst [vmem:[%s1946_s3 + $0x78] sm:$0xff] %v1500_v62  }
 0x120   :  { %vm945_vm14 = vcmp.gt.f32.partialorder %v881_v3, 0.0  ;;  %v1009_v5 = vmul.f32 0.01, %v881_v3  ;;  %vm961_vm15 = vcmp.gt.f32.partialorder %v897_v4, 0.0  ;;  %v1025_v6 = vmul.f32 0.01, %v897_v4 }
 0x122   :  { %v1073_v9 = vsel %vm945_vm14, %v881_v3, %v1009_v5  ;;  %v1089_v10 = vsel %vm961_vm15, %v897_v4, %v1025_v6 }
 0x123   :  { %v1540_v11 = vpack.c.bf16 %v1073_v9, %v1072_v7  ;;  %v1580_v12 = vpack.c.bf16 %v1089_v10, %v1088_v8 }
 0x125   :  { %1604 = vst [vmem:[%s1946_s3 + $0xb8] sm:$0xff] %v1540_v11  }
 0x126   :  { %1612 = vst [vmem:[%s1946_s3 + $0xf8] sm:$0xff] %v1580_v12  }

// kernel: discriminator_mnist_forward.5
= control target key start
LH: loop header
LB: loop body
LE: loop exit
PB: predicated region body
PF: predicated region fallthrough
CT: control target
= control target key end

     0   :  { %s2054_s12 = smov 0   ;;  %s2056_s13 = smov 0   ;;  %s2427_s0 = inlined_call_operand.vmem [shape: bf16[128,3200], index: 0, kind: input, shape index: {}]   ;;  %s2428_s1 = inlined_call_operand.vmem [shape: bf16[3200,128], index: 1, kind: input, shape index: {}]   ;;  %s2429_s2 = inlined_call_operand.vmem [shape: f32[1,128], index: 2, kind: input, shape index: {}]   ;;  %s2430_s3 = inlined_call_operand.vmem [shape: bf16[128,128], index: 3, kind: output, shape index: {}]  }
   0x1   :  { %s2058_s14 = smov 0   ;;  %s2060_s15 = smov 0  }
   0x2   :  { %s2062_s16 = smov 0  }
   0x3 LB: > { %s22_s17 = sadd.s32 1, %s2027_s15  ;;  %p41_p1 = scmp.ne.s32.totalorder %s2019_s13, %s2015_s12  ;;  %s2031_s16 = sphi %s2062_s16, %s13_s16   ;;  %s2027_s15 = sphi %s2060_s15, %s2434_s15   ;;  %s2023_s14 = sphi %s2058_s14, %s2433_s14   ;;  %s2019_s13 = sphi %s2056_s13, %s2432_s13   ;;  %s2015_s12 = sphi %s2054_s12, %s2431_s12  }
   0x4   : > { %p23_p0 = scmp.ge.s32.totalorder %s22_s17, 5  ;;  %p42_p2 = scmp.eq.s32.totalorder %s2031_s16, 0 }
   0x5   : > { %s34_s19 = sadd.s32 1, %s2019_s13  ;;  %p1435_p5 = scmp.ge.s32.totalorder %s2031_s16, 5 }
   0x6   : > { %s2436_s17 = smov (%p23_p0, %s22_s17), 0  ;;  %p43_p3 = por %p42_p2, %p41_p1 }
   0x7   : > { %s30_s18 = ssub.s32 %s2027_s15, %s2436_s17  ;;  %143 = sbr.rel (%p1435_p5) target bundleno = 65 (0x41), region = 20 }
   0x8   : > { %p32_p4 = scmp.eq.s32.totalorder %s30_s18, 0 }
   0xa   : > { %s2089_s20 = scalar_select %p32_p4, %s2019_s13, %s34_s19  }
   0xc   : > { %146 = sbr.rel (!%p43_p3) target bundleno = 65 (0x41), region = 24  ;;  %s148_s21 = sand.u32 (%p43_p3), 1, %s2019_s13  }
   0xd   : > { %s1797_s22 = smul.u32 (%p43_p3), 20, %s2027_s15 }
   0xe   : > { %s1949_s23 = smul.u32 (%p43_p3), 320, %s148_s21 }
   0xf   : > { %s2097_s26 = scalar_lea.vmem (%p43_p3), %s2427_s0, %s1797_s22 }
  0x10   : > { %v171_v0 = vld [vmem:[%s2097_s26] sm:$0xff] (%p43_p3)  ;;  %v173_v1 = vld [vmem:[%s2097_s26 + $0x8] sm:$0xff] (%p43_p3)  ;;  %s2102_s27 = scalar_lea.vmem (%p43_p3), [#allocation3], %s1949_s23  ;;  %v181_v5 = vld [vmem:[%s2097_s26 + $0xd0] sm:$0xff] (%p43_p3) }
  0x11   : > { %v175_v2 = vld [vmem:[%s2097_s26 + $0x64] sm:$0xff]  ;;  %172 = vst [vmem:[%s2102_s27] sm:$0xff] %v171_v0  ;;  %v177_v3 = vld [vmem:[%s2097_s26 + $0x6c] sm:$0xff]  ;;  %v185_v7 = vld [vmem:[%s2097_s26 + $0x134] sm:$0xff] }
  0x12   : > { %174 = vst [vmem:[%s2102_s27 + $0x8] sm:$0xff] %v173_v1  ;;  %v179_v4 = vld [vmem:[%s2097_s26 + $0xc8] sm:$0xff]  ;;  %v187_v8 = vld [vmem:[%s2097_s26 + $0x190] sm:$0xff]  ;;  %v189_v9 = vld [vmem:[%s2097_s26 + $0x198] sm:$0xff] }
  0x13   : > { %176 = vst [vmem:[%s2102_s27 + $0x14] sm:$0xff] %v175_v2  ;;  %v183_v6 = vld [vmem:[%s2097_s26 + $0x12c] sm:$0xff]  ;;  %v191_v10 = vld [vmem:[%s2097_s26 + $0x1f4] sm:$0xff]  ;;  %v193_v11 = vld [vmem:[%s2097_s26 + $0x1fc] sm:$0xff] }
  0x14   : > { %178 = vst [vmem:[%s2102_s27 + $0x1c] sm:$0xff] %v177_v3  ;;  %v195_v12 = vld [vmem:[%s2097_s26 + $0x258] sm:$0xff]  ;;  %v197_v13 = vld [vmem:[%s2097_s26 + $0x260] sm:$0xff]  ;;  %v205_v17 = vld [vmem:[%s2097_s26 + $0x328] sm:$0xff] }
  0x15   : > { %180 = vst [vmem:[%s2102_s27 + $0x28] sm:$0xff] %v179_v4  ;;  %v199_v14 = vld [vmem:[%s2097_s26 + $0x2bc] sm:$0xff]  ;;  %v201_v15 = vld [vmem:[%s2097_s26 + $0x2c4] sm:$0xff]  ;;  %v209_v19 = vld [vmem:[%s2097_s26 + $0x38c] sm:$0xff] }
  0x16   : > { %182 = vst [vmem:[%s2102_s27 + $0x30] sm:$0xff] %v181_v5  ;;  %v203_v16 = vld [vmem:[%s2097_s26 + $0x320] sm:$0xff]  ;;  %v211_v20 = vld [vmem:[%s2097_s26 + $0x3e8] sm:$0xff]  ;;  %v213_v21 = vld [vmem:[%s2097_s26 + $0x3f0] sm:$0xff] }
  0x17   : > { %184 = vst [vmem:[%s2102_s27 + $0x3c] sm:$0xff] %v183_v6  ;;  %v207_v18 = vld [vmem:[%s2097_s26 + $0x384] sm:$0xff]  ;;  %v215_v22 = vld [vmem:[%s2097_s26 + $0x44c] sm:$0xff]  ;;  %v217_v23 = vld [vmem:[%s2097_s26 + $0x454] sm:$0xff] }
  0x18   : > { %186 = vst [vmem:[%s2102_s27 + $0x44] sm:$0xff] %v185_v7  ;;  %v219_v24 = vld [vmem:[%s2097_s26 + $0x4b0] sm:$0xff]  ;;  %v221_v25 = vld [vmem:[%s2097_s26 + $0x4b8] sm:$0xff]  ;;  %v229_v29 = vld [vmem:[%s2097_s26 + $0x580] sm:$0xff] }
  0x19   : > { %188 = vst [vmem:[%s2102_s27 + $0x50] sm:$0xff] %v187_v8  ;;  %v223_v26 = vld [vmem:[%s2097_s26 + $0x514] sm:$0xff]  ;;  %v225_v27 = vld [vmem:[%s2097_s26 + $0x51c] sm:$0xff]  ;;  %v233_v31 = vld [vmem:[%s2097_s26 + $0x5e4] sm:$0xff] }
  0x1a   : > { %190 = vst [vmem:[%s2102_s27 + $0x58] sm:$0xff] %v189_v9  ;;  %v227_v28 = vld [vmem:[%s2097_s26 + $0x578] sm:$0xff]  ;;  %v1437_v32 = vld [vmem:[%s2097_s26 + $0x10] sm:$0xf]  ;;  %v1439_v33 = vld [vmem:[%s2097_s26 + $0x74] sm:$0xf] }
  0x1b   : > { %192 = vst [vmem:[%s2102_s27 + $0x64] sm:$0xff] %v191_v10  ;;  %v231_v30 = vld [vmem:[%s2097_s26 + $0x5dc] sm:$0xff]  ;;  %v1441_v34 = vld [vmem:[%s2097_s26 + $0xd8] sm:$0xf]  ;;  %v1447_v37 = vld [vmem:[%s2097_s26 + $0x204] sm:$0xf] }
  0x1c   : > { %194 = vst [vmem:[%s2102_s27 + $0x6c] sm:$0xff] %v193_v11  ;;  %v1443_v35 = vld [vmem:[%s2097_s26 + $0x13c] sm:$0xf]  ;;  %v1445_v36 = vld [vmem:[%s2097_s26 + $0x1a0] sm:$0xf] }
  0x1d   : > { %196 = vst [vmem:[%s2102_s27 + $0x78] sm:$0xff] %v195_v12  ;;  %v1449_v38 = vld [vmem:[%s2097_s26 + $0x268] sm:$0xf]  ;;  %v1451_v39 = vld [vmem:[%s2097_s26 + $0x2cc] sm:$0xf] }
  0x1e   : > { %198 = vst [vmem:[%s2102_s27 + $0x80] sm:$0xff] %v197_v13  ;;  %v1453_v40 = vld [vmem:[%s2097_s26 + $0x330] sm:$0xf]  ;;  %v1455_v41 = vld [vmem:[%s2097_s26 + $0x394] sm:$0xf] }
  0x1f   : > { %200 = vst [vmem:[%s2102_s27 + $0x8c] sm:$0xff] %v199_v14  ;;  %v1457_v42 = vld [vmem:[%s2097_s26 + $0x3f8] sm:$0xf]  ;;  %v1459_v43 = vld [vmem:[%s2097_s26 + $0x45c] sm:$0xf] }
  0x20   : > { %202 = vst [vmem:[%s2102_s27 + $0x94] sm:$0xff] %v201_v15  ;;  %v1461_v44 = vld [vmem:[%s2097_s26 + $0x4c0] sm:$0xf]  ;;  %v1463_v45 = vld [vmem:[%s2097_s26 + $0x524] sm:$0xf] }
  0x21   : > { %204 = vst [vmem:[%s2102_s27 + $0xa0] sm:$0xff] %v203_v16  ;;  %v1465_v46 = vld [vmem:[%s2097_s26 + $0x588] sm:$0xf]  ;;  %v1467_v47 = vld [vmem:[%s2097_s26 + $0x5ec] sm:$0xf] }
  0x22   : > { %206 = vst [vmem:[%s2102_s27 + $0xa8] sm:$0xff] %v205_v17 }
  0x23   : > { %208 = vst [vmem:[%s2102_s27 + $0xb4] sm:$0xff] %v207_v18 }
  0x24   : > { %210 = vst [vmem:[%s2102_s27 + $0xbc] sm:$0xff] %v209_v19 }
  0x25   : > { %212 = vst [vmem:[%s2102_s27 + $0xc8] sm:$0xff] %v211_v20 }
  0x26   : > { %214 = vst [vmem:[%s2102_s27 + $0xd0] sm:$0xff] %v213_v21 }
  0x27   : > { %216 = vst [vmem:[%s2102_s27 + $0xdc] sm:$0xff] %v215_v22 }
  0x28   : > { %218 = vst [vmem:[%s2102_s27 + $0xe4] sm:$0xff] %v217_v23 }
  0x29   : > { %220 = vst [vmem:[%s2102_s27 + $0xf0] sm:$0xff] %v219_v24 }
  0x2a   : > { %222 = vst [vmem:[%s2102_s27 + $0xf8] sm:$0xff] %v221_v25 }
  0x2b   : > { %224 = vst [vmem:[%s2102_s27 + $0x104] sm:$0xff] %v223_v26 }
  0x2c   : > { %226 = vst [vmem:[%s2102_s27 + $0x10c] sm:$0xff] %v225_v27 }
  0x2d   : > { %228 = vst [vmem:[%s2102_s27 + $0x118] sm:$0xff] %v227_v28 }
  0x2e   : > { %230 = vst [vmem:[%s2102_s27 + $0x120] sm:$0xff] %v229_v29 }
  0x2f   : > { %232 = vst [vmem:[%s2102_s27 + $0x12c] sm:$0xff] %v231_v30 }
  0x30   : > { %234 = vst [vmem:[%s2102_s27 + $0x134] sm:$0xff] %v233_v31 }
  0x31   : > { %1438 = vst [vmem:[%s2102_s27 + $0x10] sm:$0xf] %v1437_v32 }
  0x32   : > { %1440 = vst [vmem:[%s2102_s27 + $0x24] sm:$0xf] %v1439_v33 }
  0x33   : > { %1442 = vst [vmem:[%s2102_s27 + $0x38] sm:$0xf] %v1441_v34 }
  0x34   : > { %1444 = vst [vmem:[%s2102_s27 + $0x4c] sm:$0xf] %v1443_v35 }
  0x35   : > { %1446 = vst [vmem:[%s2102_s27 + $0x60] sm:$0xf] %v1445_v36 }
  0x36   : > { %1448 = vst [vmem:[%s2102_s27 + $0x74] sm:$0xf] %v1447_v37 }
  0x37   : > { %1450 = vst [vmem:[%s2102_s27 + $0x88] sm:$0xf] %v1449_v38 }
  0x38   : > { %1452 = vst [vmem:[%s2102_s27 + $0x9c] sm:$0xf] %v1451_v39 }
  0x39   : > { %1454 = vst [vmem:[%s2102_s27 + $0xb0] sm:$0xf] %v1453_v40 }
  0x3a   : > { %1456 = vst [vmem:[%s2102_s27 + $0xc4] sm:$0xf] %v1455_v41 }
  0x3b   : > { %1458 = vst [vmem:[%s2102_s27 + $0xd8] sm:$0xf] %v1457_v42 }
  0x3c   : > { %1460 = vst [vmem:[%s2102_s27 + $0xec] sm:$0xf] %v1459_v43 }
  0x3d   : > { %1462 = vst [vmem:[%s2102_s27 + $0x100] sm:$0xf] %v1461_v44 }
  0x3e   : > { %1464 = vst [vmem:[%s2102_s27 + $0x114] sm:$0xf] %v1463_v45 }
  0x3f   : > { %1466 = vst [vmem:[%s2102_s27 + $0x128] sm:$0xf] %v1465_v46 }
  0x40   : > { %1468 = vst [vmem:[%s2102_s27 + $0x13c] sm:$0xf] %v1467_v47 }
  0x41 PF: > { %p1469_p6 = scmp.ge.s32.totalorder %s2031_s16, 1  ;;  %p288_p7 = scmp.lt.s32.totalorder %s2031_s16, 6 }
  0x43   : > { %p289_p8 = pnand %p1469_p6, %p288_p7 }
  0x44   : > { %s295_s28 = sand.u32 (!%p289_p8), 1, %s2015_s12   ;;  %s325_s29 = smul.u32 (!%p289_p8), 80, %s2023_s14 }
  0x45   : > { %292 = sbr.rel (%p289_p8) target bundleno = 446 (0x1be), region = 54  ;;  %p1471_p10 = scmp.ne.s32.totalorder (!%p289_p8), %s2023_s14, 0 }
  0x46   : > { %s1950_s30 = smul.u32 (!%p289_p8), 320, %s295_s28  ;;  %p326_p9 = scmp.lt.s32.totalorder (!%p289_p8), %s325_s29, 399 }
  0x48   : > { %s2206_s8 = scalar_lea.vmem (!%p289_p8), [#allocation3], %s1950_s30 }
  0x4a   : > { %s2438_s29 = smov (!%p326_p9, %s325_s29), 399  ;;  %340 = sbr.rel (%p1471_p10) target bundleno = 96 (0x60), region = 62 }
  0x4b   : > { %s1470_s4 = sshll.u32 %s2438_s29, 2 }
  0x4c   : > { %s2204_s7 = scalar_lea.vmem %s2428_s1, %s1470_s4 }
  0x4f   : > { %v2033_v48 = vmov 0.0  }
  0x50   : > { %341 = vst [vmem:[#allocation2 + $0x30] sm:$0xff] %v2033_v48 }
  0x51   : > { %342 = vst [vmem:[#allocation2] sm:$0xff] %v2033_v48 }
  0x52   : > { %343 = vst [vmem:[#allocation2 + $0x58] sm:$0xff] %v2033_v48 }
  0x53   : > { %344 = vst [vmem:[#allocation2 + $0x18] sm:$0xff] %v2033_v48 }
  0x54   : > { %345 = vst [vmem:[#allocation2 + $0x50] sm:$0xff] %v2033_v48 }
  0x55   : > { %346 = vst [vmem:[#allocation2 + $0x68] sm:$0xff] %v2033_v48 }
  0x56   : > { %347 = vst [vmem:[#allocation2 + $0x8] sm:$0xff] %v2033_v48 }
  0x57   : > { %348 = vst [vmem:[#allocation2 + $0x48] sm:$0xff] %v2033_v48 }
  0x58   : > { %349 = vst [vmem:[#allocation2 + $0x40] sm:$0xff] %v2033_v48 }
  0x59   : > { %350 = vst [vmem:[#allocation2 + $0x20] sm:$0xff] %v2033_v48 }
  0x5a   : > { %351 = vst [vmem:[#allocation2 + $0x10] sm:$0xff] %v2033_v48 }
  0x5b   : > { %352 = vst [vmem:[#allocation2 + $0x38] sm:$0xff] %v2033_v48 }
  0x5c   : > { %353 = vst [vmem:[#allocation2 + $0x60] sm:$0xff] %v2033_v48 }
  0x5d   : > { %354 = vst [vmem:[#allocation2 + $0x70] sm:$0xff] %v2033_v48 }
  0x5e   : > { %355 = vst [vmem:[#allocation2 + $0x78] sm:$0xff] %v2033_v48 }
  0x5f   : > { %356 = vst [vmem:[#allocation2 + $0x28] sm:$0xff] %v2033_v48 }
  0x60 PF: > { %v1845_v49 = vld [vmem:[%s2204_s7 + $0x38] sm:$0xff]  ;;  %v1844_v50 = vld [vmem:[%s2204_s7 + $0x30] sm:$0xff]  ;;  %v1843_v51 = vld [vmem:[%s2204_s7 + $0x28] sm:$0xff]  ;;  %p1792_p11 = scmp.ne.s32.totalorder %s2023_s14, 4 }
  0x61   : > { %1925 = vmatpush.bf16.msra.mxu1 %v1845_v49  ;;  %1926 = vmatpush.bf16.msra.mxu2 %v1845_v49  ;;  %v1842_v52 = vld [vmem:[%s2204_s7 + $0x20] sm:$0xff]  ;;  %v1841_v53 = vld [vmem:[%s2204_s7 + $0x18] sm:$0xff]  ;;  %v1840_v54 = vld [vmem:[%s2204_s7 + $0x10] sm:$0xff] }
  0x62   : > { %1927 = vmatpush.bf16.msra.mxu3 %v1845_v49  ;;  %949 = vmatpush.bf16.msra.mxu0 %v1845_v49  ;;  %v1839_v55 = vld [vmem:[%s2204_s7 + $0x8] sm:$0xff]  ;;  %v1838_v56 = vld [vmem:[%s2204_s7] sm:$0xff]  ;;  %v1514_v57 = vld [vmem:[%s2206_s8 + $0x50] sm:$0xf] }
  0x63   : > { %v1810_v58 = vld [vmem:[%s2206_s8 + $0x60] sm:$0xf0]  ;;  %v1554_v59 = vld [vmem:[%s2206_s8 + $0xa0] sm:$0xf]  ;;  %v1820_v60 = vld [vmem:[%s2206_s8 + $0xb0] sm:$0xf0] }
  0x64   : > { %v1594_v61 = vld [vmem:[%s2206_s8 + $0xf0] sm:$0xf]  ;;  %v1830_v62 = vld [vmem:[%s2206_s8 + $0x100] sm:$0xf0]  ;;  %v1474_v63 = vld [vmem:[%s2206_s8] sm:$0xf]  ;;  %v1515_v3 = vor.u32 %v1810_v58, %v1514_v57  ;;  %v1555_v4 = vor.u32 %v1820_v60, %v1554_v59 }
  0x65   : > { %1928 = vmatpush.bf16.msra.mxu1 %v1844_v50  ;;  %1929 = vmatpush.bf16.msra.mxu2 %v1844_v50  ;;  %v1800_v0 = vld [vmem:[%s2206_s8 + $0x10] sm:$0xf0]  ;;  %v1861_v1 = vld [vmem:[%s2204_s7 + $0xb8] sm:$0xff]  ;;  %v1595_v5 = vor.u32 %v1830_v62, %v1594_v61  ;;  %v1859_v13 = vld [vmem:[%s2204_s7 + $0xa8] sm:$0xff] }
  0x66   : > { %1930 = vmatpush.bf16.msra.mxu3 %v1844_v50  ;;  %950 = vmatpush.bf16.msra.mxu0 %v1844_v50  ;;  %v1853_v2 = vld [vmem:[%s2204_s7 + $0x78] sm:$0xff]  ;;  %v1475_v6 = vor.u32 %v1800_v0, %v1474_v63  ;;  %v1860_v9 = vld [vmem:[%s2204_s7 + $0xb0] sm:$0xff]  ;;  %v1851_v14 = vld [vmem:[%s2204_s7 + $0x68] sm:$0xff] }
  0x67   : > { %v1869_v7 = vld [vmem:[%s2204_s7 + $0xf8] sm:$0xff]  ;;  %v1852_v10 = vld [vmem:[%s2204_s7 + $0x70] sm:$0xff]  ;;  %v1867_v15 = vld [vmem:[%s2204_s7 + $0xe8] sm:$0xff] }
  0x68   : > { %v1877_v8 = vld [vmem:[%s2204_s7 + $0x138] sm:$0xff]  ;;  %v1868_v11 = vld [vmem:[%s2204_s7 + $0xf0] sm:$0xff]  ;;  %v1875_v16 = vld [vmem:[%s2204_s7 + $0x128] sm:$0xff] }
  0x69   : > { %1931 = vmatpush.bf16.msra.mxu1 %v1843_v51  ;;  %1932 = vmatpush.bf16.msra.mxu2 %v1843_v51  ;;  %v1876_v12 = vld [vmem:[%s2204_s7 + $0x130] sm:$0xff]  ;;  %v1858_v17 = vld [vmem:[%s2204_s7 + $0xa0] sm:$0xff]  ;;  %v1534_v21 = vld [vmem:[%s2206_s8 + $0x78] sm:$0xf] }
  0x6a   : > { %1933 = vmatpush.bf16.msra.mxu3 %v1843_v51  ;;  %951 = vmatpush.bf16.msra.mxu0 %v1843_v51  ;;  %v1850_v18 = vld [vmem:[%s2204_s7 + $0x60] sm:$0xff]  ;;  %v1815_v22 = vld [vmem:[%s2206_s8 + $0x88] sm:$0xf0]  ;;  %v1574_v23 = vld [vmem:[%s2206_s8 + $0xc8] sm:$0xf] }
  0x6b   : > { %v1866_v19 = vld [vmem:[%s2204_s7 + $0xe0] sm:$0xff]  ;;  %v1825_v24 = vld [vmem:[%s2206_s8 + $0xd8] sm:$0xf0]  ;;  %v1614_v25 = vld [vmem:[%s2206_s8 + $0x118] sm:$0xf]  ;;  %v1535_v31 = vor.u32 %v1815_v22, %v1534_v21 }
  0x6c   : > { %v1874_v20 = vld [vmem:[%s2204_s7 + $0x120] sm:$0xff]  ;;  %v1835_v26 = vld [vmem:[%s2206_s8 + $0x128] sm:$0xf0]  ;;  %v1494_v27 = vld [vmem:[%s2206_s8 + $0x28] sm:$0xf]  ;;  %v1575_v32 = vor.u32 %v1825_v24, %v1574_v23 }
  0x6d   : > { %1934 = vmatpush.bf16.msra.mxu1 %v1842_v52  ;;  %1935 = vmatpush.bf16.msra.mxu2 %v1842_v52  ;;  %v1805_v28 = vld [vmem:[%s2206_s8 + $0x38] sm:$0xf0]  ;;  %v1615_v33 = vor.u32 %v1835_v26, %v1614_v25  ;;  %v1856_v37 = vld [vmem:[%s2204_s7 + $0x90] sm:$0xff]  ;;  %v1855_v41 = vld [vmem:[%s2204_s7 + $0x88] sm:$0xff] }
  0x6e   : > { %1936 = vmatpush.bf16.msra.mxu3 %v1842_v52  ;;  %952 = vmatpush.bf16.msra.mxu0 %v1842_v52  ;;  %v1857_v29 = vld [vmem:[%s2204_s7 + $0x98] sm:$0xff]  ;;  %v1495_v34 = vor.u32 %v1805_v28, %v1494_v27  ;;  %v1848_v38 = vld [vmem:[%s2204_s7 + $0x50] sm:$0xff]  ;;  %v1847_v42 = vld [vmem:[%s2204_s7 + $0x48] sm:$0xff] }
  0x6f   : > { %v1849_v30 = vld [vmem:[%s2204_s7 + $0x58] sm:$0xff]  ;;  %v1864_v39 = vld [vmem:[%s2204_s7 + $0xd0] sm:$0xff]  ;;  %v1863_v43 = vld [vmem:[%s2204_s7 + $0xc8] sm:$0xff] }
  0x70   : > { %v1865_v35 = vld [vmem:[%s2204_s7 + $0xd8] sm:$0xff]  ;;  %v1872_v40 = vld [vmem:[%s2204_s7 + $0x110] sm:$0xff]  ;;  %v1871_v44 = vld [vmem:[%s2204_s7 + $0x108] sm:$0xff] }
  0x71   : > { %1937 = vmatpush.bf16.msra.mxu1 %v1841_v53  ;;  %1938 = vmatpush.bf16.msra.mxu2 %v1841_v53  ;;  %v1873_v36 = vld [vmem:[%s2204_s7 + $0x118] sm:$0xff]  ;;  %v1854_v45 = vld [vmem:[%s2204_s7 + $0x80] sm:$0xff]  ;;  %v1482_v51 = vld [vmem:[%s2206_s8 + $0x8] sm:$0xf] }
  0x72   : > { %1939 = vmatpush.bf16.msra.mxu3 %v1841_v53  ;;  %953 = vmatpush.bf16.msra.mxu0 %v1841_v53  ;;  %v1846_v46 = vld [vmem:[%s2204_s7 + $0x40] sm:$0xff]  ;;  %v1476_v50 = vld [vmem:[%s2206_s8 + $0x14] sm:$0xf0]  ;;  %v1801_v52 = vld [vmem:[%s2206_s8 + $0x18] sm:$0xf0] }
  0x73   : > { %v1862_v47 = vld [vmem:[%s2204_s7 + $0xc0] sm:$0xff]  ;;  %v1799_v53 = vld [vmem:[%s2206_s8 + $0xc] sm:$0xf]  ;;  %v1483_v58 = vor.u32 %v1801_v52, %v1482_v51  ;;  %v1502_v63 = vld [vmem:[%s2206_s8 + $0x30] sm:$0xf] }
  0x74   : > { %v1870_v48 = vld [vmem:[%s2204_s7 + $0x100] sm:$0xff]  ;;  %v1803_v61 = vld [vmem:[%s2206_s8 + $0x2c] sm:$0xf]  ;;  %v1813_v21 = vld [vmem:[%s2206_s8 + $0x7c] sm:$0xf] }
  0x75   : > { %1940 = vmatpush.bf16.msra.mxu1 %v1840_v54  ;;  %1941 = vmatpush.bf16.msra.mxu2 %v1840_v54  ;;  %v1798_v49 = vld [vmem:[%s2206_s8 + $0x4] sm:$0xf]  ;;  %v1496_v62 = vld [vmem:[%s2206_s8 + $0x3c] sm:$0xf0]  ;;  %v1536_v22 = vld [vmem:[%s2206_s8 + $0x8c] sm:$0xf0] }
  0x76   : > { %1942 = vmatpush.bf16.msra.mxu3 %v1840_v54  ;;  %954 = vmatpush.bf16.msra.mxu0 %v1840_v54  ;;  %v1484_v54 = vld [vmem:[%s2206_s8 + $0x1c] sm:$0xf0]  ;;  %v1479_v57 = vor.u32 %v1798_v49, %v1476_v50  ;;  %v1806_v0 = vld [vmem:[%s2206_s8 + $0x40] sm:$0xf0]  ;;  %v1816_v24 = vld [vmem:[%s2206_s8 + $0x90] sm:$0xf0] }
  0x77   : > { %v1487_v59 = vor.u32 %v1799_v53, %v1484_v54  ;;  %v1542_v23 = vld [vmem:[%s2206_s8 + $0x80] sm:$0xf]  ;;  %v1814_v25 = vld [vmem:[%s2206_s8 + $0x84] sm:$0xf]  ;;  %v1544_v26 = vld [vmem:[%s2206_s8 + $0x94] sm:$0xf0] }
  0x78   : > { %v1550_v27 = vld [vmem:[%s2206_s8 + $0x88] sm:$0xf]  ;;  %v1817_v28 = vld [vmem:[%s2206_s8 + $0x98] sm:$0xf0]  ;;  %v1824_v49 = vld [vmem:[%s2206_s8 + $0xd4] sm:$0xf] }
  0x79   : > { %1943 = vmatpush.bf16.msra.mxu1 %v1839_v55  ;;  %1944 = vmatpush.bf16.msra.mxu2 %v1839_v55  ;;  %v1584_v50 = vld [vmem:[%s2206_s8 + $0xe4] sm:$0xf0]  ;;  %v1590_v51 = vld [vmem:[%s2206_s8 + $0xd8] sm:$0xf]  ;;  %v1827_v52 = vld [vmem:[%s2206_s8 + $0xe8] sm:$0xf0] }
  0x7a   : > { %1945 = vmatpush.bf16.msra.mxu3 %v1839_v55  ;;  %955 = vmatpush.bf16.msra.mxu0 %v1839_v55  ;;  %v1490_v55 = vld [vmem:[%s2206_s8 + $0x10] sm:$0xf] }
  0x7d   : > { %1946 = vmatpush.bf16.msra.mxu1 %v1838_v56  ;;  %1947 = vmatpush.bf16.msra.mxu2 %v1838_v56 }
  0x7e   : > { %1948 = vmatpush.bf16.msra.mxu3 %v1838_v56  ;;  %956 = vmatpush.bf16.msra.mxu0 %v1838_v56  ;;  %v1802_v56 = vld [vmem:[%s2206_s8 + $0x20] sm:$0xf0] }
  0x7f   : > { %v1491_v60 = vor.u32 %v1802_v56, %v1490_v55  ;;  %v1587_v55 = vor.u32 %v1824_v49, %v1584_v50  ;;  %v1591_v56 = vor.u32 %v1827_v52, %v1590_v51  ;;  %v358_v52 = vld [vmem:[#allocation2] sm:$0xff] }
  0x80   : > { %967 = vmatmul.bf16.vlgmr.msra.gmra.mxu1 %v1515_v3  ;;  %977 = vmatmul.bf16.vlgmr.msra.gmra.mxu2 %v1555_v4  ;;  %v1510_v3 = vld [vmem:[%s2206_s8 + $0x38] sm:$0xf]  ;;  %v1807_v4 = vld [vmem:[%s2206_s8 + $0x48] sm:$0xf0] }
  0x81   : > { %1047 = vmatpush.bf16.msrb.mxu2 %v1861_v1  ;;  %998 = vmatpush.bf16.msrb.mxu1 %v1853_v2  ;;  %v1804_v1 = vld [vmem:[%s2206_s8 + $0x34] sm:$0xf]  ;;  %v1504_v2 = vld [vmem:[%s2206_s8 + $0x44] sm:$0xf0] }
  0x82   : > { %987 = vmatmul.bf16.vlgmr.msra.gmra.mxu3 %v1595_v5  ;;  %957 = vmatmul.bf16.vlgmr.msra.gmra.mxu0 %v1475_v6  ;;  %v1499_v5 = vor.u32 %v1803_v61, %v1496_v62  ;;  %v1503_v6 = vor.u32 %v1806_v0, %v1502_v63  ;;  %v1829_v61 = vld [vmem:[%s2206_s8 + $0xfc] sm:$0xf]  ;;  %v1604_v62 = vld [vmem:[%s2206_s8 + $0x10c] sm:$0xf0]  ;;  %v1610_v63 = vld [vmem:[%s2206_s8 + $0x100] sm:$0xf] }
  0x83   : > { %1096 = vmatpush.bf16.msrb.mxu3 %v1869_v7  ;;  %1145 = vmatpush.bf16.msrb.mxu0 %v1877_v8  ;;  %v1507_v7 = vor.u32 %v1804_v1, %v1504_v2  ;;  %v1511_v8 = vor.u32 %v1807_v4, %v1510_v3  ;;  %v1832_v0 = vld [vmem:[%s2206_s8 + $0x110] sm:$0xf0]  ;;  %v1607_v4 = vor.u32 %v1829_v61, %v1604_v62  ;;  %v359_v62 = vld [vmem:[#allocation2 + $0x58] sm:$0xff] }
  0x85   : > { %1048 = vmatpush.bf16.msrb.mxu2 %v1860_v9  ;;  %999 = vmatpush.bf16.msrb.mxu1 %v1852_v10  ;;  %v1808_v9 = vld [vmem:[%s2206_s8 + $0x54] sm:$0xf]  ;;  %v1516_v10 = vld [vmem:[%s2206_s8 + $0x64] sm:$0xf0] }
  0x87   : > { %1097 = vmatpush.bf16.msrb.mxu3 %v1868_v11  ;;  %1146 = vmatpush.bf16.msrb.mxu0 %v1876_v12  ;;  %v1522_v11 = vld [vmem:[%s2206_s8 + $0x58] sm:$0xf]  ;;  %v1811_v12 = vld [vmem:[%s2206_s8 + $0x68] sm:$0xf0] }
  0x89   : > { %1049 = vmatpush.bf16.msrb.mxu2 %v1859_v13  ;;  %1000 = vmatpush.bf16.msrb.mxu1 %v1851_v14  ;;  %v1809_v13 = vld [vmem:[%s2206_s8 + $0x5c] sm:$0xf]  ;;  %v1524_v14 = vld [vmem:[%s2206_s8 + $0x6c] sm:$0xf0] }
  0x8b   : > { %1098 = vmatpush.bf16.msrb.mxu3 %v1867_v15  ;;  %1147 = vmatpush.bf16.msrb.mxu0 %v1875_v16  ;;  %v1530_v15 = vld [vmem:[%s2206_s8 + $0x60] sm:$0xf]  ;;  %v1812_v16 = vld [vmem:[%s2206_s8 + $0x70] sm:$0xf0] }
  0x8d   : > { %1050 = vmatpush.bf16.msrb.mxu2 %v1858_v17  ;;  %1001 = vmatpush.bf16.msrb.mxu1 %v1850_v18  ;;  %v1519_v17 = vor.u32 %v1808_v9, %v1516_v10  ;;  %v1523_v18 = vor.u32 %v1811_v12, %v1522_v11  ;;  %v1833_v11 = vld [vmem:[%s2206_s8 + $0x11c] sm:$0xf]  ;;  %v1616_v12 = vld [vmem:[%s2206_s8 + $0x12c] sm:$0xf0] }
  0x8f   : > { %1099 = vmatpush.bf16.msrb.mxu3 %v1866_v19  ;;  %1148 = vmatpush.bf16.msrb.mxu0 %v1874_v20  ;;  %v1527_v19 = vor.u32 %v1809_v13, %v1524_v14  ;;  %v1531_v20 = vor.u32 %v1812_v16, %v1530_v15  ;;  %v1622_v13 = vld [vmem:[%s2206_s8 + $0x120] sm:$0xf]  ;;  %v1836_v14 = vld [vmem:[%s2206_s8 + $0x130] sm:$0xf0]  ;;  %v1834_v15 = vld [vmem:[%s2206_s8 + $0x124] sm:$0xf] }
  0x90   : > { %972 = vmatmul.bf16.gmra.mxu1 %v1535_v31  ;;  %982 = vmatmul.bf16.gmra.mxu2 %v1575_v32  ;;  %v1547_v31 = vor.u32 %v1814_v25, %v1544_v26  ;;  %v1551_v32 = vor.u32 %v1817_v28, %v1550_v27  ;;  %v1624_v16 = vld [vmem:[%s2206_s8 + $0x134] sm:$0xf0] }
  0x91   : > { %1051 = vmatpush.bf16.msrb.mxu2 %v1857_v29  ;;  %1002 = vmatpush.bf16.msrb.mxu1 %v1849_v30  ;;  %v1539_v29 = vor.u32 %v1813_v21, %v1536_v22  ;;  %v1543_v30 = vor.u32 %v1816_v24, %v1542_v23  ;;  %v1619_v21 = vor.u32 %v1833_v11, %v1616_v12  ;;  %v360_v12 = vld [vmem:[#allocation2 + $0x18] sm:$0xff] }
  0x92   : > { %992 = vmatmul.bf16.gmra.mxu3 %v1615_v33  ;;  %962 = vmatmul.bf16.gmra.mxu0 %v1495_v34  ;;  %v1818_v33 = vld [vmem:[%s2206_s8 + $0xa4] sm:$0xf]  ;;  %v1556_v34 = vld [vmem:[%s2206_s8 + $0xb4] sm:$0xf0]  ;;  %v1623_v22 = vor.u32 %v1836_v14, %v1622_v13  ;;  %v1627_v24 = vor.u32 %v1834_v15, %v1624_v16 }
  0x93   : > { %1100 = vmatpush.bf16.msrb.mxu3 %v1865_v35  ;;  %1149 = vmatpush.bf16.msrb.mxu0 %v1873_v36  ;;  %v1562_v35 = vld [vmem:[%s2206_s8 + $0xa8] sm:$0xf]  ;;  %v1821_v36 = vld [vmem:[%s2206_s8 + $0xb8] sm:$0xf0] }
  0x95   : > { %1052 = vmatpush.bf16.msrb.mxu2 %v1856_v37  ;;  %1003 = vmatpush.bf16.msrb.mxu1 %v1848_v38  ;;  %v1819_v37 = vld [vmem:[%s2206_s8 + $0xac] sm:$0xf]  ;;  %v1564_v38 = vld [vmem:[%s2206_s8 + $0xbc] sm:$0xf0] }
  0x97   : > { %1101 = vmatpush.bf16.msrb.mxu3 %v1864_v39  ;;  %1150 = vmatpush.bf16.msrb.mxu0 %v1872_v40  ;;  %v1570_v39 = vld [vmem:[%s2206_s8 + $0xb0] sm:$0xf]  ;;  %v1822_v40 = vld [vmem:[%s2206_s8 + $0xc0] sm:$0xf0] }
  0x99   : > { %1053 = vmatpush.bf16.msrb.mxu2 %v1855_v41  ;;  %1004 = vmatpush.bf16.msrb.mxu1 %v1847_v42  ;;  %v1559_v41 = vor.u32 %v1818_v33, %v1556_v34  ;;  %v1563_v42 = vor.u32 %v1821_v36, %v1562_v35 }
  0x9b   : > { %1102 = vmatpush.bf16.msrb.mxu3 %v1863_v43  ;;  %1151 = vmatpush.bf16.msrb.mxu0 %v1871_v44  ;;  %v1567_v43 = vor.u32 %v1819_v37, %v1564_v38  ;;  %v1571_v44 = vor.u32 %v1822_v40, %v1570_v39 }
  0x9d   : > { %1054 = vmatpush.bf16.msrb.mxu2 %v1854_v45  ;;  %1005 = vmatpush.bf16.msrb.mxu1 %v1846_v46  ;;  %v1823_v45 = vld [vmem:[%s2206_s8 + $0xcc] sm:$0xf]  ;;  %v1576_v46 = vld [vmem:[%s2206_s8 + $0xdc] sm:$0xf0] }
  0x9e   : > { %v1579_v53 = vor.u32 %v1823_v45, %v1576_v46 }
  0x9f   : > { %1103 = vmatpush.bf16.msrb.mxu3 %v1862_v47  ;;  %1152 = vmatpush.bf16.msrb.mxu0 %v1870_v48  ;;  %v1582_v47 = vld [vmem:[%s2206_s8 + $0xd0] sm:$0xf]  ;;  %v1826_v48 = vld [vmem:[%s2206_s8 + $0xe0] sm:$0xf0] }
  0xa0   : > { %1006 = vmatmul.bf16.vlgmr.msrb.gmra.mxu1 %v1479_v57  ;;  %1055 = vmatmul.bf16.vlgmr.msrb.gmra.mxu2 %v1483_v58  ;;  %v1583_v54 = vor.u32 %v1826_v48, %v1582_v47  ;;  %v1828_v57 = vld [vmem:[%s2206_s8 + $0xf4] sm:$0xf]  ;;  %v1596_v58 = vld [vmem:[%s2206_s8 + $0x104] sm:$0xf0] }
  0xa1   : > { %v1599_v1 = vor.u32 %v1828_v57, %v1596_v58 }
  0xa2   : > { %1104 = vmatmul.bf16.vlgmr.msrb.gmra.mxu3 %v1487_v59  ;;  %1153 = vmatmul.bf16.vlgmr.msrb.gmra.mxu0 %v1491_v60  ;;  %v1602_v59 = vld [vmem:[%s2206_s8 + $0xf8] sm:$0xf]  ;;  %v1831_v60 = vld [vmem:[%s2206_s8 + $0x108] sm:$0xf0] }
  0xa3   : > { %v1603_v2 = vor.u32 %v1831_v60, %v1602_v59 }
  0xb0   : > { %1011 = vmatmul.bf16.gmra.mxu1 %v1499_v5  ;;  %1060 = vmatmul.bf16.gmra.mxu2 %v1503_v6  ;;  %v1611_v5 = vor.u32 %v1832_v0, %v1610_v63 }
  0xb2   : > { %1109 = vmatmul.bf16.gmra.mxu3 %v1507_v7  ;;  %1158 = vmatmul.bf16.gmra.mxu0 %v1511_v8 }
  0xc0   : > { %1016 = vmatmul.bf16.gmra.mxu1 %v1519_v17  ;;  %1065 = vmatmul.bf16.gmra.mxu2 %v1523_v18  ;;  %v1630_v17 = vld [vmem:[%s2206_s8 + $0x128] sm:$0xf]  ;;  %v1837_v18 = vld [vmem:[%s2206_s8 + $0x138] sm:$0xf0] }
  0xc1   : > { %v1631_v25 = vor.u32 %v1837_v18, %v1630_v17 }
  0xc2   : > { %1114 = vmatmul.bf16.gmra.mxu3 %v1527_v19  ;;  %1163 = vmatmul.bf16.gmra.mxu0 %v1531_v20 }
  0xd0   : > { %1021 = vmatmul.bf16.gmra.mxu1 %v1539_v29  ;;  %1070 = vmatmul.bf16.gmra.mxu2 %v1543_v30 }
  0xd2   : > { %1119 = vmatmul.bf16.gmra.mxu3 %v1547_v31  ;;  %1168 = vmatmul.bf16.gmra.mxu0 %v1551_v32 }
  0xe0   : > { %1026 = vmatmul.bf16.gmra.mxu1 %v1559_v41  ;;  %1075 = vmatmul.bf16.gmra.mxu2 %v1563_v42  ;;  %v357_v42 = vld [vmem:[#allocation2 + $0x30] sm:$0xff] }
  0xe2   : > { %1124 = vmatmul.bf16.gmra.mxu3 %v1567_v43  ;;  %1173 = vmatmul.bf16.gmra.mxu0 %v1571_v44 }
  0xf0   : > { %1031 = vmatmul.bf16.gmra.mxu1 %v1579_v53  ;;  %1080 = vmatmul.bf16.gmra.mxu2 %v1583_v54 }
  0xf2   : > { %1129 = vmatmul.bf16.gmra.mxu3 %v1587_v55  ;;  %1178 = vmatmul.bf16.gmra.mxu0 %v1591_v56 }
  0xfd   : > { %v2321_v3 = vpop.f32.mrf.mxu1 }
  0xff   : > { %v958_v6 = vpop.f32.mrf.mxu0 }
 0x100   : > { %1036 = vmatmul.bf16.gmra.mxu1 %v1599_v1  ;;  %1085 = vmatmul.bf16.gmra.mxu2 %v1603_v2 }
 0x102   : > { %1134 = vmatmul.bf16.gmra.mxu3 %v1607_v4  ;;  %1183 = vmatmul.bf16.gmra.mxu0 %v1611_v5 }
 0x103   : > { %v2323_v7 = vpop.f32.mrf.mxu2 }
 0x105   : > { %v2325_v8 = vpop.f32.mrf.mxu3  ;;  %v2327_v9 = vpop.f32.mrf.mxu1 }
 0x107   : > { %v960_v10 = vpop.f32.mrf.mxu0 }
 0x10b   : > { %v2337_v19 = vpop.f32.mrf.mxu2 }
 0x10d   : > { %v2339_v20 = vpop.f32.mrf.mxu3  ;;  %v2341_v23 = vpop.f32.mrf.mxu1 }
 0x10f   : > { %v963_v26 = vpop.f32.mrf.mxu0 }
 0x110   : > { %1041 = vmatmul.bf16.gmra.mxu1 %v1619_v21  ;;  %1090 = vmatmul.bf16.gmra.mxu2 %v1623_v22 }
 0x112   : > { %1139 = vmatmul.bf16.gmra.mxu3 %v1627_v24  ;;  %1188 = vmatmul.bf16.gmra.mxu0 %v1631_v25  ;;  %v361_v25 = vld [vmem:[#allocation2 + $0x50] sm:$0xff] }
 0x113   : > { %v2343_v27 = vpop.f32.mrf.mxu2 }
 0x115   : > { %v2345_v28 = vpop.f32.mrf.mxu3  ;;  %v2347_v29 = vpop.f32.mrf.mxu1 }
 0x117   : > { %v965_v30 = vpop.f32.mrf.mxu0 }
 0x11b   : > { %v2349_v31 = vpop.f32.mrf.mxu2 }
 0x11d   : > { %v2351_v32 = vpop.f32.mrf.mxu3  ;;  %v1007_v33 = vpop.f32.mrf.mxu1 }
 0x11e   : > { %v1008_v35 = vadd.f32 %v1007_v33, %v958_v6 }
 0x11f   : > { %v1154_v34 = vpop.f32.mrf.mxu0 }
 0x123   : > { %v1056_v36 = vpop.f32.mrf.mxu2 }
 0x124   : > { %v1057_v37 = vadd.f32 %v1056_v36, %v1008_v35 }
 0x125   : > { %v1105_v38 = vpop.f32.mrf.mxu3  ;;  %v1009_v39 = vpop.f32.mrf.mxu1 }
 0x126   : > { %v1106_v40 = vadd.f32 %v1105_v38, %v1057_v37  ;;  %v1010_v45 = vadd.f32 %v1009_v39, %v960_v10 }
 0x127   : > { %v1156_v41 = vpop.f32.mrf.mxu0 }
 0x128   : > { %v1155_v43 = vadd.f32 %v1154_v34, %v1106_v40 }
 0x12a   : > { %v1194_v44 = vadd.f32 %v1155_v43, %v357_v42 }
 0x12b   : > { %v1058_v46 = vpop.f32.mrf.mxu2 }
 0x12c   : > { %1210 = vst [vmem:[#allocation2 + $0x30] sm:$0xff] %v1194_v44  ;;  %v1059_v47 = vadd.f32 %v1058_v46, %v1010_v45 }
 0x12d   : > { %v1107_v48 = vpop.f32.mrf.mxu3  ;;  %v1012_v49 = vpop.f32.mrf.mxu1 }
 0x12e   : > { %v1108_v50 = vadd.f32 %v1107_v48, %v1059_v47  ;;  %v1013_v55 = vadd.f32 %v1012_v49, %v963_v26 }
 0x12f   : > { %v1159_v51 = vpop.f32.mrf.mxu0 }
 0x130   : > { %v1157_v53 = vadd.f32 %v1156_v41, %v1108_v50 }
 0x132   : > { %v1195_v54 = vadd.f32 %v1157_v53, %v358_v52 }
 0x133   : > { %v1061_v56 = vpop.f32.mrf.mxu2 }
 0x134   : > { %1211 = vst [vmem:[#allocation2] sm:$0xff] %v1195_v54  ;;  %v1062_v57 = vadd.f32 %v1061_v56, %v1013_v55 }
 0x135   : > { %v1110_v58 = vpop.f32.mrf.mxu3  ;;  %v1014_v59 = vpop.f32.mrf.mxu1 }
 0x136   : > { %v1111_v60 = vadd.f32 %v1110_v58, %v1062_v57  ;;  %v1015_v1 = vadd.f32 %v1014_v59, %v965_v30 }
 0x137   : > { %v1161_v61 = vpop.f32.mrf.mxu0 }
 0x138   : > { %v1160_v63 = vadd.f32 %v1159_v51, %v1111_v60 }
 0x13a   : > { %v1196_v0 = vadd.f32 %v1160_v63, %v359_v62 }
 0x13b   : > { %v1063_v2 = vpop.f32.mrf.mxu2 }
 0x13c   : > { %1212 = vst [vmem:[#allocation2 + $0x58] sm:$0xff] %v1196_v0  ;;  %v1064_v4 = vadd.f32 %v1063_v2, %v1015_v1 }
 0x13d   : > { %v1112_v5 = vpop.f32.mrf.mxu3  ;;  %v1017_v6 = vpop.f32.mrf.mxu1 }
 0x13e   : > { %v1113_v10 = vadd.f32 %v1112_v5, %v1064_v4  ;;  %v1018_v15 = vadd.f32 %v1017_v6, %v2321_v3  ;;  %v362_v3 = vld [vmem:[#allocation2 + $0x68] sm:$0xff] }
 0x13f   : > { %v1164_v11 = vpop.f32.mrf.mxu0 }
 0x140   : > { %v1162_v13 = vadd.f32 %v1161_v61, %v1113_v10 }
 0x142   : > { %v1197_v14 = vadd.f32 %v1162_v13, %v360_v12 }
 0x143   : > { %v1066_v16 = vpop.f32.mrf.mxu2 }
 0x144   : > { %1213 = vst [vmem:[#allocation2 + $0x18] sm:$0xff] %v1197_v14  ;;  %v1067_v17 = vadd.f32 %v1066_v16, %v1018_v15 }
 0x145   : > { %v1115_v18 = vpop.f32.mrf.mxu3  ;;  %v1019_v21 = vpop.f32.mrf.mxu1 }
 0x146   : > { %v1116_v22 = vadd.f32 %v1115_v18, %v1067_v17  ;;  %v1020_v33 = vadd.f32 %v1019_v21, %v2327_v9  ;;  %v363_v9 = vld [vmem:[#allocation2 + $0x8] sm:$0xff] }
 0x147   : > { %v1166_v24 = vpop.f32.mrf.mxu0 }
 0x148   : > { %v1165_v26 = vadd.f32 %v1164_v11, %v1116_v22 }
 0x14a   : > { %v1198_v30 = vadd.f32 %v1165_v26, %v361_v25 }
 0x14b   : > { %v1068_v34 = vpop.f32.mrf.mxu2 }
 0x14c   : > { %1214 = vst [vmem:[#allocation2 + $0x50] sm:$0xff] %v1198_v30  ;;  %v1069_v35 = vadd.f32 %v1068_v34, %v1020_v33  ;;  %v367_v30 = vld [vmem:[#allocation2 + $0x10] sm:$0xff] }
 0x14d   : > { %v1117_v36 = vpop.f32.mrf.mxu3  ;;  %v1022_v37 = vpop.f32.mrf.mxu1 }
 0x14e   : > { %v1118_v38 = vadd.f32 %v1117_v36, %v1069_v35  ;;  %v1023_v42 = vadd.f32 %v1022_v37, %v2341_v23  ;;  %v364_v23 = vld [vmem:[#allocation2 + $0x48] sm:$0xff] }
 0x14f   : > { %v1169_v39 = vpop.f32.mrf.mxu0 }
 0x150   : > { %v1167_v40 = vadd.f32 %v1166_v24, %v1118_v38 }
 0x152   : > { %v1199_v41 = vadd.f32 %v1167_v40, %v362_v3  ;;  %v368_v40 = vld [vmem:[#allocation2 + $0x38] sm:$0xff] }
 0x153   : > { %v1071_v43 = vpop.f32.mrf.mxu2 }
 0x154   : > { %1215 = vst [vmem:[#allocation2 + $0x68] sm:$0xff] %v1199_v41  ;;  %v1072_v44 = vadd.f32 %v1071_v43, %v1023_v42 }
 0x155   : > { %v1120_v45 = vpop.f32.mrf.mxu3  ;;  %v1024_v46 = vpop.f32.mrf.mxu1 }
 0x156   : > { %v1121_v47 = vadd.f32 %v1120_v45, %v1072_v44  ;;  %v1025_v51 = vadd.f32 %v1024_v46, %v2347_v29  ;;  %v365_v29 = vld [vmem:[#allocation2 + $0x40] sm:$0xff] }
 0x157   : > { %v1171_v48 = vpop.f32.mrf.mxu0 }
 0x158   : > { %v1170_v49 = vadd.f32 %v1169_v39, %v1121_v47 }
 0x15a   : > { %v1200_v50 = vadd.f32 %v1170_v49, %v363_v9  ;;  %v369_v9 = vld [vmem:[#allocation2 + $0x60] sm:$0xff] }
 0x15b   : > { %v1073_v52 = vpop.f32.mrf.mxu2 }
 0x15c   : > { %1216 = vst [vmem:[#allocation2 + $0x8] sm:$0xff] %v1200_v50  ;;  %v1074_v53 = vadd.f32 %v1073_v52, %v1025_v51 }
 0x15d   : > { %v1122_v54 = vpop.f32.mrf.mxu3  ;;  %v1027_v55 = vpop.f32.mrf.mxu1 }
 0x15e   : > { %v1123_v56 = vadd.f32 %v1122_v54, %v1074_v53  ;;  %v1028_v60 = vadd.f32 %v1027_v55, %v2323_v7  ;;  %v366_v7 = vld [vmem:[#allocation2 + $0x20] sm:$0xff] }
 0x15f   : > { %v1174_v57 = vpop.f32.mrf.mxu0 }
 0x160   : > { %v1172_v58 = vadd.f32 %v1171_v48, %v1123_v56 }
 0x162   : > { %v1201_v59 = vadd.f32 %v1172_v58, %v364_v23 }
 0x163   : > { %v1076_v61 = vpop.f32.mrf.mxu2 }
 0x164   : > { %1217 = vst [vmem:[#allocation2 + $0x48] sm:$0xff] %v1201_v59  ;;  %v1077_v62 = vadd.f32 %v1076_v61, %v1028_v60 }
 0x165   : > { %v1125_v63 = vpop.f32.mrf.mxu3  ;;  %v1029_v0 = vpop.f32.mrf.mxu1 }
 0x166   : > { %v1126_v1 = vadd.f32 %v1125_v63, %v1077_v62  ;;  %v1030_v6 = vadd.f32 %v1029_v0, %v2337_v19  ;;  %v371_v0 = vld [vmem:[#allocation2 + $0x78] sm:$0xff] }
 0x167   : > { %v1176_v2 = vpop.f32.mrf.mxu0 }
 0x168   : > { %v1175_v4 = vadd.f32 %v1174_v57, %v1126_v1  ;;  %v370_v57 = vld [vmem:[#allocation2 + $0x70] sm:$0xff] }
 0x16a   : > { %v1202_v5 = vadd.f32 %v1175_v4, %v365_v29 }
 0x16b   : > { %v1078_v10 = vpop.f32.mrf.mxu2 }
 0x16c   : > { %1218 = vst [vmem:[#allocation2 + $0x40] sm:$0xff] %v1202_v5  ;;  %v1079_v11 = vadd.f32 %v1078_v10, %v1030_v6 }
 0x16d   : > { %v1127_v12 = vpop.f32.mrf.mxu3  ;;  %v1032_v13 = vpop.f32.mrf.mxu1 }
 0x16e   : > { %v1128_v14 = vadd.f32 %v1127_v12, %v1079_v11  ;;  %v1033_v18 = vadd.f32 %v1032_v13, %v2343_v27  ;;  %v372_v12 = vld [vmem:[#allocation2 + $0x28] sm:$0xff] }
 0x16f   : > { %v1179_v15 = vpop.f32.mrf.mxu0 }
 0x170   : > { %v1177_v16 = vadd.f32 %v1176_v2, %v1128_v14 }
 0x172   : > { %v1203_v17 = vadd.f32 %v1177_v16, %v366_v7 }
 0x173   : > { %v1081_v21 = vpop.f32.mrf.mxu2 }
 0x174   : > { %1219 = vst [vmem:[#allocation2 + $0x20] sm:$0xff] %v1203_v17  ;;  %v1082_v22 = vadd.f32 %v1081_v21, %v1033_v18 }
 0x175   : > { %v1130_v24 = vpop.f32.mrf.mxu3  ;;  %v1034_v25 = vpop.f32.mrf.mxu1 }
 0x176   : > { %v1131_v26 = vadd.f32 %v1130_v24, %v1082_v22  ;;  %v1035_v35 = vadd.f32 %v1034_v25, %v2349_v31 }
 0x177   : > { %v1181_v19 = vpop.f32.mrf.mxu0 }
 0x178   : > { %v1180_v33 = vadd.f32 %v1179_v15, %v1131_v26 }
 0x17a   : > { %v1204_v34 = vadd.f32 %v1180_v33, %v367_v30 }
 0x17b   : > { %v1083_v36 = vpop.f32.mrf.mxu2 }
 0x17c   : > { %1220 = vst [vmem:[#allocation2 + $0x10] sm:$0xff] %v1204_v34  ;;  %v1084_v37 = vadd.f32 %v1083_v36, %v1035_v35 }
 0x17d   : > { %v1132_v38 = vpop.f32.mrf.mxu3  ;;  %v1037_v39 = vpop.f32.mrf.mxu1 }
 0x17e   : > { %v1133_v3 = vadd.f32 %v1132_v38, %v1084_v37  ;;  %v1038_v43 = vadd.f32 %v1037_v39, %v2325_v8 }
 0x17f   : > { %v1184_v41 = vpop.f32.mrf.mxu0 }
 0x180   : > { %v1182_v27 = vadd.f32 %v1181_v19, %v1133_v3 }
 0x182   : > { %v1205_v42 = vadd.f32 %v1182_v27, %v368_v40 }
 0x183   : > { %v1086_v44 = vpop.f32.mrf.mxu2 }
 0x184   : > { %1221 = vst [vmem:[#allocation2 + $0x38] sm:$0xff] %v1205_v42  ;;  %v1087_v45 = vadd.f32 %v1086_v44, %v1038_v43 }
 0x185   : > { %v1135_v46 = vpop.f32.mrf.mxu3  ;;  %v1039_v47 = vpop.f32.mrf.mxu1 }
 0x186   : > { %v1136_v48 = vadd.f32 %v1135_v46, %v1087_v45  ;;  %v1040_v50 = vadd.f32 %v1039_v47, %v2339_v20 }
 0x187   : > { %v1186_v51 = vpop.f32.mrf.mxu0 }
 0x188   : > { %v1185_v31 = vadd.f32 %v1184_v41, %v1136_v48 }
 0x18a   : > { %v1206_v49 = vadd.f32 %v1185_v31, %v369_v9 }
 0x18b   : > { %v1088_v52 = vpop.f32.mrf.mxu2 }
 0x18c   : > { %1222 = vst [vmem:[#allocation2 + $0x60] sm:$0xff] %v1206_v49  ;;  %v1089_v53 = vadd.f32 %v1088_v52, %v1040_v50 }
 0x18d   : > { %v1137_v54 = vpop.f32.mrf.mxu3  ;;  %v1042_v55 = vpop.f32.mrf.mxu1 }
 0x18e   : > { %v1138_v56 = vadd.f32 %v1137_v54, %v1089_v53  ;;  %v1043_v58 = vadd.f32 %v1042_v55, %v2345_v28 }
 0x18f   : > { %v1189_v62 = vpop.f32.mrf.mxu0 }
 0x190   : > { %v1187_v8 = vadd.f32 %v1186_v51, %v1138_v56 }
 0x192   : > { %v1207_v23 = vadd.f32 %v1187_v8, %v370_v57 }
 0x193   : > { %v1091_v59 = vpop.f32.mrf.mxu2 }
 0x194   : > { %1223 = vst [vmem:[#allocation2 + $0x70] sm:$0xff] %v1207_v23  ;;  %v1092_v60 = vadd.f32 %v1091_v59, %v1043_v58 }
 0x195   : > { %v1140_v61 = vpop.f32.mrf.mxu3  ;;  %v1044_v20 = vpop.f32.mrf.mxu1 }
 0x196   : > { %v1141_v63 = vadd.f32 %v1140_v61, %v1092_v60  ;;  %v1045_v29 = vadd.f32 %v1044_v20, %v2351_v32 }
 0x197   : > { %v1191_v11 = vpop.f32.mrf.mxu0 }
 0x198   : > { %v1190_v1 = vadd.f32 %v1189_v62, %v1141_v63 }
 0x19a   : > { %v1208_v2 = vadd.f32 %v1190_v1, %v371_v0 }
 0x19b   : > { %v1093_v4 = vpop.f32.mrf.mxu2 }
 0x19c   : > { %1224 = vst [vmem:[#allocation2 + $0x78] sm:$0xff] %v1208_v2  ;;  %v1094_v5 = vadd.f32 %v1093_v4, %v1045_v29 }
 0x19d   : > { %v1142_v6 = vpop.f32.mrf.mxu3 }
 0x19e   : > { %v1143_v10 = vadd.f32 %v1142_v6, %v1094_v5 }
 0x1a0   : > { %v1192_v28 = vadd.f32 %v1191_v11, %v1143_v10  ;;  %1229 = sbr.rel (%p1792_p11) target bundleno = 446 (0x1be), region = 66 }
 0x1a2   : > { %v1209_v13 = vadd.f32 %v1192_v28, %v372_v12 }
 0x1a4   : > { %1225 = vst [vmem:[#allocation2 + $0x28] sm:$0xff] %v1209_v13 }
 0x1a5   : > { %v1230_v14 = vld [vmem:[#allocation2 + $0x30] sm:$0xff]  ;;  %v1231_v15 = vld [vmem:[#allocation2] sm:$0xff]  ;;  %v1232_v32 = vld [vmem:[#allocation2 + $0x58] sm:$0xff] }
 0x1a6   : > { %v2369_v7 = vld [vmem:[%s2429_s2] ss:$0 sm:$0xff]  ;;  %v1233_v16 = vld [vmem:[#allocation2 + $0x18] sm:$0xff]  ;;  %v1234_v17 = vld [vmem:[#allocation2 + $0x50] sm:$0xff] }
 0x1a7   : > { %v1235_v18 = vld [vmem:[#allocation2 + $0x68] sm:$0xff]  ;;  %v1250_v22 = vadd.f32 %v2369_v7, %v1230_v14  ;;  %v1251_v24 = vadd.f32 %v2369_v7, %v1231_v15  ;;  %v1252_v25 = vadd.f32 %v2369_v7, %v1232_v32  ;;  %v1253_v26 = vadd.f32 %v2369_v7, %v1233_v16  ;;  %v1238_v27 = vld [vmem:[#allocation2 + $0x40] sm:$0xff]  ;;  %v1240_v46 = vld [vmem:[#allocation2 + $0x10] sm:$0xff] }
 0x1a8   : > { %v1236_v21 = vld [vmem:[#allocation2 + $0x8] sm:$0xff]  ;;  %v1254_v19 = vadd.f32 %v2369_v7, %v1234_v17  ;;  %v1255_v33 = vadd.f32 %v2369_v7, %v1235_v18  ;;  %v1239_v45 = vld [vmem:[#allocation2 + $0x20] sm:$0xff]  ;;  %v1241_v47 = vld [vmem:[#allocation2 + $0x38] sm:$0xff]  ;;  %v1258_v51 = vadd.f32 %v2369_v7, %v1238_v27  ;;  %v1260_v54 = vadd.f32 %v2369_v7, %v1240_v46 }
 0x1a9   : > { %v1237_v30 = vld [vmem:[#allocation2 + $0x48] sm:$0xff]  ;;  %v1256_v34 = vadd.f32 %v2369_v7, %v1236_v21  ;;  %vm1266_vm0 = vcmp.gt.f32.partialorder %v1250_v22, 0.0  ;;  %vm1267_vm1 = vcmp.gt.f32.partialorder %v1251_v24, 0.0  ;;  %v1282_v36 = vmul.f32 0.01, %v1250_v22  ;;  %v1242_v56 = vld [vmem:[#allocation2 + $0x60] sm:$0xff] }
 0x1aa   : > { %v1257_v35 = vadd.f32 %v2369_v7, %v1237_v30  ;;  %v1283_v37 = vmul.f32 0.01, %v1251_v24  ;;  %vm1268_vm2 = vcmp.gt.f32.partialorder %v1252_v25, 0.0  ;;  %vm1269_vm3 = vcmp.gt.f32.partialorder %v1253_v26, 0.0  ;;  %v1243_v58 = vld [vmem:[#allocation2 + $0x70] sm:$0xff]  ;;  %v1244_v0 = vld [vmem:[#allocation2 + $0x78] sm:$0xff] }
 0x1ab   : > { %v1284_v38 = vmul.f32 0.01, %v1252_v25  ;;  %v1285_v39 = vmul.f32 0.01, %v1253_v26  ;;  %v1298_v3 = vsel %vm1266_vm0, %v1250_v22, %v1282_v36  ;;  %vm1270_vm4 = vcmp.gt.f32.partialorder %v1254_v19, 0.0  ;;  %v1245_v4 = vld [vmem:[#allocation2 + $0x28] sm:$0xff] }
 0x1ac   : > { %v1299_v40 = vsel %vm1267_vm1, %v1251_v24, %v1283_v37  ;;  %vm1271_vm5 = vcmp.gt.f32.partialorder %v1255_v33, 0.0  ;;  %v1286_v44 = vmul.f32 0.01, %v1254_v19  ;;  %v1287_v9 = vmul.f32 0.01, %v1255_v33 }
 0x1ad   : > { %v1881_v41 = vpack.c.bf16 %v1299_v40, %v1298_v3  ;;  %v1300_v42 = vsel %vm1268_vm2, %v1252_v25, %v1284_v38  ;;  %v1301_v43 = vsel %vm1269_vm3, %v1253_v26, %v1285_v39  ;;  %vm1272_vm6 = vcmp.gt.f32.partialorder %v1256_v34, 0.0 }
 0x1ae   : > { %v1886_v48 = vpack.c.bf16 %v1301_v43, %v1300_v42  ;;  %vm1273_vm7 = vcmp.gt.f32.partialorder %v1257_v35, 0.0  ;;  %v1302_v31 = vsel %vm1270_vm4, %v1254_v19, %v1286_v44  ;;  %v1288_v49 = vmul.f32 0.01, %v1256_v34 }
 0x1af   : > { %1882 = vst [vmem:[%s2430_s3] sm:$0xff] %v1881_v41   ;;  %v1289_v50 = vmul.f32 0.01, %v1257_v35  ;;  %v1303_v52 = vsel %vm1271_vm5, %v1255_v33, %v1287_v9  ;;  %v1259_v53 = vadd.f32 %v2369_v7, %v1239_v45  ;;  %v1261_v55 = vadd.f32 %v2369_v7, %v1241_v47 }
 0x1b0   : > { %1918 = vst [vmem:[%s2430_s3 + $0x8] sm:$0xff] %v1886_v48   ;;  %v1891_v57 = vpack.c.bf16 %v1303_v52, %v1302_v31  ;;  %v1304_v8 = vsel %vm1272_vm6, %v1256_v34, %v1288_v49  ;;  %vm1274_vm8 = vcmp.gt.f32.partialorder %v1258_v51, 0.0  ;;  %v1290_v60 = vmul.f32 0.01, %v1258_v51 }
 0x1b1   : > { %v1305_v23 = vsel %vm1273_vm7, %v1257_v35, %v1289_v50  ;;  %vm1275_vm9 = vcmp.gt.f32.partialorder %v1259_v53, 0.0  ;;  %v1291_v61 = vmul.f32 0.01, %v1259_v53  ;;  %vm1276_vm10 = vcmp.gt.f32.partialorder %v1260_v54, 0.0 }
 0x1b2   : > { %v1896_v59 = vpack.c.bf16 %v1305_v23, %v1304_v8  ;;  %1919 = vst [vmem:[%s2430_s3 + $0x10] sm:$0xff] %v1891_v57   ;;  %vm1277_vm11 = vcmp.gt.f32.partialorder %v1261_v55, 0.0  ;;  %v1292_v62 = vmul.f32 0.01, %v1260_v54  ;;  %v1262_v63 = vadd.f32 %v2369_v7, %v1242_v56 }
 0x1b3   : > { %v1306_v20 = vsel %vm1274_vm8, %v1258_v51, %v1290_v60  ;;  %v1307_v1 = vsel %vm1275_vm9, %v1259_v53, %v1291_v61  ;;  %v1293_v2 = vmul.f32 0.01, %v1261_v55  ;;  %v1263_v29 = vadd.f32 %v2369_v7, %v1243_v58 }
 0x1b4   : > { %1920 = vst [vmem:[%s2430_s3 + $0x18] sm:$0xff] %v1896_v59   ;;  %v1901_v5 = vpack.c.bf16 %v1307_v1, %v1306_v20  ;;  %v1308_v6 = vsel %vm1276_vm10, %v1260_v54, %v1292_v62  ;;  %vm1278_vm12 = vcmp.gt.f32.partialorder %v1262_v63, 0.0  ;;  %v1294_v10 = vmul.f32 0.01, %v1262_v63 }
 0x1b5   : > { %v1309_v11 = vsel %vm1277_vm11, %v1261_v55, %v1293_v2  ;;  %vm1279_vm13 = vcmp.gt.f32.partialorder %v1263_v29, 0.0  ;;  %v1295_v12 = vmul.f32 0.01, %v1263_v29  ;;  %v1264_v28 = vadd.f32 %v2369_v7, %v1244_v0 }
 0x1b6   : > { %1921 = vst [vmem:[%s2430_s3 + $0x20] sm:$0xff] %v1901_v5   ;;  %v1906_v13 = vpack.c.bf16 %v1309_v11, %v1308_v6  ;;  %v1310_v14 = vsel %vm1278_vm12, %v1262_v63, %v1294_v10  ;;  %v1265_v15 = vadd.f32 %v2369_v7, %v1245_v4 }
 0x1b7   : > { %v1311_v32 = vsel %vm1279_vm13, %v1263_v29, %v1295_v12  ;;  %vm1280_vm14 = vcmp.gt.f32.partialorder %v1264_v28, 0.0  ;;  %v1296_v16 = vmul.f32 0.01, %v1264_v28 }
 0x1b8   : > { %1922 = vst [vmem:[%s2430_s3 + $0x28] sm:$0xff] %v1906_v13   ;;  %v1911_v17 = vpack.c.bf16 %v1311_v32, %v1310_v14  ;;  %vm1281_vm15 = vcmp.gt.f32.partialorder %v1265_v15, 0.0  ;;  %v1297_v18 = vmul.f32 0.01, %v1265_v15 }
 0x1b9   : > { %v1312_v21 = vsel %vm1280_vm14, %v1264_v28, %v1296_v16 }
 0x1ba   : > { %1923 = vst [vmem:[%s2430_s3 + $0x30] sm:$0xff] %v1911_v17   ;;  %v1313_v22 = vsel %vm1281_vm15, %v1265_v15, %v1297_v18 }
 0x1bb   : > { %v1916_v24 = vpack.c.bf16 %v1313_v22, %v1312_v21 }
 0x1bd   : > { %1924 = vst [vmem:[%s2430_s3 + $0x38] sm:$0xff] %v1916_v24  }
 0x1be PF: > { %s13_s16 = sadd.s32 1, %s2031_s16   ;;  %s2431_s12 = smov %s2019_s13 }
 0x1bf   : > { %p10_p12 = scmp.ge.s32.totalorder %s13_s16, 7   ;;  %s2432_s13 = smov %s2089_s20 }
 0x1c0   : > { %s2433_s14 = smov %s2027_s15  ;;  %s2434_s15 = smov %s2436_s17 }
 0x1c1   :  { %12 = sbr.rel (!%p10_p12) target bundleno = 3 (0x3), region = 110 }

// kernel: discriminator_mnist_forward.6
= control target key start
LH: loop header
LB: loop body
LE: loop exit
PB: predicated region body
PF: predicated region fallthrough
CT: control target
= control target key end

     0   :  { %s1780_s12 = smov 0   ;;  %s1782_s13 = smov 0   ;;  %s2082_s0 = inlined_call_operand.vmem [shape: bf16[32,3200], index: 0, kind: input, shape index: {}]   ;;  %s2083_s1 = inlined_call_operand.vmem [shape: bf16[3200,256], index: 1, kind: input, shape index: {}]   ;;  %s2084_s2 = inlined_call_operand.vmem [shape: f32[1,256], index: 2, kind: input, shape index: {}]   ;;  %s2085_s3 = inlined_call_operand.vmem [shape: bf16[32,256], index: 3, kind: output, shape index: {}]  }
   0x1   :  { %s1784_s14 = smov 0   ;;  %s1786_s15 = smov 0  }
   0x2   :  { %s1788_s16 = smov 0  }
   0x3 LB: > { %s22_s17 = sadd.s32 1, %s1753_s15  ;;  %p41_p1 = scmp.ne.s32.totalorder %s1745_s13, %s1741_s12  ;;  %s1757_s16 = sphi %s1788_s16, %s13_s16   ;;  %s1753_s15 = sphi %s1786_s15, %s2089_s15   ;;  %s1749_s14 = sphi %s1784_s14, %s2088_s14   ;;  %s1745_s13 = sphi %s1782_s13, %s2087_s13   ;;  %s1741_s12 = sphi %s1780_s12, %s2086_s12  }
   0x4   : > { %p23_p0 = scmp.ge.s32.totalorder %s22_s17, 5  ;;  %p42_p2 = scmp.eq.s32.totalorder %s1757_s16, 0 }
   0x5   : > { %s34_s19 = sadd.s32 1, %s1745_s13  ;;  %p1189_p5 = scmp.ge.s32.totalorder %s1757_s16, 5 }
   0x6   : > { %s2091_s17 = smov (%p23_p0, %s22_s17), 0  ;;  %p43_p3 = por %p42_p2, %p41_p1 }
   0x7   : > { %s30_s18 = ssub.s32 %s1753_s15, %s2091_s17  ;;  %143 = sbr.rel (%p1189_p5) target bundleno = 29 (0x1d), region = 20 }
   0x8   : > { %p32_p4 = scmp.eq.s32.totalorder %s30_s18, 0 }
   0xa   : > { %s1815_s20 = scalar_select %p32_p4, %s1745_s13, %s34_s19  }
   0xc   : > { %146 = sbr.rel (!%p43_p3) target bundleno = 29 (0x1d), region = 24  ;;  %s148_s21 = sand.u32 (%p43_p3), 1, %s1745_s13  }
   0xd   : > { %s1568_s22 = smul.u32 (%p43_p3), 20, %s1753_s15 }
   0xe   : > { %s1676_s23 = smul.u32 (%p43_p3), 80, %s148_s21 }
   0xf   : > { %s156_s26 = scalar_lea.vmem (%p43_p3), %s2082_s0, %s1568_s22 }
  0x10   : > { %v171_v0 = vld [vmem:[%s156_s26] sm:$0xff] (%p43_p3)  ;;  %v173_v1 = vld [vmem:[%s156_s26 + $0x8] sm:$0xff] (%p43_p3)  ;;  %s150_s27 = scalar_lea.vmem (%p43_p3), [#allocation3], %s1676_s23  ;;  %v181_v5 = vld [vmem:[%s156_s26 + $0xd0] sm:$0xff] (%p43_p3) }
  0x11   : > { %v175_v2 = vld [vmem:[%s156_s26 + $0x64] sm:$0xff]  ;;  %172 = vst [vmem:[%s150_s27] sm:$0xff] %v171_v0  ;;  %v177_v3 = vld [vmem:[%s156_s26 + $0x6c] sm:$0xff]  ;;  %v185_v7 = vld [vmem:[%s156_s26 + $0x134] sm:$0xff] }
  0x12   : > { %174 = vst [vmem:[%s150_s27 + $0x8] sm:$0xff] %v173_v1  ;;  %v179_v4 = vld [vmem:[%s156_s26 + $0xc8] sm:$0xff]  ;;  %v1191_v8 = vld [vmem:[%s156_s26 + $0x10] sm:$0xf]  ;;  %v1193_v9 = vld [vmem:[%s156_s26 + $0x74] sm:$0xf] }
  0x13   : > { %176 = vst [vmem:[%s150_s27 + $0x14] sm:$0xff] %v175_v2  ;;  %v183_v6 = vld [vmem:[%s156_s26 + $0x12c] sm:$0xff]  ;;  %v1195_v10 = vld [vmem:[%s156_s26 + $0xd8] sm:$0xf]  ;;  %v1197_v11 = vld [vmem:[%s156_s26 + $0x13c] sm:$0xf] }
  0x14   : > { %178 = vst [vmem:[%s150_s27 + $0x1c] sm:$0xff] %v177_v3 }
  0x15   : > { %180 = vst [vmem:[%s150_s27 + $0x28] sm:$0xff] %v179_v4 }
  0x16   : > { %182 = vst [vmem:[%s150_s27 + $0x30] sm:$0xff] %v181_v5 }
  0x17   : > { %184 = vst [vmem:[%s150_s27 + $0x3c] sm:$0xff] %v183_v6 }
  0x18   : > { %186 = vst [vmem:[%s150_s27 + $0x44] sm:$0xff] %v185_v7 }
  0x19   : > { %1192 = vst [vmem:[%s150_s27 + $0x10] sm:$0xf] %v1191_v8 }
  0x1a   : > { %1194 = vst [vmem:[%s150_s27 + $0x24] sm:$0xf] %v1193_v9 }
  0x1b   : > { %1196 = vst [vmem:[%s150_s27 + $0x38] sm:$0xf] %v1195_v10 }
  0x1c   : > { %1198 = vst [vmem:[%s150_s27 + $0x4c] sm:$0xf] %v1197_v11 }
  0x1d PF: > { %p1199_p6 = scmp.ge.s32.totalorder %s1757_s16, 1  ;;  %p217_p7 = scmp.lt.s32.totalorder %s1757_s16, 6 }
  0x1f   : > { %p218_p8 = pnand %p1199_p6, %p217_p7 }
  0x20   : > { %s224_s28 = sand.u32 (!%p218_p8), 1, %s1741_s12   ;;  %s256_s29 = smul.u32 (!%p218_p8), 80, %s1749_s14 }
  0x21   : > { %221 = sbr.rel (%p218_p8) target bundleno = 316 (0x13c), region = 54  ;;  %p1202_p10 = scmp.ne.s32.totalorder (!%p218_p8), %s1749_s14, 0 }
  0x22   : > { %s1677_s30 = smul.u32 (!%p218_p8), 80, %s224_s28  ;;  %p257_p9 = scmp.lt.s32.totalorder (!%p218_p8), %s256_s29, 399 }
  0x24   : > { %s1832_s8 = scalar_lea.vmem (!%p218_p8), [#allocation3], %s1677_s30 }
  0x26   : > { %s2093_s29 = smov (!%p257_p9, %s256_s29), 399  ;;  %273 = sbr.rel (%p1202_p10) target bundleno = 52 (0x34), region = 62 }
  0x27   : > { %s1569_s4 = sshll.u32 %s2093_s29, 3 }
  0x28   : > { %s1830_s7 = scalar_lea.vmem %s2083_s1, %s1569_s4 }
  0x2b   : > { %v1759_v12 = vmov 0.0  }
  0x2c   : > { %274 = vst [vmem:[#allocation2 + $0x30] sm:$0xff] %v1759_v12 }
  0x2d   : > { %275 = vst [vmem:[#allocation2] sm:$0xff] %v1759_v12 }
  0x2e   : > { %276 = vst [vmem:[#allocation2 + $0x18] sm:$0xff] %v1759_v12 }
  0x2f   : > { %277 = vst [vmem:[#allocation2 + $0x10] sm:$0xff] %v1759_v12 }
  0x30   : > { %278 = vst [vmem:[#allocation2 + $0x8] sm:$0xff] %v1759_v12 }
  0x31   : > { %279 = vst [vmem:[#allocation2 + $0x20] sm:$0xff] %v1759_v12 }
  0x32   : > { %280 = vst [vmem:[#allocation2 + $0x28] sm:$0xff] %v1759_v12 }
  0x33   : > { %281 = vst [vmem:[#allocation2 + $0x38] sm:$0xff] %v1759_v12 }
  0x34 PF: > { %v1301_v13 = vld [vmem:[%s1830_s7 + $0x70] sm:$0xf]  ;;  %v1595_v14 = vld [vmem:[%s1830_s7 + $0x74] sm:$0xf0]  ;;  %v1293_v24 = vld [vmem:[%s1830_s7 + $0x60] sm:$0xf] }
  0x35   : > { %v1365_v15 = vld [vmem:[%s1830_s7 + $0xf0] sm:$0xf]  ;;  %v1302_v16 = vor.u32 %v1595_v14, %v1301_v13  ;;  %v1611_v17 = vld [vmem:[%s1830_s7 + $0xf4] sm:$0xf0]  ;;  %v1593_v26 = vld [vmem:[%s1830_s7 + $0x64] sm:$0xf0] }
  0x36   : > { %v1429_v18 = vld [vmem:[%s1830_s7 + $0x170] sm:$0xf]  ;;  %v1627_v19 = vld [vmem:[%s1830_s7 + $0x174] sm:$0xf0]  ;;  %v1366_v20 = vor.u32 %v1611_v17, %v1365_v15  ;;  %v1357_v27 = vld [vmem:[%s1830_s7 + $0xe0] sm:$0xf]  ;;  %v1294_v29 = vor.u32 %v1593_v26, %v1293_v24 }
  0x37   : > { %v1430_v21 = vor.u32 %v1627_v19, %v1429_v18  ;;  %v1493_v22 = vld [vmem:[%s1830_s7 + $0x1f0] sm:$0xf]  ;;  %v1643_v23 = vld [vmem:[%s1830_s7 + $0x1f4] sm:$0xf0]  ;;  %834 = vmatpush.bf16.msra.mxu0 %v1302_v16  ;;  %v1609_v28 = vld [vmem:[%s1830_s7 + $0xe4] sm:$0xf0] }
  0x38   : > { %v1494_v25 = vor.u32 %v1643_v23, %v1493_v22  ;;  %853 = vmatpush.bf16.msra.mxu1 %v1366_v20  ;;  %v1358_v30 = vor.u32 %v1609_v28, %v1357_v27  ;;  %v1421_v31 = vld [vmem:[%s1830_s7 + $0x160] sm:$0xf]  ;;  %v1625_v32 = vld [vmem:[%s1830_s7 + $0x164] sm:$0xf0]  ;;  %v1285_v36 = vld [vmem:[%s1830_s7 + $0x50] sm:$0xf] }
  0x39   : > { %872 = vmatpush.bf16.msra.mxu2 %v1430_v21  ;;  %v1485_v33 = vld [vmem:[%s1830_s7 + $0x1e0] sm:$0xf]  ;;  %v1422_v34 = vor.u32 %v1625_v32, %v1421_v31  ;;  %v1641_v35 = vld [vmem:[%s1830_s7 + $0x1e4] sm:$0xf0]  ;;  %v1591_v37 = vld [vmem:[%s1830_s7 + $0x54] sm:$0xf0] }
  0x3a   : > { %891 = vmatpush.bf16.msra.mxu3 %v1494_v25  ;;  %v1486_v38 = vor.u32 %v1641_v35, %v1485_v33  ;;  %v1349_v39 = vld [vmem:[%s1830_s7 + $0xd0] sm:$0xf]  ;;  %v1607_v40 = vld [vmem:[%s1830_s7 + $0xd4] sm:$0xf0]  ;;  %v1286_v42 = vor.u32 %v1591_v37, %v1285_v36  ;;  %v1277_v48 = vld [vmem:[%s1830_s7 + $0x40] sm:$0xf] }
  0x3b   : > { %v1413_v41 = vld [vmem:[%s1830_s7 + $0x150] sm:$0xf]  ;;  %835 = vmatpush.bf16.msra.mxu0 %v1294_v29  ;;  %v1623_v43 = vld [vmem:[%s1830_s7 + $0x154] sm:$0xf0]  ;;  %v1350_v46 = vor.u32 %v1607_v40, %v1349_v39  ;;  %v1589_v49 = vld [vmem:[%s1830_s7 + $0x44] sm:$0xf0] }
  0x3c   : > { %v1477_v44 = vld [vmem:[%s1830_s7 + $0x1d0] sm:$0xf]  ;;  %v1639_v45 = vld [vmem:[%s1830_s7 + $0x1d4] sm:$0xf0]  ;;  %854 = vmatpush.bf16.msra.mxu1 %v1358_v30  ;;  %v1414_v47 = vor.u32 %v1623_v43, %v1413_v41  ;;  %v1341_v50 = vld [vmem:[%s1830_s7 + $0xc0] sm:$0xf]  ;;  %v1278_v57 = vor.u32 %v1589_v49, %v1277_v48 }
  0x3d   : > { %873 = vmatpush.bf16.msra.mxu2 %v1422_v34  ;;  %v1478_v51 = vor.u32 %v1639_v45, %v1477_v44  ;;  %v1605_v52 = vld [vmem:[%s1830_s7 + $0xc4] sm:$0xf0]  ;;  %v1405_v53 = vld [vmem:[%s1830_s7 + $0x140] sm:$0xf]  ;;  %v1269_v60 = vld [vmem:[%s1830_s7 + $0x30] sm:$0xf] }
  0x3e   : > { %892 = vmatpush.bf16.msra.mxu3 %v1486_v38  ;;  %v1621_v54 = vld [vmem:[%s1830_s7 + $0x144] sm:$0xf0]  ;;  %v1469_v55 = vld [vmem:[%s1830_s7 + $0x1c0] sm:$0xf]  ;;  %v1342_v58 = vor.u32 %v1605_v52, %v1341_v50  ;;  %v1587_v61 = vld [vmem:[%s1830_s7 + $0x34] sm:$0xf0] }
  0x3f   : > { %v1637_v56 = vld [vmem:[%s1830_s7 + $0x1c4] sm:$0xf0]  ;;  %836 = vmatpush.bf16.msra.mxu0 %v1286_v42  ;;  %v1406_v59 = vor.u32 %v1621_v54, %v1405_v53  ;;  %v1333_v62 = vld [vmem:[%s1830_s7 + $0xb0] sm:$0xf]  ;;  %v1603_v0 = vld [vmem:[%s1830_s7 + $0xb4] sm:$0xf0]  ;;  %v1270_v5 = vor.u32 %v1587_v61, %v1269_v60 }
  0x40   : > { %855 = vmatpush.bf16.msra.mxu1 %v1350_v46  ;;  %v1470_v63 = vor.u32 %v1637_v56, %v1469_v55  ;;  %v1397_v1 = vld [vmem:[%s1830_s7 + $0x130] sm:$0xf]  ;;  %v1619_v2 = vld [vmem:[%s1830_s7 + $0x134] sm:$0xf0]  ;;  %v1334_v6 = vor.u32 %v1603_v0, %v1333_v62  ;;  %v1261_v8 = vld [vmem:[%s1830_s7 + $0x20] sm:$0xf] }
  0x41   : > { %874 = vmatpush.bf16.msra.mxu2 %v1414_v47  ;;  %v1461_v3 = vld [vmem:[%s1830_s7 + $0x1b0] sm:$0xf]  ;;  %v1635_v4 = vld [vmem:[%s1830_s7 + $0x1b4] sm:$0xf0]  ;;  %v1398_v7 = vor.u32 %v1619_v2, %v1397_v1  ;;  %v1585_v9 = vld [vmem:[%s1830_s7 + $0x24] sm:$0xf0] }
  0x42   : > { %893 = vmatpush.bf16.msra.mxu3 %v1478_v51  ;;  %v1325_v10 = vld [vmem:[%s1830_s7 + $0xa0] sm:$0xf]  ;;  %v1462_v11 = vor.u32 %v1635_v4, %v1461_v3  ;;  %v1601_v12 = vld [vmem:[%s1830_s7 + $0xa4] sm:$0xf0]  ;;  %v1262_v17 = vor.u32 %v1585_v9, %v1261_v8  ;;  %v1253_v20 = vld [vmem:[%s1830_s7 + $0x10] sm:$0xf] }
  0x43   : > { %837 = vmatpush.bf16.msra.mxu0 %v1278_v57  ;;  %v1389_v13 = vld [vmem:[%s1830_s7 + $0x120] sm:$0xf]  ;;  %v1617_v14 = vld [vmem:[%s1830_s7 + $0x124] sm:$0xf0]  ;;  %v1326_v18 = vor.u32 %v1601_v12, %v1325_v10  ;;  %v1583_v21 = vld [vmem:[%s1830_s7 + $0x14] sm:$0xf0] }
  0x44   : > { %856 = vmatpush.bf16.msra.mxu1 %v1342_v58  ;;  %v1453_v15 = vld [vmem:[%s1830_s7 + $0x1a0] sm:$0xf]  ;;  %v1633_v16 = vld [vmem:[%s1830_s7 + $0x1a4] sm:$0xf0]  ;;  %v1390_v19 = vor.u32 %v1617_v14, %v1389_v13  ;;  %v1317_v22 = vld [vmem:[%s1830_s7 + $0x90] sm:$0xf]  ;;  %v1254_v30 = vor.u32 %v1583_v21, %v1253_v20 }
  0x45   : > { %875 = vmatpush.bf16.msra.mxu2 %v1406_v59  ;;  %v1454_v23 = vor.u32 %v1633_v16, %v1453_v15  ;;  %v1599_v24 = vld [vmem:[%s1830_s7 + $0x94] sm:$0xf0]  ;;  %v1381_v25 = vld [vmem:[%s1830_s7 + $0x110] sm:$0xf]  ;;  %v1245_v29 = vld [vmem:[%s1830_s7] sm:$0xf] }
  0x46   : > { %894 = vmatpush.bf16.msra.mxu3 %v1470_v63  ;;  %v1615_v26 = vld [vmem:[%s1830_s7 + $0x114] sm:$0xf0]  ;;  %v1445_v27 = vld [vmem:[%s1830_s7 + $0x190] sm:$0xf]  ;;  %v1581_v31 = vld [vmem:[%s1830_s7 + $0x4] sm:$0xf0]  ;;  %v1318_v34 = vor.u32 %v1599_v24, %v1317_v22 }
  0x47   : > { %838 = vmatpush.bf16.msra.mxu0 %v1270_v5  ;;  %v1631_v28 = vld [vmem:[%s1830_s7 + $0x194] sm:$0xf0]  ;;  %v1309_v32 = vld [vmem:[%s1830_s7 + $0x80] sm:$0xf]  ;;  %v1597_v33 = vld [vmem:[%s1830_s7 + $0x84] sm:$0xf0]  ;;  %v1382_v35 = vor.u32 %v1615_v26, %v1381_v25  ;;  %v1246_v47 = vor.u32 %v1581_v31, %v1245_v29 }
  0x48   : > { %857 = vmatpush.bf16.msra.mxu1 %v1334_v6  ;;  %v1373_v36 = vld [vmem:[%s1830_s7 + $0x100] sm:$0xf]  ;;  %v1613_v37 = vld [vmem:[%s1830_s7 + $0x104] sm:$0xf0]  ;;  %v1446_v39 = vor.u32 %v1631_v28, %v1445_v27  ;;  %v1572_v42 = vld [vmem:[%s1832_s8 + $0x10] sm:$0xf0]  ;;  %v1310_v51 = vor.u32 %v1597_v33, %v1309_v32 }
  0x49   : > { %876 = vmatpush.bf16.msra.mxu2 %v1398_v7  ;;  %v1437_v38 = vld [vmem:[%s1830_s7 + $0x180] sm:$0xf]  ;;  %v1629_v40 = vld [vmem:[%s1830_s7 + $0x184] sm:$0xf0]  ;;  %v1570_v43 = vld [vmem:[%s1832_s8 + $0x4] sm:$0xf]  ;;  %v1374_v52 = vor.u32 %v1613_v37, %v1373_v36 }
  0x4a   : > { %895 = vmatpush.bf16.msra.mxu3 %v1462_v11  ;;  %v1205_v41 = vld [vmem:[%s1832_s8] sm:$0xf]  ;;  %v1207_v44 = vld [vmem:[%s1832_s8 + $0x14] sm:$0xf0]  ;;  %v1610_v45 = vld [vmem:[%s1830_s7 + $0xf4] sm:$0xf]  ;;  %v1438_v56 = vor.u32 %v1629_v40, %v1437_v38 }
  0x4b   : > { %839 = vmatpush.bf16.msra.mxu0 %v1262_v17  ;;  %v1367_v46 = vld [vmem:[%s1830_s7 + $0xf8] sm:$0xf0]  ;;  %v1213_v48 = vld [vmem:[%s1832_s8 + $0x8] sm:$0xf]  ;;  %v1594_v49 = vld [vmem:[%s1830_s7 + $0x74] sm:$0xf]  ;;  %v1914_v61 = vor.u32 %v1572_v42, %v1205_v41  ;;  %v1919_v2 = vor.u32 %v1570_v43, %v1207_v44 }
  0x4c   : > { %858 = vmatpush.bf16.msra.mxu1 %v1326_v18  ;;  %v1303_v50 = vld [vmem:[%s1830_s7 + $0x78] sm:$0xf0]  ;;  %v1215_v55 = vld [vmem:[%s1832_s8 + $0x1c] sm:$0xf0]  ;;  %v1370_v57 = vor.u32 %v1610_v45, %v1367_v46  ;;  %v1659_v59 = vld [vmem:[%s1830_s7 + $0x274] sm:$0xf0] }
  0x4d   : > { %877 = vmatpush.bf16.msra.mxu2 %v1390_v19  ;;  %v1573_v53 = vld [vmem:[%s1832_s8 + $0x18] sm:$0xf0]  ;;  %v1571_v54 = vld [vmem:[%s1832_s8 + $0xc] sm:$0xf]  ;;  %v1557_v58 = vld [vmem:[%s1830_s7 + $0x270] sm:$0xf]  ;;  %v1306_v62 = vor.u32 %v1594_v49, %v1303_v50 }
  0x4e   : > { %896 = vmatpush.bf16.msra.mxu3 %v1454_v23  ;;  %v1626_v60 = vld [vmem:[%s1830_s7 + $0x174] sm:$0xf]  ;;  %v1431_v63 = vld [vmem:[%s1830_s7 + $0x178] sm:$0xf0]  ;;  %v1608_v0 = vld [vmem:[%s1830_s7 + $0xe4] sm:$0xf]  ;;  %v1921_v3 = vor.u32 %v1573_v53, %v1213_v48  ;;  %v1925_v6 = vor.u32 %v1571_v54, %v1215_v55  ;;  %v1558_v7 = vor.u32 %v1659_v59, %v1557_v58 }
  0x4f   : > { %840 = vmatpush.bf16.msra.mxu0 %v1254_v30  ;;  %v1359_v1 = vld [vmem:[%s1830_s7 + $0xe8] sm:$0xf0]  ;;  %v1592_v4 = vld [vmem:[%s1830_s7 + $0x64] sm:$0xf]  ;;  %v1434_v8 = vor.u32 %v1626_v60, %v1431_v63  ;;  %v1549_v10 = vld [vmem:[%s1830_s7 + $0x260] sm:$0xf] }
  0x50   : > { %859 = vmatpush.bf16.msra.mxu1 %v1318_v34  ;;  %v1295_v5 = vld [vmem:[%s1830_s7 + $0x68] sm:$0xf0]  ;;  %v1362_v9 = vor.u32 %v1608_v0, %v1359_v1  ;;  %v1657_v11 = vld [vmem:[%s1830_s7 + $0x264] sm:$0xf0]  ;;  %v1624_v12 = vld [vmem:[%s1830_s7 + $0x164] sm:$0xf] }
  0x51   : > { %878 = vmatpush.bf16.msra.mxu2 %v1382_v35  ;;  %v1298_v13 = vor.u32 %v1592_v4, %v1295_v5  ;;  %v1423_v14 = vld [vmem:[%s1830_s7 + $0x168] sm:$0xf0]  ;;  %v1606_v15 = vld [vmem:[%s1830_s7 + $0xd4] sm:$0xf]  ;;  %v1351_v16 = vld [vmem:[%s1830_s7 + $0xd8] sm:$0xf0]  ;;  %v1550_v19 = vor.u32 %v1657_v11, %v1549_v10 }
  0x52   : > { %897 = vmatpush.bf16.msra.mxu3 %v1446_v39  ;;  %v1590_v17 = vld [vmem:[%s1830_s7 + $0x54] sm:$0xf]  ;;  %v1287_v18 = vld [vmem:[%s1830_s7 + $0x58] sm:$0xf0]  ;;  %v1426_v20 = vor.u32 %v1624_v12, %v1423_v14  ;;  %v1354_v21 = vor.u32 %v1606_v15, %v1351_v16  ;;  %v1541_v22 = vld [vmem:[%s1830_s7 + $0x250] sm:$0xf] }
  0x53   : > { %841 = vmatpush.bf16.msra.mxu0 %v1246_v47  ;;  %v1655_v23 = vld [vmem:[%s1830_s7 + $0x254] sm:$0xf0]  ;;  %v1622_v24 = vld [vmem:[%s1830_s7 + $0x154] sm:$0xf]  ;;  %v1290_v25 = vor.u32 %v1590_v17, %v1287_v18  ;;  %v1415_v26 = vld [vmem:[%s1830_s7 + $0x158] sm:$0xf0] }
  0x54   : > { %860 = vmatpush.bf16.msra.mxu1 %v1310_v51  ;;  %v1604_v27 = vld [vmem:[%s1830_s7 + $0xc4] sm:$0xf]  ;;  %v1343_v28 = vld [vmem:[%s1830_s7 + $0xc8] sm:$0xf0]  ;;  %v1542_v31 = vor.u32 %v1655_v23, %v1541_v22  ;;  %v1533_v32 = vld [vmem:[%s1830_s7 + $0x240] sm:$0xf]  ;;  %v1418_v35 = vor.u32 %v1622_v24, %v1415_v26 }
  0x55   : > { %879 = vmatpush.bf16.msra.mxu2 %v1374_v52  ;;  %v1588_v29 = vld [vmem:[%s1830_s7 + $0x44] sm:$0xf]  ;;  %v1279_v30 = vld [vmem:[%s1830_s7 + $0x48] sm:$0xf0]  ;;  %v1653_v33 = vld [vmem:[%s1830_s7 + $0x244] sm:$0xf0]  ;;  %v1346_v36 = vor.u32 %v1604_v27, %v1343_v28 }
  0x56   : > { %898 = vmatpush.bf16.msra.mxu3 %v1438_v56  ;;  %842 = vmatmul.bf16.vlgmr.msra.gmra.mxu0 %v1914_v61  ;;  %v1620_v34 = vld [vmem:[%s1830_s7 + $0x144] sm:$0xf]  ;;  %v1407_v37 = vld [vmem:[%s1830_s7 + $0x148] sm:$0xf0]  ;;  %v1225_v38 = vld [vmem:[%s1832_s8 + $0x28] sm:$0xf]  ;;  %v1282_v40 = vor.u32 %v1588_v29, %v1279_v30  ;;  %v1534_v48 = vor.u32 %v1653_v33, %v1533_v32 }
  0x57   : > { %861 = vmatmul.bf16.vlgmr.msra.gmra.mxu1 %v1919_v2  ;;  %910 = vmatpush.bf16.msrb.mxu0 %v1558_v7  ;;  %v1577_v39 = vld [vmem:[%s1832_s8 + $0x38] sm:$0xf0]  ;;  %v1575_v41 = vld [vmem:[%s1832_s8 + $0x2c] sm:$0xf]  ;;  %v1227_v42 = vld [vmem:[%s1832_s8 + $0x3c] sm:$0xf0]  ;;  %v1410_v52 = vor.u32 %v1620_v34, %v1407_v37 }
  0x58   : > { %929 = vmatpush.bf16.msrb.mxu1 %v1306_v62  ;;  %880 = vmatmul.bf16.vlgmr.msra.gmra.mxu2 %v1921_v3  ;;  %v1602_v43 = vld [vmem:[%s1830_s7 + $0xb4] sm:$0xf]  ;;  %v1335_v44 = vld [vmem:[%s1830_s7 + $0xb8] sm:$0xf0]  ;;  %v1233_v45 = vld [vmem:[%s1832_s8 + $0x30] sm:$0xf]  ;;  %v1971_v63 = vor.u32 %v1575_v41, %v1227_v42 }
  0x59   : > { %948 = vmatpush.bf16.msrb.mxu2 %v1370_v57  ;;  %899 = vmatmul.bf16.vlgmr.msra.gmra.mxu3 %v1925_v6  ;;  %v1586_v46 = vld [vmem:[%s1830_s7 + $0x34] sm:$0xf]  ;;  %v1271_v47 = vld [vmem:[%s1830_s7 + $0x38] sm:$0xf0]  ;;  %v1235_v51 = vld [vmem:[%s1832_s8 + $0x44] sm:$0xf0]  ;;  %v1338_v53 = vor.u32 %v1602_v43, %v1335_v44  ;;  %v1966_v57 = vor.u32 %v1577_v39, %v1225_v38 }
  0x5a   : > { %967 = vmatpush.bf16.msrb.mxu3 %v1434_v8  ;;  %v1578_v49 = vld [vmem:[%s1832_s8 + $0x40] sm:$0xf0]  ;;  %v1576_v50 = vld [vmem:[%s1832_s8 + $0x34] sm:$0xf]  ;;  %v1525_v54 = vld [vmem:[%s1830_s7 + $0x230] sm:$0xf]  ;;  %v1274_v58 = vor.u32 %v1586_v46, %v1271_v47 }
  0x5b   : > { %911 = vmatpush.bf16.msrb.mxu0 %v1550_v19  ;;  %v1651_v55 = vld [vmem:[%s1830_s7 + $0x234] sm:$0xf0]  ;;  %v1618_v56 = vld [vmem:[%s1830_s7 + $0x134] sm:$0xf]  ;;  %v1399_v59 = vld [vmem:[%s1830_s7 + $0x138] sm:$0xf0]  ;;  %v1973_v0 = vor.u32 %v1578_v49, %v1233_v45  ;;  %v1977_v5 = vor.u32 %v1576_v50, %v1235_v51 }
  0x5c   : > { %930 = vmatpush.bf16.msrb.mxu1 %v1298_v13  ;;  %v1600_v60 = vld [vmem:[%s1830_s7 + $0xa4] sm:$0xf]  ;;  %v1327_v62 = vld [vmem:[%s1830_s7 + $0xa8] sm:$0xf0]  ;;  %v1526_v7 = vor.u32 %v1651_v55, %v1525_v54  ;;  %v1402_v8 = vor.u32 %v1618_v56, %v1399_v59  ;;  %v1517_v10 = vld [vmem:[%s1830_s7 + $0x220] sm:$0xf] }
  0x5d   : > { %949 = vmatpush.bf16.msrb.mxu2 %v1362_v9  ;;  %v1584_v1 = vld [vmem:[%s1830_s7 + $0x24] sm:$0xf]  ;;  %v1263_v4 = vld [vmem:[%s1830_s7 + $0x28] sm:$0xf0]  ;;  %v1330_v9 = vor.u32 %v1600_v60, %v1327_v62  ;;  %v1649_v11 = vld [vmem:[%s1830_s7 + $0x224] sm:$0xf0] }
  0x5e   : > { %968 = vmatpush.bf16.msrb.mxu3 %v1426_v20  ;;  %v1616_v12 = vld [vmem:[%s1830_s7 + $0x124] sm:$0xf]  ;;  %v1266_v13 = vor.u32 %v1584_v1, %v1263_v4  ;;  %v1391_v14 = vld [vmem:[%s1830_s7 + $0x128] sm:$0xf0]  ;;  %v1598_v15 = vld [vmem:[%s1830_s7 + $0x94] sm:$0xf]  ;;  %v1518_v19 = vor.u32 %v1649_v11, %v1517_v10 }
  0x5f   : > { %912 = vmatpush.bf16.msrb.mxu0 %v1542_v31  ;;  %v1319_v16 = vld [vmem:[%s1830_s7 + $0x98] sm:$0xf0]  ;;  %v1582_v17 = vld [vmem:[%s1830_s7 + $0x14] sm:$0xf]  ;;  %v1509_v20 = vld [vmem:[%s1830_s7 + $0x210] sm:$0xf] }
  0x60   : > { %931 = vmatpush.bf16.msrb.mxu1 %v1290_v25  ;;  %v1255_v18 = vld [vmem:[%s1830_s7 + $0x18] sm:$0xf0]  ;;  %v1322_v22 = vor.u32 %v1598_v15, %v1319_v16  ;;  %v1647_v23 = vld [vmem:[%s1830_s7 + $0x214] sm:$0xf0]  ;;  %v1614_v24 = vld [vmem:[%s1830_s7 + $0x114] sm:$0xf] }
  0x61   : > { %950 = vmatpush.bf16.msrb.mxu2 %v1354_v21  ;;  %v1394_v21 = vor.u32 %v1616_v12, %v1391_v14  ;;  %v1383_v25 = vld [vmem:[%s1830_s7 + $0x118] sm:$0xf0]  ;;  %v1258_v26 = vor.u32 %v1582_v17, %v1255_v18  ;;  %v1596_v27 = vld [vmem:[%s1830_s7 + $0x84] sm:$0xf]  ;;  %v1311_v28 = vld [vmem:[%s1830_s7 + $0x88] sm:$0xf0]  ;;  %v1510_v33 = vor.u32 %v1647_v23, %v1509_v20 }
  0x62   : > { %969 = vmatpush.bf16.msrb.mxu3 %v1418_v35  ;;  %v1580_v29 = vld [vmem:[%s1830_s7 + $0x4] sm:$0xf]  ;;  %v1247_v30 = vld [vmem:[%s1830_s7 + $0x8] sm:$0xf0]  ;;  %v1642_v31 = vld [vmem:[%s1830_s7 + $0x1f4] sm:$0xf]  ;;  %v1314_v37 = vor.u32 %v1596_v27, %v1311_v28 }
  0x63   : > { %913 = vmatpush.bf16.msrb.mxu0 %v1534_v48  ;;  %v1495_v32 = vld [vmem:[%s1830_s7 + $0x1f8] sm:$0xf0]  ;;  %v1658_v34 = vld [vmem:[%s1830_s7 + $0x274] sm:$0xf]  ;;  %v1501_v38 = vld [vmem:[%s1830_s7 + $0x200] sm:$0xf] }
  0x64   : > { %932 = vmatpush.bf16.msrb.mxu1 %v1282_v40  ;;  %v1559_v35 = vld [vmem:[%s1830_s7 + $0x278] sm:$0xf0]  ;;  %v1645_v39 = vld [vmem:[%s1830_s7 + $0x204] sm:$0xf0]  ;;  %v1250_v40 = vor.u32 %v1580_v29, %v1247_v30  ;;  %v1612_v41 = vld [vmem:[%s1830_s7 + $0x104] sm:$0xf]  ;;  %v1498_v43 = vor.u32 %v1642_v31, %v1495_v32 }
  0x65   : > { %951 = vmatpush.bf16.msrb.mxu2 %v1346_v36  ;;  %v1386_v36 = vor.u32 %v1614_v24, %v1383_v25  ;;  %v1375_v42 = vld [vmem:[%s1830_s7 + $0x108] sm:$0xf0]  ;;  %v1562_v44 = vor.u32 %v1658_v34, %v1559_v35  ;;  %v1640_v45 = vld [vmem:[%s1830_s7 + $0x1e4] sm:$0xf]  ;;  %v1502_v47 = vor.u32 %v1645_v39, %v1501_v38  ;;  %v1221_v48 = vld [vmem:[%s1832_s8 + $0x10] sm:$0xf] }
  0x66   : > { %970 = vmatpush.bf16.msrb.mxu3 %v1410_v52  ;;  %847 = vmatmul.bf16.gmra.mxu0 %v1966_v57  ;;  %v1487_v46 = vld [vmem:[%s1830_s7 + $0x1e8] sm:$0xf0]  ;;  %v1574_v49 = vld [vmem:[%s1832_s8 + $0x20] sm:$0xf0]  ;;  %v1378_v50 = vor.u32 %v1612_v41, %v1375_v42  ;;  %v1479_v56 = vld [vmem:[%s1830_s7 + $0x1d8] sm:$0xf0] }
  0x67   : > { %866 = vmatmul.bf16.gmra.mxu1 %v1971_v63  ;;  %914 = vmatpush.bf16.msrb.mxu0 %v1526_v7  ;;  %v1490_v51 = vor.u32 %v1640_v45, %v1487_v46  ;;  %v1656_v52 = vld [vmem:[%s1830_s7 + $0x264] sm:$0xf]  ;;  %v2013_v54 = vor.u32 %v1574_v49, %v1221_v48  ;;  %v1638_v55 = vld [vmem:[%s1830_s7 + $0x1d4] sm:$0xf]  ;;  %v1543_v62 = vld [vmem:[%s1830_s7 + $0x258] sm:$0xf0] }
  0x68   : > { %933 = vmatpush.bf16.msrb.mxu1 %v1274_v58  ;;  %885 = vmatmul.bf16.gmra.mxu2 %v1973_v0  ;;  %v1482_v59 = vor.u32 %v1638_v55, %v1479_v56  ;;  %v1654_v60 = vld [vmem:[%s1830_s7 + $0x254] sm:$0xf]  ;;  %v1636_v1 = vld [vmem:[%s1830_s7 + $0x1c4] sm:$0xf]  ;;  %v1471_v4 = vld [vmem:[%s1830_s7 + $0x1c8] sm:$0xf0] }
  0x69   : > { %952 = vmatpush.bf16.msrb.mxu2 %v1338_v53  ;;  %904 = vmatmul.bf16.gmra.mxu3 %v1977_v5  ;;  %v1551_v53 = vld [vmem:[%s1830_s7 + $0x268] sm:$0xf0]  ;;  %v1546_v7 = vor.u32 %v1654_v60, %v1543_v62  ;;  %v1634_v10 = vld [vmem:[%s1830_s7 + $0x1b4] sm:$0xf]  ;;  %v1463_v11 = vld [vmem:[%s1830_s7 + $0x1b8] sm:$0xf0] }
  0x6a   : > { %971 = vmatpush.bf16.msrb.mxu3 %v1402_v8  ;;  %v1554_v58 = vor.u32 %v1656_v52, %v1551_v53  ;;  %v1474_v8 = vor.u32 %v1636_v1, %v1471_v4  ;;  %v1650_v12 = vld [vmem:[%s1830_s7 + $0x234] sm:$0xf]  ;;  %v1632_v14 = vld [vmem:[%s1830_s7 + $0x1a4] sm:$0xf]  ;;  %v1455_v15 = vld [vmem:[%s1830_s7 + $0x1a8] sm:$0xf0] }
  0x6b   : > { %915 = vmatpush.bf16.msrb.mxu0 %v1518_v19  ;;  %v1241_v16 = vld [vmem:[%s1832_s8 + $0x38] sm:$0xf]  ;;  %v1579_v17 = vld [vmem:[%s1832_s8 + $0x48] sm:$0xf0]  ;;  %v1458_v19 = vor.u32 %v1632_v14, %v1455_v15  ;;  %v1648_v20 = vld [vmem:[%s1830_s7 + $0x224] sm:$0xf] }
  0x6c   : > { %934 = vmatpush.bf16.msrb.mxu1 %v1266_v13  ;;  %v1527_v13 = vld [vmem:[%s1830_s7 + $0x238] sm:$0xf0]  ;;  %v1630_v23 = vld [vmem:[%s1830_s7 + $0x194] sm:$0xf]  ;;  %v1628_v29 = vld [vmem:[%s1830_s7 + $0x184] sm:$0xf] }
  0x6d   : > { %953 = vmatpush.bf16.msrb.mxu2 %v1330_v9  ;;  %v1652_v9 = vld [vmem:[%s1830_s7 + $0x244] sm:$0xf]  ;;  %v1530_v18 = vor.u32 %v1650_v12, %v1527_v13  ;;  %v1447_v24 = vld [vmem:[%s1830_s7 + $0x198] sm:$0xf0]  ;;  %v1646_v27 = vld [vmem:[%s1830_s7 + $0x214] sm:$0xf] }
  0x6e   : > { %972 = vmatpush.bf16.msrb.mxu3 %v1394_v21  ;;  %v1519_v21 = vld [vmem:[%s1830_s7 + $0x228] sm:$0xf0]  ;;  %v1511_v28 = vld [vmem:[%s1830_s7 + $0x218] sm:$0xf0]  ;;  %p1563_p11 = scmp.ne.s32.totalorder %s1749_s14, 4 }
  0x6f   : > { %916 = vmatpush.bf16.msrb.mxu0 %v1510_v33  ;;  %v1522_v25 = vor.u32 %v1648_v20, %v1519_v21  ;;  %v1439_v30 = vld [vmem:[%s1830_s7 + $0x188] sm:$0xf0]  ;;  %v1514_v31 = vor.u32 %v1646_v27, %v1511_v28  ;;  %v1644_v33 = vld [vmem:[%s1830_s7 + $0x204] sm:$0xf]  ;;  %v284_v1 = vld [vmem:[#allocation2 + $0x18] sm:$0xff] }
  0x70   : > { %935 = vmatpush.bf16.msrb.mxu1 %v1258_v26  ;;  %v1450_v26 = vor.u32 %v1630_v23, %v1447_v24  ;;  %v1442_v32 = vor.u32 %v1628_v29, %v1439_v30  ;;  %v1503_v34 = vld [vmem:[%s1830_s7 + $0x208] sm:$0xf0] }
  0x71   : > { %954 = vmatpush.bf16.msrb.mxu2 %v1322_v22  ;;  %v1242_v22 = vor.u32 %v1579_v17, %v1241_v16  ;;  %v1506_v35 = vor.u32 %v1644_v33, %v1503_v34  ;;  %v288_v21 = vld [vmem:[#allocation2 + $0x28] sm:$0xff]  ;;  %v283_v34 = vld [vmem:[#allocation2] sm:$0xff] }
  0x72   : > { %973 = vmatpush.bf16.msrb.mxu3 %v1386_v36 }
  0x73   : > { %917 = vmatpush.bf16.msrb.mxu0 %v1502_v47 }
  0x74   : > { %936 = vmatpush.bf16.msrb.mxu1 %v1250_v40 }
  0x75   : > { %955 = vmatpush.bf16.msrb.mxu2 %v1314_v37 }
  0x76   : > { %974 = vmatpush.bf16.msrb.mxu3 %v1378_v50  ;;  %918 = vmatmul.bf16.vlgmr.msrb.gmra.mxu0 %v2013_v54  ;;  %v282_v50 = vld [vmem:[#allocation2 + $0x30] sm:$0xff] }
  0x77   : > { %986 = vmatpush.bf16.msra.mxu0 %v1498_v43  ;;  %937 = vmatmul.bf16.vlgmr.msrb.gmra.mxu1 %v1914_v61  ;;  %v1535_v61 = vld [vmem:[%s1830_s7 + $0x248] sm:$0xf0] }
  0x78   : > { %1005 = vmatpush.bf16.msra.mxu1 %v1562_v44  ;;  %956 = vmatmul.bf16.vlgmr.msrb.gmra.mxu2 %v1919_v2  ;;  %v1538_v2 = vor.u32 %v1652_v9, %v1535_v61 }
  0x79   : > { %1660 = vmatpush.bf16.msra.mxu2 %v1498_v43  ;;  %975 = vmatmul.bf16.vlgmr.msrb.gmra.mxu3 %v1921_v3  ;;  %v1466_v3 = vor.u32 %v1634_v10, %v1463_v11 }
  0x7a   : > { %1668 = vmatpush.bf16.msra.mxu3 %v1562_v44 }
  0x7b   : > { %987 = vmatpush.bf16.msra.mxu0 %v1490_v51 }
  0x7c   : > { %1006 = vmatpush.bf16.msra.mxu1 %v1554_v58 }
  0x7d   : > { %1661 = vmatpush.bf16.msra.mxu2 %v1490_v51 }
  0x7e   : > { %1669 = vmatpush.bf16.msra.mxu3 %v1554_v58 }
  0x7f   : > { %988 = vmatpush.bf16.msra.mxu0 %v1482_v59 }
  0x80   : > { %1007 = vmatpush.bf16.msra.mxu1 %v1546_v7 }
  0x81   : > { %1662 = vmatpush.bf16.msra.mxu2 %v1482_v59 }
  0x82   : > { %1670 = vmatpush.bf16.msra.mxu3 %v1546_v7 }
  0x83   : > { %989 = vmatpush.bf16.msra.mxu0 %v1474_v8 }
  0x84   : > { %1008 = vmatpush.bf16.msra.mxu1 %v1538_v2 }
  0x85   : > { %1663 = vmatpush.bf16.msra.mxu2 %v1474_v8 }
  0x86   : > { %1671 = vmatpush.bf16.msra.mxu3 %v1538_v2  ;;  %923 = vmatmul.bf16.gmra.mxu0 %v1242_v22 }
  0x87   : > { %990 = vmatpush.bf16.msra.mxu0 %v1466_v3  ;;  %942 = vmatmul.bf16.gmra.mxu1 %v1966_v57 }
  0x88   : > { %1009 = vmatpush.bf16.msra.mxu1 %v1530_v18  ;;  %961 = vmatmul.bf16.gmra.mxu2 %v1971_v63 }
  0x89   : > { %1664 = vmatpush.bf16.msra.mxu2 %v1466_v3  ;;  %980 = vmatmul.bf16.gmra.mxu3 %v1973_v0  ;;  %v286_v3 = vld [vmem:[#allocation2 + $0x8] sm:$0xff] }
  0x8a   : > { %1672 = vmatpush.bf16.msra.mxu3 %v1530_v18 }
  0x8b   : > { %991 = vmatpush.bf16.msra.mxu0 %v1458_v19 }
  0x8c   : > { %1010 = vmatpush.bf16.msra.mxu1 %v1522_v25 }
  0x8d   : > { %1665 = vmatpush.bf16.msra.mxu2 %v1458_v19 }
  0x8e   : > { %1673 = vmatpush.bf16.msra.mxu3 %v1522_v25 }
  0x8f   : > { %992 = vmatpush.bf16.msra.mxu0 %v1450_v26 }
  0x90   : > { %1011 = vmatpush.bf16.msra.mxu1 %v1514_v31 }
  0x91   : > { %1666 = vmatpush.bf16.msra.mxu2 %v1450_v26 }
  0x92   : > { %1674 = vmatpush.bf16.msra.mxu3 %v1514_v31 }
  0x93   : > { %993 = vmatpush.bf16.msra.mxu0 %v1442_v32 }
  0x94   : > { %1012 = vmatpush.bf16.msra.mxu1 %v1506_v35 }
  0x95   : > { %1667 = vmatpush.bf16.msra.mxu2 %v1442_v32 }
  0x96   : > { %1675 = vmatpush.bf16.msra.mxu3 %v1506_v35  ;;  %994 = vmatmul.bf16.vlgmr.msra.gmra.mxu0 %v1925_v6 }
  0x97   : > { %1013 = vmatmul.bf16.vlgmr.msra.gmra.mxu1 %v2013_v54 }
  0x98   : > { %999 = vmatmul.bf16.vlgmr.msra.gmra.mxu2 %v1977_v5 }
  0x99   : > { %1018 = vmatmul.bf16.vlgmr.msra.gmra.mxu3 %v1242_v22 }
  0xd3   : > { %v843_v57 = vpop.f32.mrf.mxu0 }
  0xd4   : > { %v862_v63 = vpop.f32.mrf.mxu1 }
  0xd5   : > { %v863_v44 = vadd.f32 %v862_v63, %v843_v57 }
  0xdb   : > { %v881_v0 = vpop.f32.mrf.mxu2  ;;  %v845_v37 = vpop.f32.mrf.mxu0 }
  0xdc   : > { %v900_v36 = vpop.f32.mrf.mxu3  ;;  %v864_v38 = vpop.f32.mrf.mxu1  ;;  %v882_v47 = vadd.f32 %v881_v0, %v863_v44 }
  0xdd   : > { %v865_v53 = vadd.f32 %v864_v38, %v845_v37 }
  0xde   : > { %v901_v49 = vadd.f32 %v900_v36, %v882_v47 }
  0xe3   : > { %v883_v39 = vpop.f32.mrf.mxu2  ;;  %v848_v41 = vpop.f32.mrf.mxu0 }
  0xe4   : > { %v902_v40 = vpop.f32.mrf.mxu3  ;;  %v867_v42 = vpop.f32.mrf.mxu1  ;;  %v884_v55 = vadd.f32 %v883_v39, %v865_v53 }
  0xe5   : > { %v868_v59 = vadd.f32 %v867_v42, %v848_v41  ;;  %v287_v41 = vld [vmem:[#allocation2 + $0x20] sm:$0xff] }
  0xe6   : > { %v903_v58 = vadd.f32 %v902_v40, %v884_v55 }
  0xeb   : > { %v886_v43 = vpop.f32.mrf.mxu2  ;;  %v850_v46 = vpop.f32.mrf.mxu0 }
  0xec   : > { %v905_v45 = vpop.f32.mrf.mxu3  ;;  %v869_v6 = vpop.f32.mrf.mxu1  ;;  %v887_v9 = vadd.f32 %v886_v43, %v868_v59 }
  0xed   : > { %v870_v14 = vadd.f32 %v869_v6, %v850_v46 }
  0xee   : > { %v906_v10 = vadd.f32 %v905_v45, %v887_v9  ;;  %v285_v45 = vld [vmem:[#allocation2 + $0x10] sm:$0xff] }
  0xf3   : > { %v888_v48 = vpop.f32.mrf.mxu2  ;;  %v919_v51 = vpop.f32.mrf.mxu0 }
  0xf4   : > { %v907_v5 = vpop.f32.mrf.mxu3  ;;  %v938_v52 = vpop.f32.mrf.mxu1  ;;  %v920_v54 = vadd.f32 %v919_v51, %v901_v49  ;;  %v889_v16 = vadd.f32 %v888_v48, %v870_v14  ;;  %v289_v51 = vld [vmem:[#allocation2 + $0x38] sm:$0xff] }
  0xf6   : > { %v1024_v56 = vadd.f32 %v920_v54, %v282_v50  ;;  %v908_v18 = vadd.f32 %v907_v5, %v889_v16 }
  0xf8   : > { %1032 = vst [vmem:[#allocation2 + $0x30] sm:$0xff] %v1024_v56 }
  0xfb   : > { %v957_v60 = vpop.f32.mrf.mxu2  ;;  %v921_v4 = vpop.f32.mrf.mxu0 }
  0xfc   : > { %v976_v62 = vpop.f32.mrf.mxu3  ;;  %v940_v7 = vpop.f32.mrf.mxu1  ;;  %v922_v8 = vadd.f32 %v921_v4, %v903_v58  ;;  %v958_v25 = vadd.f32 %v957_v60, %v938_v52 }
  0xfe   : > { %v1026_v61 = vadd.f32 %v922_v8, %v284_v1  ;;  %v977_v27 = vadd.f32 %v976_v62, %v958_v25 }
 0x100   : > { %1034 = vst [vmem:[#allocation2 + $0x18] sm:$0xff] %v1026_v61 }
 0x103   : > { %v959_v11 = vpop.f32.mrf.mxu2  ;;  %v924_v12 = vpop.f32.mrf.mxu0 }
 0x104   : > { %v978_v2 = vpop.f32.mrf.mxu3  ;;  %v943_v13 = vpop.f32.mrf.mxu1  ;;  %v925_v15 = vadd.f32 %v924_v12, %v906_v10  ;;  %v960_v35 = vadd.f32 %v959_v11, %v940_v7 }
 0x106   : > { %v1028_v17 = vadd.f32 %v925_v15, %v286_v3  ;;  %v979_v36 = vadd.f32 %v978_v2, %v960_v35 }
 0x108   : > { %1036 = vst [vmem:[#allocation2 + $0x8] sm:$0xff] %v1028_v17 }
 0x10b   : > { %v962_v19 = vpop.f32.mrf.mxu2  ;;  %v926_v22 = vpop.f32.mrf.mxu0 }
 0x10c   : > { %v981_v20 = vpop.f32.mrf.mxu3  ;;  %v945_v23 = vpop.f32.mrf.mxu1  ;;  %v927_v24 = vadd.f32 %v926_v22, %v908_v18  ;;  %v963_v33 = vadd.f32 %v962_v19, %v943_v13 }
 0x10e   : > { %v1030_v26 = vadd.f32 %v927_v24, %v288_v21  ;;  %v982_v0 = vadd.f32 %v981_v20, %v963_v33 }
 0x110   : > { %1038 = vst [vmem:[#allocation2 + $0x28] sm:$0xff] %v1030_v26 }
 0x113   : > { %v964_v28 = vpop.f32.mrf.mxu2  ;;  %v995_v30 = vpop.f32.mrf.mxu0 }
 0x114   : > { %v983_v29 = vpop.f32.mrf.mxu3  ;;  %v1014_v31 = vpop.f32.mrf.mxu1  ;;  %v996_v32 = vadd.f32 %v995_v30, %v977_v27  ;;  %v965_v43 = vadd.f32 %v964_v28, %v945_v23 }
 0x116   : > { %v1015_v57 = vadd.f32 %v1014_v31, %v996_v32  ;;  %v984_v49 = vadd.f32 %v983_v29, %v965_v43 }
 0x118   : > { %v1025_v63 = vadd.f32 %v1015_v57, %v283_v34 }
 0x11a   : > { %1033 = vst [vmem:[#allocation2] sm:$0xff] %v1025_v63 }
 0x11b   : > { %v1000_v37 = vpop.f32.mrf.mxu2  ;;  %v997_v40 = vpop.f32.mrf.mxu0 }
 0x11c   : > { %v1019_v38 = vpop.f32.mrf.mxu3  ;;  %v1001_v39 = vadd.f32 %v1000_v37, %v982_v0  ;;  %v998_v42 = vadd.f32 %v997_v40, %v979_v36  ;;  %v1016_v46 = vpop.f32.mrf.mxu1 }
 0x11e   : > { %v1020_v44 = vadd.f32 %v1019_v38, %v1001_v39  ;;  %v1017_v6 = vadd.f32 %v1016_v46, %v998_v42 }
 0x120   : > { %v1029_v47 = vadd.f32 %v1020_v44, %v287_v41  ;;  %v1027_v48 = vadd.f32 %v1017_v6, %v285_v45 }
 0x122   : > { %1037 = vst [vmem:[#allocation2 + $0x20] sm:$0xff] %v1029_v47 }
 0x123   : > { %1035 = vst [vmem:[#allocation2 + $0x10] sm:$0xff] %v1027_v48  ;;  %v1002_v5 = vpop.f32.mrf.mxu2 }
 0x124   : > { %v1003_v50 = vadd.f32 %v1002_v5, %v984_v49  ;;  %v1021_v52 = vpop.f32.mrf.mxu3 }
 0x126   : > { %v1022_v53 = vadd.f32 %v1021_v52, %v1003_v50  ;;  %1043 = sbr.rel (%p1563_p11) target bundleno = 316 (0x13c), region = 66 }
 0x128   : > { %v1031_v54 = vadd.f32 %v1022_v53, %v289_v51 }
 0x12a   : > { %1039 = vst [vmem:[#allocation2 + $0x38] sm:$0xff] %v1031_v54 }
 0x12b   : > { %v1044_v55 = vld [vmem:[#allocation2 + $0x30] sm:$0xff]  ;;  %v1045_v56 = vld [vmem:[#allocation2] sm:$0xff]  ;;  %v1046_v62 = vld [vmem:[#allocation2 + $0x18] sm:$0xff] }
 0x12c   : > { %v1052_v58 = vld [vmem:[%s2084_s2] sm:$0x3]  ;;  %v1047_v1 = vld [vmem:[#allocation2 + $0x10] sm:$0xff]  ;;  %v1048_v4 = vld [vmem:[#allocation2 + $0x8] sm:$0xff] }
 0x12d   : > { %v1054_v59 = vperm.slane %v1052_v58, 0  ;;  %v1055_v60 = vperm.slane %v1052_v58, 1  ;;  %v1049_v7 = vld [vmem:[#allocation2 + $0x20] sm:$0xff]  ;;  %v1050_v8 = vld [vmem:[#allocation2 + $0x28] sm:$0xff] }
 0x12f   : > { %v1058_v61 = vadd.f32 %v1054_v59, %v1044_v55  ;;  %v1059_v10 = vadd.f32 %v1055_v60, %v1045_v56  ;;  %v1060_v11 = vadd.f32 %v1054_v59, %v1046_v62  ;;  %v1061_v2 = vadd.f32 %v1055_v60, %v1047_v1 }
 0x130   : > { %v1062_v3 = vadd.f32 %v1054_v59, %v1048_v4  ;;  %v1063_v12 = vadd.f32 %v1055_v60, %v1049_v7  ;;  %v1064_v13 = vadd.f32 %v1054_v59, %v1050_v8 }
 0x131   : > { %v1051_v9 = vld [vmem:[#allocation2 + $0x38] sm:$0xff]  ;;  %vm1066_vm0 = vcmp.gt.f32.partialorder %v1058_v61, 0.0  ;;  %vm1067_vm1 = vcmp.gt.f32.partialorder %v1059_v10, 0.0  ;;  %v1074_v15 = vmul.f32 0.01, %v1058_v61  ;;  %vm1068_vm2 = vcmp.gt.f32.partialorder %v1060_v11, 0.0 }
 0x132   : > { %v1065_v14 = vadd.f32 %v1055_v60, %v1051_v9  ;;  %v1075_v16 = vmul.f32 0.01, %v1059_v10  ;;  %vm1069_vm3 = vcmp.gt.f32.partialorder %v1061_v2, 0.0  ;;  %v1076_v17 = vmul.f32 0.01, %v1060_v11 }
 0x133   : > { %v1077_v18 = vmul.f32 0.01, %v1061_v2  ;;  %v1082_v19 = vsel %vm1066_vm0, %v1058_v61, %v1074_v15  ;;  %vm1070_vm4 = vcmp.gt.f32.partialorder %v1062_v3, 0.0  ;;  %vm1071_vm5 = vcmp.gt.f32.partialorder %v1063_v12, 0.0 }
 0x134   : > { %v1083_v20 = vsel %vm1067_vm1, %v1059_v10, %v1075_v16  ;;  %v1084_v22 = vsel %vm1068_vm2, %v1060_v11, %v1076_v17  ;;  %v1078_v24 = vmul.f32 0.01, %v1062_v3  ;;  %v1079_v26 = vmul.f32 0.01, %v1063_v12 }
 0x135   : > { %v1090_v21 = vpack.c.bf16 %v1083_v20, %v1082_v19  ;;  %v1085_v23 = vsel %vm1069_vm3, %v1061_v2, %v1077_v18  ;;  %vm1072_vm6 = vcmp.gt.f32.partialorder %v1064_v13, 0.0  ;;  %vm1073_vm7 = vcmp.gt.f32.partialorder %v1065_v14, 0.0 }
 0x136   : > { %v1091_v25 = vpack.c.bf16 %v1085_v23, %v1084_v22  ;;  %v1086_v27 = vsel %vm1070_vm4, %v1062_v3, %v1078_v24  ;;  %v1080_v28 = vmul.f32 0.01, %v1064_v13  ;;  %v1081_v29 = vmul.f32 0.01, %v1065_v14 }
 0x137   : > { %1094 = vst [vmem:[%s2085_s3] sm:$0xff] %v1090_v21  ;;  %v1087_v30 = vsel %vm1071_vm5, %v1063_v12, %v1079_v26 }
 0x138   : > { %1095 = vst [vmem:[%s2085_s3 + $0x8] sm:$0xff] %v1091_v25  ;;  %v1092_v31 = vpack.c.bf16 %v1087_v30, %v1086_v27  ;;  %v1088_v32 = vsel %vm1072_vm6, %v1064_v13, %v1080_v28  ;;  %v1089_v33 = vsel %vm1073_vm7, %v1065_v14, %v1081_v29 }
 0x139   : > { %v1093_v34 = vpack.c.bf16 %v1089_v33, %v1088_v32 }
 0x13a   : > { %1096 = vst [vmem:[%s2085_s3 + $0x10] sm:$0xff] %v1092_v31 }
 0x13b   : > { %1097 = vst [vmem:[%s2085_s3 + $0x18] sm:$0xff] %v1093_v34 }
 0x13c PF: > { %s13_s16 = sadd.s32 1, %s1757_s16   ;;  %s2086_s12 = smov %s1745_s13 }
 0x13d   : > { %p10_p12 = scmp.ge.s32.totalorder %s13_s16, 7   ;;  %s2087_s13 = smov %s1815_s20 }
 0x13e   : > { %s2088_s14 = smov %s1753_s15  ;;  %s2089_s15 = smov %s2091_s17 }
 0x13f   :  { %12 = sbr.rel (!%p10_p12) target bundleno = 3 (0x3), region = 110 }

// kernel: discriminator_mnist_forward.7
= control target key start
LH: loop header
LB: loop body
LE: loop exit
PB: predicated region body
PF: predicated region fallthrough
CT: control target
= control target key end

     0   :  { %vm92_vm0 = vcmask 1041408   ;;  %vm94_vm1 = vcmask 1045508   ;;  %vm96_vm2 = vcmask 1043456   ;;  %vm286_vm3 = vcmask 1024   ;;  %s419_s2 = inlined_call_operand.<no memory space> [shape: f32[1,1], index: 2, kind: input, shape index: {}]   ;;  %s420_s1 = inlined_call_operand.vmem [shape: f32[1,4096], index: 1, kind: input, shape index: {}]   ;;  %s421_s0 = inlined_call_operand.vmem [shape: bf16[2,4096], index: 0, kind: input, shape index: {}]   ;;  %s422_s3 = inlined_call_operand.vmem [shape: f32[2,1], index: 3, kind: output, shape index: {}]  }
   0x1   :  { %v8_v0 = vstv %s419_s2  ;;  %v28_v1 = vld [vmem:[%s420_s1] sm:$0xff]  ;;  %v29_v12 = vld [vmem:[%s420_s1 + $0x8] sm:$0xff]  ;;  %v334_v33 = vld [vmem:[%s420_s1 + $0x10] sm:$0xff] }
   0x2   :  { %9 = vst [vmem:[#allocation2] sm:$0x1] %v8_v0  ;;  %v37_v2 = vperm.slane %v28_v1, 1  ;;  %v38_v3 = vperm.slane %v28_v1, 2  ;;  %v39_v4 = vperm.slane %v28_v1, 3  ;;  %v41_v5 = vperm.slane %v28_v1, 5 }
   0x3   :  { %v42_v6 = vperm.slane %v28_v1, 6  ;;  %v43_v7 = vperm.slane %v28_v1, 7  ;;  %v36_v8 = vperm.slane %v28_v1, 0  ;;  %v40_v9 = vperm.slane %v28_v1, 4  ;;  %v16_v17 = vld [vmem:[%s421_s0] sm:$0xff]  ;;  %v17_v43 = vld [vmem:[%s421_s0 + $0x8] sm:$0xff] }
   0x4   :  { %v68_v10 = vrot.slane %v37_v2, 6  ;;  %v69_v11 = vrot.slane %v38_v3, 4  ;;  %v70_v13 = vrot.slane %v39_v4, 2  ;;  %v71_v14 = vrot.slane %v41_v5, 6  ;;  %v344_v46 = vld [vmem:[%s420_s1 + $0x18] sm:$0xff] }
   0x5   :  { %v72_v15 = vrot.slane %v42_v6, 4  ;;  %v73_v16 = vrot.slane %v43_v7, 2  ;;  %v45_v18 = vperm.slane %v29_v12, 1  ;;  %v46_v19 = vperm.slane %v29_v12, 2 }
   0x6   :  { %v47_v20 = vperm.slane %v29_v12, 3  ;;  %v93_v21 = vsel %vm92_vm0, %v36_v8, %v68_v10  ;;  %v95_v22 = vsel %vm94_vm1, %v69_v11, %v70_v13  ;;  %v98_v23 = vsel %vm92_vm0, %v40_v9, %v71_v14 }
   0x7   :  { %v99_v24 = vsel %vm94_vm1, %v72_v15, %v73_v16  ;;  %v20_v25 = vunpack.c.l.bf16 %v16_v17  ;;  %v49_v26 = vperm.slane %v29_v12, 5  ;;  %v50_v27 = vperm.slane %v29_v12, 6 }
   0x8   :  { %v51_v28 = vperm.slane %v29_v12, 7  ;;  %v21_v29 = vunpack.c.h.bf16 %v16_v17  ;;  %v97_v30 = vsel %vm96_vm2, %v93_v21, %v95_v22  ;;  %v44_v31 = vperm.slane %v29_v12, 0 }
   0x9   :  { %v100_v32 = vsel %vm96_vm2, %v98_v23, %v99_v24  ;;  %v48_v34 = vperm.slane %v29_v12, 4  ;;  %v74_v35 = vrot.slane %v45_v18, 6  ;;  %v75_v36 = vrot.slane %v46_v19, 4  ;;  %v18_v12 = vld [vmem:[%s421_s0 + $0x10] sm:$0xff] }
   0xa   :  { %v76_v37 = vrot.slane %v47_v20, 2  ;;  %v77_v38 = vrot.slane %v49_v26, 6  ;;  %v78_v39 = vrot.slane %v50_v27, 4  ;;  %v79_v40 = vrot.slane %v51_v28, 2 }
   0xb   :  { %v127_v41 = vmul.f32 %v97_v30, %v20_v25  ;;  %v128_v42 = vmul.f32 %v100_v32, %v21_v29  ;;  %v53_v44 = vperm.slane %v334_v33, 1  ;;  %v54_v45 = vperm.slane %v334_v33, 2 }
   0xc   :  { %v55_v47 = vperm.slane %v334_v33, 3  ;;  %v57_v48 = vperm.slane %v334_v33, 5  ;;  %v101_v49 = vsel %vm92_vm0, %v44_v31, %v74_v35  ;;  %v102_v50 = vsel %vm94_vm1, %v75_v36, %v76_v37 }
   0xd   :  { %143 = vst [vmem:[#allocation1] ss:$4 sm:$0xff] %v127_v41  ;;  %v58_v51 = vperm.slane %v334_v33, 6  ;;  %v59_v52 = vperm.slane %v334_v33, 7  ;;  %v104_v53 = vsel %vm92_vm0, %v48_v34, %v77_v38  ;;  %v105_v54 = vsel %vm94_vm1, %v78_v39, %v79_v40 }
   0xe   :  { %145 = vst [vmem:[#allocation1 + $0x20] ss:$4 sm:$0xff] %v128_v42  ;;  %v22_v55 = vunpack.c.l.bf16 %v17_v43  ;;  %v23_v56 = vunpack.c.h.bf16 %v17_v43  ;;  %v52_v57 = vperm.slane %v334_v33, 0  ;;  %v56_v58 = vperm.slane %v334_v33, 4 }
   0xf   :  { %v61_v59 = vperm.slane %v344_v46, 1  ;;  %v62_v60 = vperm.slane %v344_v46, 2  ;;  %v103_v61 = vsel %vm96_vm2, %v101_v49, %v102_v50  ;;  %v63_v62 = vperm.slane %v344_v46, 3 }
  0x10   :  { %v80_v63 = vrot.slane %v53_v44, 6  ;;  %v81_v0 = vrot.slane %v54_v45, 4  ;;  %v106_v1 = vsel %vm96_vm2, %v104_v53, %v105_v54  ;;  %v82_v2 = vrot.slane %v55_v47, 2 }
  0x11   :  { %v83_v3 = vrot.slane %v57_v48, 6  ;;  %v84_v4 = vrot.slane %v58_v51, 4  ;;  %v85_v5 = vrot.slane %v59_v52, 2  ;;  %v129_v6 = vmul.f32 %v103_v61, %v22_v55 }
  0x12   :  { %v130_v9 = vmul.f32 %v106_v1, %v23_v56  ;;  %v65_v17 = vperm.slane %v344_v46, 5  ;;  %v66_v21 = vperm.slane %v344_v46, 6  ;;  %v107_v22 = vsel %vm92_vm0, %v52_v57, %v80_v63 }
  0x13   :  { %v108_v23 = vsel %vm94_vm1, %v81_v0, %v82_v2  ;;  %v67_v25 = vperm.slane %v344_v46, 7  ;;  %v110_v26 = vsel %vm92_vm0, %v56_v58, %v83_v3  ;;  %v111_v27 = vsel %vm94_vm1, %v84_v4, %v85_v5  ;;  %v19_v58 = vld [vmem:[%s421_s0 + $0x18] sm:$0xff] }
  0x14   :  { %v146_v7 = vld.sshfl [vmem:[#allocation1] sm:$0xff pattern:$0x73625140]  ;;  %v147_v8 = vld.sshfl [vmem:[#allocation1 + $0x8] sm:$0xff pattern:$0x73625140]  ;;  %v24_v29 = vunpack.c.l.bf16 %v18_v12  ;;  %v25_v30 = vunpack.c.h.bf16 %v18_v12  ;;  %v109_v35 = vsel %vm96_vm2, %v107_v22, %v108_v23  ;;  %v112_v39 = vsel %vm96_vm2, %v110_v26, %v111_v27 }
  0x15   :  { %v148_v10 = vld.sshfl [vmem:[#allocation1 + $0x10] sm:$0xff pattern:$0x73625140]  ;;  %v149_v11 = vld.sshfl [vmem:[#allocation1 + $0x18] sm:$0xff pattern:$0x73625140]  ;;  %v26_v3 = vunpack.c.l.bf16 %v19_v58  ;;  %v27_v5 = vunpack.c.h.bf16 %v19_v58 }
  0x16   :  { %v150_v13 = vld.sshfl [vmem:[#allocation1 + $0x20] sm:$0xff pattern:$0x73625140]  ;;  %v151_v14 = vld.sshfl [vmem:[#allocation1 + $0x28] sm:$0xff pattern:$0x73625140]  ;;  %v131_v45 = vmul.f32 %v109_v35, %v24_v29  ;;  %v132_v50 = vmul.f32 %v112_v39, %v25_v30 }
  0x17   :  { %v152_v15 = vld.sshfl [vmem:[#allocation1 + $0x30] sm:$0xff pattern:$0x73625140]  ;;  %v153_v16 = vld.sshfl [vmem:[#allocation1 + $0x38] sm:$0xff pattern:$0x73625140] }
  0x18   :  { %154 = vst [vmem:[#allocation1] ss:$4 sm:$0xff] %v129_v6  ;;  %v216_v18 = vsel %vm92_vm0, %v146_v7, 0.0  ;;  %v217_v19 = vsel %vm92_vm0, %v147_v8, 0.0  ;;  %v219_v20 = vsel %vm92_vm0, %v148_v10, 0.0  ;;  %v221_v28 = vsel %vm92_vm0, %v149_v11, 0.0 }
  0x19   :  { %155 = vst [vmem:[#allocation1 + $0x20] ss:$4 sm:$0xff] %v130_v9  ;;  %v218_v24 = vadd.f32 %v217_v19, %v216_v18  ;;  %v60_v31 = vperm.slane %v344_v46, 0  ;;  %v64_v33 = vperm.slane %v344_v46, 4  ;;  %v86_v34 = vrot.slane %v61_v59, 6 }
  0x1a   :  { %v223_v36 = vsel %vm92_vm0, %v150_v13, 0.0  ;;  %v87_v37 = vrot.slane %v62_v60, 4  ;;  %v88_v38 = vrot.slane %v63_v62, 2  ;;  %v89_v41 = vrot.slane %v65_v17, 6 }
  0x1b   :  { %v220_v32 = vadd.f32 %v219_v20, %v218_v24  ;;  %v90_v42 = vrot.slane %v66_v21, 4  ;;  %v91_v43 = vrot.slane %v67_v25, 2  ;;  %v225_v44 = vsel %vm92_vm0, %v151_v14, 0.0 }
  0x1c   :  { %v227_v46 = vsel %vm92_vm0, %v152_v15, 0.0  ;;  %v229_v49 = vsel %vm92_vm0, %v153_v16, 0.0  ;;  %v113_v61 = vsel %vm92_vm0, %v60_v31, %v86_v34  ;;  %v114_v62 = vsel %vm94_vm1, %v87_v37, %v88_v38 }
  0x1d   :  { %v222_v40 = vadd.f32 %v221_v28, %v220_v32  ;;  %v116_v0 = vsel %vm92_vm0, %v64_v33, %v89_v41  ;;  %v117_v1 = vsel %vm94_vm1, %v90_v42, %v91_v43  ;;  %v115_v6 = vsel %vm96_vm2, %v113_v61, %v114_v62 }
  0x1e   :  { %v118_v8 = vsel %vm96_vm2, %v116_v0, %v117_v1  ;;  %v133_v11 = vmul.f32 %v115_v6, %v26_v3 }
  0x1f   :  { %v156_v47 = vld.sshfl [vmem:[#allocation1] sm:$0xff pattern:$0x73625140]  ;;  %v224_v48 = vadd.f32 %v223_v36, %v222_v40  ;;  %v157_v51 = vld.sshfl [vmem:[#allocation1 + $0x8] sm:$0xff pattern:$0x73625140]  ;;  %v134_v14 = vmul.f32 %v118_v8, %v27_v5 }
  0x20   :  { %v158_v52 = vld.sshfl [vmem:[#allocation1 + $0x10] sm:$0xff pattern:$0x73625140]  ;;  %v159_v53 = vld.sshfl [vmem:[#allocation1 + $0x18] sm:$0xff pattern:$0x73625140] }
  0x21   :  { %v160_v54 = vld.sshfl [vmem:[#allocation1 + $0x20] sm:$0xff pattern:$0x73625140]  ;;  %v226_v55 = vadd.f32 %v225_v44, %v224_v48  ;;  %v161_v56 = vld.sshfl [vmem:[#allocation1 + $0x28] sm:$0xff pattern:$0x73625140] }
  0x22   :  { %v162_v57 = vld.sshfl [vmem:[#allocation1 + $0x30] sm:$0xff pattern:$0x73625140]  ;;  %v163_v59 = vld.sshfl [vmem:[#allocation1 + $0x38] sm:$0xff pattern:$0x73625140] }
  0x23   :  { %164 = vst [vmem:[#allocation1] ss:$4 sm:$0xff] %v131_v45  ;;  %v228_v60 = vadd.f32 %v227_v46, %v226_v55  ;;  %v231_v63 = vsel %vm92_vm0, %v156_v47, 0.0  ;;  %v233_v4 = vsel %vm92_vm0, %v157_v51, 0.0  ;;  %v235_v9 = vsel %vm92_vm0, %v158_v52, 0.0 }
  0x24   :  { %165 = vst [vmem:[#allocation1 + $0x20] ss:$4 sm:$0xff] %v132_v50  ;;  %v237_v12 = vsel %vm92_vm0, %v159_v53, 0.0  ;;  %v239_v13 = vsel %vm92_vm0, %v160_v54, 0.0  ;;  %v241_v25 = vsel %vm92_vm0, %v161_v56, 0.0  ;;  %v243_v27 = vsel %vm92_vm0, %v162_v57, 0.0 }
  0x25   :  { %v230_v2 = vadd.f32 %v229_v49, %v228_v60  ;;  %v245_v29 = vsel %vm92_vm0, %v163_v59, 0.0  ;;  %v292_v8 = vld [vmem:[#allocation2] ss:$0 sm:$0xff] }
  0x27   :  { %v232_v7 = vadd.f32 %v231_v63, %v230_v2 }
  0x29   :  { %v234_v10 = vadd.f32 %v233_v4, %v232_v7 }
  0x2a   :  { %v166_v15 = vld.sshfl [vmem:[#allocation1] sm:$0xff pattern:$0x73625140]  ;;  %v167_v16 = vld.sshfl [vmem:[#allocation1 + $0x8] sm:$0xff pattern:$0x73625140] }
  0x2b   :  { %v168_v17 = vld.sshfl [vmem:[#allocation1 + $0x10] sm:$0xff pattern:$0x73625140]  ;;  %v236_v18 = vadd.f32 %v235_v9, %v234_v10  ;;  %v169_v19 = vld.sshfl [vmem:[#allocation1 + $0x18] sm:$0xff pattern:$0x73625140] }
  0x2c   :  { %v170_v20 = vld.sshfl [vmem:[#allocation1 + $0x20] sm:$0xff pattern:$0x73625140]  ;;  %v171_v21 = vld.sshfl [vmem:[#allocation1 + $0x28] sm:$0xff pattern:$0x73625140] }
  0x2d   :  { %v172_v22 = vld.sshfl [vmem:[#allocation1 + $0x30] sm:$0xff pattern:$0x73625140]  ;;  %v238_v23 = vadd.f32 %v237_v12, %v236_v18  ;;  %v173_v24 = vld.sshfl [vmem:[#allocation1 + $0x38] sm:$0xff pattern:$0x73625140] }
  0x2e   :  { %174 = vst [vmem:[#allocation1] ss:$4 sm:$0xff] %v133_v11  ;;  %v247_v31 = vsel %vm92_vm0, %v166_v15, 0.0  ;;  %v249_v33 = vsel %vm92_vm0, %v167_v16, 0.0  ;;  %v251_v35 = vsel %vm92_vm0, %v168_v17, 0.0  ;;  %v253_v37 = vsel %vm92_vm0, %v169_v19, 0.0 }
  0x2f   :  { %175 = vst [vmem:[#allocation1 + $0x20] ss:$4 sm:$0xff] %v134_v14  ;;  %v240_v26 = vadd.f32 %v239_v13, %v238_v23  ;;  %v255_v39 = vsel %vm92_vm0, %v170_v20, 0.0  ;;  %v257_v41 = vsel %vm92_vm0, %v171_v21, 0.0  ;;  %v259_v43 = vsel %vm92_vm0, %v172_v22, 0.0 }
  0x30   :  { %v261_v47 = vsel %vm92_vm0, %v173_v24, 0.0 }
  0x31   :  { %v242_v28 = vadd.f32 %v241_v25, %v240_v26 }
  0x33   :  { %v244_v30 = vadd.f32 %v243_v27, %v242_v28 }
  0x35   :  { %v246_v32 = vadd.f32 %v245_v29, %v244_v30  ;;  %v176_v44 = vld.sshfl [vmem:[#allocation1] sm:$0xff pattern:$0x73625140]  ;;  %v177_v48 = vld.sshfl [vmem:[#allocation1 + $0x8] sm:$0xff pattern:$0x73625140] }
  0x36   :  { %v263_v49 = vsel %vm92_vm0, %v176_v44, 0.0  ;;  %v178_v50 = vld.sshfl [vmem:[#allocation1 + $0x10] sm:$0xff pattern:$0x73625140]  ;;  %v265_v52 = vsel %vm92_vm0, %v177_v48, 0.0 }
  0x37   :  { %v248_v34 = vadd.f32 %v247_v31, %v246_v32  ;;  %v179_v53 = vld.sshfl [vmem:[#allocation1 + $0x18] sm:$0xff pattern:$0x73625140]  ;;  %v267_v55 = vsel %vm92_vm0, %v178_v50, 0.0 }
  0x38   :  { %v180_v56 = vld.sshfl [vmem:[#allocation1 + $0x20] sm:$0xff pattern:$0x73625140]  ;;  %v269_v58 = vsel %vm92_vm0, %v179_v53, 0.0 }
  0x39   :  { %v250_v36 = vadd.f32 %v249_v33, %v248_v34  ;;  %v181_v59 = vld.sshfl [vmem:[#allocation1 + $0x28] sm:$0xff pattern:$0x73625140]  ;;  %v271_v61 = vsel %vm92_vm0, %v180_v56, 0.0 }
  0x3a   :  { %v182_v62 = vld.sshfl [vmem:[#allocation1 + $0x30] sm:$0xff pattern:$0x73625140]  ;;  %v273_v0 = vsel %vm92_vm0, %v181_v59, 0.0 }
  0x3b   :  { %v252_v38 = vadd.f32 %v251_v35, %v250_v36  ;;  %v183_v1 = vld.sshfl [vmem:[#allocation1 + $0x38] sm:$0xff pattern:$0x73625140]  ;;  %v275_v3 = vsel %vm92_vm0, %v182_v62, 0.0 }
  0x3c   :  { %v277_v5 = vsel %vm92_vm0, %v183_v1, 0.0 }
  0x3d   :  { %v254_v40 = vadd.f32 %v253_v37, %v252_v38 }
  0x3f   :  { %v256_v42 = vadd.f32 %v255_v39, %v254_v40 }
  0x41   :  { %v258_v45 = vadd.f32 %v257_v41, %v256_v42 }
  0x43   :  { %v260_v46 = vadd.f32 %v259_v43, %v258_v45 }
  0x45   :  { %v262_v51 = vadd.f32 %v261_v47, %v260_v46 }
  0x47   :  { %v264_v54 = vadd.f32 %v263_v49, %v262_v51 }
  0x49   :  { %v266_v57 = vadd.f32 %v265_v52, %v264_v54 }
  0x4b   :  { %v268_v60 = vadd.f32 %v267_v55, %v266_v57 }
  0x4d   :  { %v270_v63 = vadd.f32 %v269_v58, %v268_v60 }
  0x4f   :  { %v272_v2 = vadd.f32 %v271_v61, %v270_v63 }
  0x51   :  { %v274_v4 = vadd.f32 %v273_v0, %v272_v2 }
  0x53   :  { %v276_v6 = vadd.f32 %v275_v3, %v274_v4 }
  0x55   :  { %v278_v7 = vadd.f32 %v277_v5, %v276_v6 }
  0x57   :  { %279 = vadd.xlane.f32.xlu0 %v278_v7 }
  0xca   :  { %v280_v9 = vpop.xlane.xlu0 %279 }
  0xcb   :  { %v285_v10 = vadd.f32 %v292_v8, %v280_v9 }
  0xcd   :  { %287 = vst.msk [vmem:[%s422_s3] sm:$0x3] %vm286_vm3, %v285_v10 }

</bundles_post_ra>
